<compile_context>
chip_gen: v6e
topology: v6e:2x2x1
jax: 0.10.0
libtpu: 0.0.40
codegen_flags: <defaults>
</compile_context>

<pallas_src>
import functools
import math

import jax
import jax.numpy as jnp
from jax.experimental import pallas as pl
from jax.experimental.pallas import tpu as pltpu


# ------------------------------ kernel helpers ------------------------------


def _layernorm(x, g, b, eps=1e-12):
    mu = jnp.mean(x, axis=-1, keepdims=True)
    xc = x - mu
    var = jnp.mean(xc * xc, axis=-1, keepdims=True)
    return xc * jax.lax.rsqrt(var + eps) * g + b


def _gelu_exact(x):
    # HF BertConfig(hidden_act='gelu') -> exact erf GELU.
    return 0.5 * x * (1.0 + jax.lax.erf(x * (1.0 / math.sqrt(2.0))))


# ------------------------------- fused kernel -------------------------------


def _fusion_fwd_kernel(*refs, num_layers, num_heads, n_modal, use_cls, lrelu,
                       aggreg):
    """One grid step = one BERT layer for one chunk of utterances.

    refs layout:
      [x, w, b] * n_modal                       projection inputs / weights (bf16 w)
      [clsprompt]                               if use_cls
      [wqkv, bqkv, wao, bao, g1, be1,
       wi,   bi,   wd,  bd,  g2, be2]           ONE layer's slice per grid step
      [o_ref]                                   (1, Mc, H) aggregated output block
      [h_scr]                                   (R, H) VMEM hidden-state carry

    Hidden states are token-major: row = token_index * Mc + utterance.
    """
    nin = 3 * n_modal + (1 if use_cls else 0) + 12
    in_refs, o_ref, h_scr = refs[:nin], refs[nin], refs[nin + 1]

    idx = 0
    modal = []
    for _ in range(n_modal):
        modal.append((in_refs[idx], in_refs[idx + 1], in_refs[idx + 2]))
        idx += 3
    cls_ref = None
    if use_cls:
        cls_ref = in_refs[idx]
        idx += 1
    (wqkv_ref, bqkv_ref, wao_ref, bao_ref, g1_ref, be1_ref,
     wi_ref, bi_ref, wd_ref, bd_ref, g2_ref, be2_ref) = in_refs[idx:idx + 12]

    R, H = h_scr.shape
    Mc = modal[0][0].shape[1]
    S = R // Mc
    dh = H // num_heads
    l = pl.program_id(1)

    # --------- projections + CLS prompt (first layer step of each chunk) ---------
    @pl.when(l == 0)
    def _project():
        base = 0
        if use_cls:
            h_scr[0:Mc, :] = jnp.broadcast_to(cls_ref[...], (Mc, H))
            base = 1
        for m, (x_ref, w_ref, b_ref) in enumerate(modal):
            y = jnp.dot(x_ref[0].astype(jnp.bfloat16), w_ref[...],
                        preferred_element_type=jnp.float32) + b_ref[...]
            if lrelu:
                y = jnp.where(y >= 0.0, y, 0.01 * y)          # LeakyReLU(0.01)
            blk = base + m
            h_scr[blk * Mc:(blk + 1) * Mc, :] = y

    # -------------------------------- one BERT layer --------------------------------
    h = h_scr[...]                                             # (R, H) f32

    # Fused QKV projection (1/sqrt(dh) already folded into the Q columns).
    qkv = jnp.dot(h.astype(jnp.bfloat16), wqkv_ref[0],
                  preferred_element_type=jnp.float32) + bqkv_ref[0]   # (R, 3H)

    # Block-diagonal attention: only same-utterance (row-aligned) token pairs.
    ctx_blocks = []
    for s in range(S):                                         # query token block
        head_ctx = []
        for hd in range(num_heads):
            qcol, kcol, vcol = hd * dh, H + hd * dh, 2 * H + hd * dh
            qs = qkv[s * Mc:(s + 1) * Mc, qcol:qcol + dh]      # (Mc, dh)
            sc = jnp.concatenate(
                [jnp.sum(qs * qkv[t * Mc:(t + 1) * Mc, kcol:kcol + dh],
                         axis=-1, keepdims=True)
                 for t in range(S)], axis=-1)                  # (Mc, S)
            sc = sc - jnp.max(sc, axis=-1, keepdims=True)
            p = jnp.exp(sc)
            p = p * pl.reciprocal(jnp.sum(p, axis=-1, keepdims=True), approx=True)
            acc = p[:, 0:1] * qkv[0:Mc, vcol:vcol + dh]
            for t in range(1, S):
                acc = acc + p[:, t:t + 1] * qkv[t * Mc:(t + 1) * Mc,
                                                vcol:vcol + dh]
            head_ctx.append(acc)                               # (Mc, dh)
        ctx_blocks.append(head_ctx[0] if num_heads == 1
                          else jnp.concatenate(head_ctx, axis=-1))
    ctx = ctx_blocks[0] if S == 1 else jnp.concatenate(ctx_blocks, axis=0)  # (R, H)

    attn_out = jnp.dot(ctx.astype(jnp.bfloat16), wao_ref[0],
                       preferred_element_type=jnp.float32) + bao_ref[0]
    h = _layernorm(h + attn_out, g1_ref[0], be1_ref[0])

    inter = _gelu_exact(jnp.dot(h.astype(jnp.bfloat16), wi_ref[0],
                                preferred_element_type=jnp.float32) + bi_ref[0])
    ffn = jnp.dot(inter.astype(jnp.bfloat16), wd_ref[0],
                  preferred_element_type=jnp.float32) + bd_ref[0]
    h = _layernorm(h + ffn, g2_ref[0], be2_ref[0])

    h_scr[...] = h

    # -------------------- aggregation + output (last layer only) --------------------
    @pl.when(l == num_layers - 1)
    def _write():
        if aggreg == "cls":
            res = h[0:Mc, :]                                   # CLS token block
        else:
            blocks = [h[s * Mc:(s + 1) * Mc, :] for s in range(S)]
            if aggreg == "mean":
                res = functools.reduce(jnp.add, blocks) * (1.0 / S)
            elif aggreg == "max":
                res = functools.reduce(jnp.maximum, blocks)
            else:  # "min"
                res = functools.reduce(jnp.minimum, blocks)
        o_ref[0] = res.astype(o_ref.dtype)                     # lane-dense (Mc, 128)


# --------------------------- parameter initialization ---------------------------


def init_params(key, layers, hidden, repr_dim, audio_dim, video_dim):
    assert hidden % 64 == 0, "BertConfig uses num_attention_heads = hidden // 64"
    qscale = 1.0 / math.sqrt(64.0)            # head_dim is always 64 in this config
    ks = jax.random.split(key, 4 + layers)

    def torch_linear(k, din, dout):
        k1, k2 = jax.random.split(k)
        bound = 1.0 / math.sqrt(din)
        w = jax.random.uniform(k1, (din, dout), jnp.float32, -bound, bound)
        b = jax.random.uniform(k2, (1, dout), jnp.float32, -bound, bound)
        return w.astype(jnp.bfloat16), b       # matmul weights in bf16

    p = {}
    p["repr_w"], p["repr_b"] = torch_linear(ks[0], repr_dim, hidden)
    p["audio_w"], p["audio_b"] = torch_linear(ks[1], audio_dim, hidden)
    p["video_w"], p["video_b"] = torch_linear(ks[2], video_dim, hidden)
    # xavier_uniform for the (1, hidden) CLS prompt.
    xb = math.sqrt(6.0 / (1 + hidden))
    p["clsprompt"] = jax.random.uniform(ks[3], (1, hidden), jnp.float32, -xb, xb)

    inter = 4 * hidden
    std = 0.02                                  # BertConfig initializer_range
    keys12 = ["wqkv", "bqkv", "wao", "bao", "g1", "be1",
              "wi", "bi", "wd", "bd", "g2", "be2"]
    per_layer = {k: [] for k in keys12}
    for l in range(layers):
        lk = jax.random.split(ks[4 + l], 6)
        # Fold the 1/sqrt(head_dim) attention scale into W_q (and b_q, zero here).
        wq = std * jax.random.normal(lk[0], (hidden, hidden), jnp.float32) * qscale
        wk = std * jax.random.normal(lk[1], (hidden, hidden), jnp.float32)
        wv = std * jax.random.normal(lk[2], (hidden, hidden), jnp.float32)
        per_layer["wqkv"].append(jnp.concatenate([wq, wk, wv], axis=1))
        per_layer["bqkv"].append(jnp.zeros((1, 3 * hidden), jnp.float32))
        per_layer["wao"].append(std * jax.random.normal(lk[3], (hidden, hidden), jnp.float32))
        per_layer["bao"].append(jnp.zeros((1, hidden), jnp.float32))
        per_layer["g1"].append(jnp.ones((1, hidden), jnp.float32))
        per_layer["be1"].append(jnp.zeros((1, hidden), jnp.float32))
        per_layer["wi"].append(std * jax.random.normal(lk[4], (hidden, inter), jnp.float32))
        per_layer["bi"].append(jnp.zeros((1, inter), jnp.float32))
        per_layer["wd"].append(std * jax.random.normal(lk[5], (inter, hidden), jnp.float32))
        per_layer["bd"].append(jnp.zeros((1, hidden), jnp.float32))
        per_layer["g2"].append(jnp.ones((1, hidden), jnp.float32))
        per_layer["be2"].append(jnp.zeros((1, hidden), jnp.float32))

    bf16_keys = {"wqkv", "wao", "wi", "wd"}
    for k in keys12:
        arr = jnp.stack(per_layer[k], axis=0)    # (layers, ...)
        p[k] = arr.astype(jnp.bfloat16) if k in bf16_keys else arr
    return p


# --------------------------------- forward ---------------------------------


def fusion_module_forward(params, utt_repr, utt_audio, utt_video, utt_speakers,
                          *, audio=True, video=True, aggreg="cls",
                          proj_lrelu=False, n_chunks=2):
    if aggreg == "spkrcls":
        # TODO(synk): 'spkrcls' speaker-embedding prompt not implemented here.
        raise NotImplementedError("spkrcls aggregation not implemented")
    if aggreg not in ("cls", "mean", "max", "min"):
        raise NotImplementedError(aggreg)

    B, N, _ = utt_repr.shape
    M = B * N
    H = params["repr_w"].shape[-1]
    L = params["wqkv"].shape[0]
    num_heads = H // 64                          # BertConfig: hidden // 64
    use_cls = aggreg == "cls"

    modal = [(utt_repr, params["repr_w"], params["repr_b"])]
    if audio:
        modal.append((utt_audio, params["audio_w"], params["audio_b"]))
    if video:
        modal.append((utt_video, params["video_w"], params["video_b"]))
    n_modal = len(modal)
    S = n_modal + (1 if use_cls else 0)

    # Chunk the (independent) utterance axis only when each chunk still feeds the
    # MXU with >= 256 rows (v7x megacore); single-TC v5e/v6e want one big step.
    NC = 1
    if n_chunks > 1 and M % n_chunks == 0 and (M // n_chunks) * S >= 256:
        NC = n_chunks
    Mc = M // NC
    R = S * Mc

    inputs, in_specs = [], []
    for x, w, b in modal:
        xr = x.reshape(NC, Mc, x.shape[-1])
        inputs += [xr, w, b]
        in_specs += [
            pl.BlockSpec((1, Mc, xr.shape[-1]), lambda i, l: (i, 0, 0)),
            pl.BlockSpec(w.shape, lambda i, l: (0, 0)),       # resident weight
            pl.BlockSpec(b.shape, lambda i, l: (0, 0)),
        ]
    if use_cls:
        inputs.append(params["clsprompt"])
        in_specs.append(pl.BlockSpec(params["clsprompt"].shape, lambda i, l: (0, 0)))
    for kname in ["wqkv", "bqkv", "wao", "bao", "g1", "be1",
                  "wi", "bi", "wd", "bd", "g2", "be2"]:
        arr = params[kname]
        inputs.append(arr)
        # One layer's slice per grid step: Pallas double-buffers it, so the next
        # layer's weights prefetch behind the current layer's matmuls and VMEM
        # stays ~2 layers' worth regardless of L.
        in_specs.append(pl.BlockSpec((1,) + arr.shape[1:], lambda i, l: (l, 0, 0)))

    kernel = functools.partial(
        _fusion_fwd_kernel, num_layers=L, num_heads=num_heads, n_modal=n_modal,
        use_cls=use_cls, lrelu=proj_lrelu, aggreg=aggreg)

    out = pl.pallas_call(
        kernel,
        out_shape=jax.ShapeDtypeStruct((NC, Mc, H), jnp.float32),
        grid=(NC, L),
        in_specs=in_specs,
        out_specs=pl.BlockSpec((1, Mc, H), lambda i, l: (i, 0, 0)),
        scratch_shapes=[pltpu.VMEM((R, H), jnp.float32)],     # hidden-state carry
        compiler_params=pltpu.CompilerParams(
            dimension_semantics=("parallel", "arbitrary"),
            vmem_limit_bytes=32 * 1024 * 1024),
    )(*inputs)

    # Aggregation already done in-kernel -> (NC, Mc, H) with NC*Mc = B*N.
    return out.reshape(B, N, H)


# ----------------------------------- main -----------------------------------

if __name__ == "__main__":
    LAYERS = 2
    HIDDEN = 128            # -> num_attention_heads = 128 // 64 = 2
    REPR_DIM = 64
    AUDIO_DIM = 128
    VIDEO_DIM = 128
    B, N = 2, 4             # batch, n_utts

    root = jax.random.PRNGKey(0)
    kp, kr, ka, kv = jax.random.split(root, 4)

    params = init_params(kp, LAYERS, HIDDEN, REPR_DIM, AUDIO_DIM, VIDEO_DIM)

    utt_repr = jax.random.normal(kr, (B, N, REPR_DIM), jnp.float32)
    utt_audio = jax.random.normal(ka, (B, N, AUDIO_DIM), jnp.float32)
    utt_video = jax.random.normal(kv, (B, N, VIDEO_DIM), jnp.float32)
    utt_speakers = jnp.zeros((B, N), jnp.int32)  # unused for aggreg='cls'

    out = fusion_module_forward(params, utt_repr, utt_audio, utt_video,
                                utt_speakers, audio=True, video=True,
                                aggreg="cls", proj_lrelu=False, n_chunks=2)
    out = jax.block_until_ready(out)
    assert out.shape == (B, N, HIDDEN)
    print("KERNEL_OK")
</pallas_src>

<mosaic_0001>
module attributes {stable_mosaic.version = 11 : i64} {
  func.func @_fusion_fwd_kernel(%arg0: i32, %arg1: i32, %arg2: memref<1x8x64xf32, #tpu.memory_space<vmem>>, %arg3: memref<64x128xbf16, #tpu.memory_space<vmem>>, %arg4: memref<1x128xf32, #tpu.memory_space<vmem>>, %arg5: memref<1x8x128xf32, #tpu.memory_space<vmem>>, %arg6: memref<128x128xbf16, #tpu.memory_space<vmem>>, %arg7: memref<1x128xf32, #tpu.memory_space<vmem>>, %arg8: memref<1x8x128xf32, #tpu.memory_space<vmem>>, %arg9: memref<128x128xbf16, #tpu.memory_space<vmem>>, %arg10: memref<1x128xf32, #tpu.memory_space<vmem>>, %arg11: memref<1x128xf32, #tpu.memory_space<vmem>>, %arg12: memref<1x128x384xbf16, #tpu.memory_space<vmem>>, %arg13: memref<1x1x384xf32, #tpu.memory_space<vmem>>, %arg14: memref<1x128x128xbf16, #tpu.memory_space<vmem>>, %arg15: memref<1x1x128xf32, #tpu.memory_space<vmem>>, %arg16: memref<1x1x128xf32, #tpu.memory_space<vmem>>, %arg17: memref<1x1x128xf32, #tpu.memory_space<vmem>>, %arg18: memref<1x128x512xbf16, #tpu.memory_space<vmem>>, %arg19: memref<1x1x512xf32, #tpu.memory_space<vmem>>, %arg20: memref<1x512x128xbf16, #tpu.memory_space<vmem>>, %arg21: memref<1x1x128xf32, #tpu.memory_space<vmem>>, %arg22: memref<1x1x128xf32, #tpu.memory_space<vmem>>, %arg23: memref<1x1x128xf32, #tpu.memory_space<vmem>>, %arg24: memref<1x8x128xf32, #tpu.memory_space<vmem>>, %arg25: memref<32x128xf32, #tpu.memory_space<vmem>>) attributes {dimension_semantics = [#tpu.dimension_semantics<parallel>, #tpu.dimension_semantics<arbitrary>], iteration_bounds = array<i64: 1, 2>, scalar_prefetch = 0 : i64, scratch_operands = 1 : i64, tpu.core_type = #tpu.core_type<tc>, window_params = [{transform_indices = @transform_0, window_bounds = array<i64: 1, 8, 64>}, {pipeline_mode = #tpu.pipeline_mode<synchronous>, transform_indices = @transform_1, window_bounds = array<i64: 64, 128>}, {pipeline_mode = #tpu.pipeline_mode<synchronous>, transform_indices = @transform_2, window_bounds = array<i64: 1, 128>}, {transform_indices = @transform_3, window_bounds = array<i64: 1, 8, 128>}, {pipeline_mode = #tpu.pipeline_mode<synchronous>, transform_indices = @transform_4, window_bounds = array<i64: 128, 128>}, {pipeline_mode = #tpu.pipeline_mode<synchronous>, transform_indices = @transform_5, window_bounds = array<i64: 1, 128>}, {transform_indices = @transform_6, window_bounds = array<i64: 1, 8, 128>}, {pipeline_mode = #tpu.pipeline_mode<synchronous>, transform_indices = @transform_7, window_bounds = array<i64: 128, 128>}, {pipeline_mode = #tpu.pipeline_mode<synchronous>, transform_indices = @transform_8, window_bounds = array<i64: 1, 128>}, {pipeline_mode = #tpu.pipeline_mode<synchronous>, transform_indices = @transform_9, window_bounds = array<i64: 1, 128>}, {transform_indices = @transform_10, window_bounds = array<i64: 1, 128, 384>}, {transform_indices = @transform_11, window_bounds = array<i64: 1, 1, 384>}, {transform_indices = @transform_12, window_bounds = array<i64: 1, 128, 128>}, {transform_indices = @transform_13, window_bounds = array<i64: 1, 1, 128>}, {transform_indices = @transform_14, window_bounds = array<i64: 1, 1, 128>}, {transform_indices = @transform_15, window_bounds = array<i64: 1, 1, 128>}, {transform_indices = @transform_16, window_bounds = array<i64: 1, 128, 512>}, {transform_indices = @transform_17, window_bounds = array<i64: 1, 1, 512>}, {transform_indices = @transform_18, window_bounds = array<i64: 1, 512, 128>}, {transform_indices = @transform_19, window_bounds = array<i64: 1, 1, 128>}, {transform_indices = @transform_20, window_bounds = array<i64: 1, 1, 128>}, {transform_indices = @transform_21, window_bounds = array<i64: 1, 1, 128>}, {transform_indices = @transform_22, window_bounds = array<i64: 1, 8, 128>}]} {
    %c0_i32 = arith.constant 0 : i32
    %0 = arith.cmpi eq, %arg1, %c0_i32 : i32
    %1 = arith.extui %0 : i1 to i32
    %c0_i32_0 = arith.constant 0 : i32
    %2 = arith.cmpi ne, %1, %c0_i32_0 : i32
    scf.if %2 {
      %c0_105 = arith.constant 0 : index
      %c0_106 = arith.constant 0 : index
      %479 = vector.load %arg11[%c0_105, %c0_106] : memref<1x128xf32, #tpu.memory_space<vmem>>, vector<1x128xf32>
      %480 = vector.shape_cast %479 : vector<1x128xf32> to vector<1x128xf32>
      %481 = vector.broadcast %480 : vector<1x128xf32> to vector<8x128xf32>
      %c0_107 = arith.constant 0 : index
      %c0_108 = arith.constant 0 : index
      %482 = vector.load %arg25[%c0_107, %c0_108] : memref<32x128xf32, #tpu.memory_space<vmem>>, vector<8x128xf32>
      tpu.vector_store %arg25[%c0_107, %c0_108], %481 {strides = array<i32>} : memref<32x128xf32, #tpu.memory_space<vmem>>, vector<8x128xf32>,
      %c0_109 = arith.constant 0 : index
      %c0_110 = arith.constant 0 : index
      %c0_111 = arith.constant 0 : index
      %483 = vector.load %arg2[%c0_109, %c0_110, %c0_111] : memref<1x8x64xf32, #tpu.memory_space<vmem>>, vector<1x8x64xf32>
      %484 = vector.shape_cast %483 : vector<1x8x64xf32> to vector<8x64xf32>
      %485 = arith.truncf %484 : vector<8x64xf32> to vector<8x64xbf16>
      %c0_112 = arith.constant 0 : index
      %c0_113 = arith.constant 0 : index
      %486 = vector.load %arg3[%c0_112, %c0_113] : memref<64x128xbf16, #tpu.memory_space<vmem>>, vector<64x128xbf16>
      %cst_114 = arith.constant dense<0.000000e+00> : vector<8x128xf32>
      %487 = tpu.matmul %485, %486, %cst_114 {dimension_numbers = #tpu.dot_dimension_numbers<[1], [0], [0], [1], [0, 0, 1, 1], [], []>} : vector<8x64xbf16>, vector<64x128xbf16>, vector<8x128xf32> -> vector<8x128xf32>
      %c0_115 = arith.constant 0 : index
      %c0_116 = arith.constant 0 : index
      %488 = vector.load %arg4[%c0_115, %c0_116] : memref<1x128xf32, #tpu.memory_space<vmem>>, vector<1x128xf32>
      %489 = vector.broadcast %488 : vector<1x128xf32> to vector<8x128xf32>
      %490 = arith.addf %487, %489 : vector<8x128xf32>
      %c8 = arith.constant 8 : index
      %c0_117 = arith.constant 0 : index
      %491 = vector.load %arg25[%c8, %c0_117] : memref<32x128xf32, #tpu.memory_space<vmem>>, vector<8x128xf32>
      tpu.vector_store %arg25[%c8, %c0_117], %490 {strides = array<i32>} : memref<32x128xf32, #tpu.memory_space<vmem>>, vector<8x128xf32>,
      %c0_118 = arith.constant 0 : index
      %c0_119 = arith.constant 0 : index
      %c0_120 = arith.constant 0 : index
      %492 = vector.load %arg5[%c0_118, %c0_119, %c0_120] : memref<1x8x128xf32, #tpu.memory_space<vmem>>, vector<1x8x128xf32>
      %493 = vector.shape_cast %492 : vector<1x8x128xf32> to vector<8x128xf32>
      %494 = arith.truncf %493 : vector<8x128xf32> to vector<8x128xbf16>
      %c0_121 = arith.constant 0 : index
      %c0_122 = arith.constant 0 : index
      %495 = vector.load %arg6[%c0_121, %c0_122] : memref<128x128xbf16, #tpu.memory_space<vmem>>, vector<128x128xbf16>
      %cst_123 = arith.constant dense<0.000000e+00> : vector<8x128xf32>
      %496 = tpu.matmul %494, %495, %cst_123 {dimension_numbers = #tpu.dot_dimension_numbers<[1], [0], [0], [1], [0, 0, 1, 1], [], []>} : vector<8x128xbf16>, vector<128x128xbf16>, vector<8x128xf32> -> vector<8x128xf32>
      %c0_124 = arith.constant 0 : index
      %c0_125 = arith.constant 0 : index
      %497 = vector.load %arg7[%c0_124, %c0_125] : memref<1x128xf32, #tpu.memory_space<vmem>>, vector<1x128xf32>
      %498 = vector.broadcast %497 : vector<1x128xf32> to vector<8x128xf32>
      %499 = arith.addf %496, %498 : vector<8x128xf32>
      %c16 = arith.constant 16 : index
      %c0_126 = arith.constant 0 : index
      %500 = vector.load %arg25[%c16, %c0_126] : memref<32x128xf32, #tpu.memory_space<vmem>>, vector<8x128xf32>
      tpu.vector_store %arg25[%c16, %c0_126], %499 {strides = array<i32>} : memref<32x128xf32, #tpu.memory_space<vmem>>, vector<8x128xf32>,
      %c0_127 = arith.constant 0 : index
      %c0_128 = arith.constant 0 : index
      %c0_129 = arith.constant 0 : index
      %501 = vector.load %arg8[%c0_127, %c0_128, %c0_129] : memref<1x8x128xf32, #tpu.memory_space<vmem>>, vector<1x8x128xf32>
      %502 = vector.shape_cast %501 : vector<1x8x128xf32> to vector<8x128xf32>
      %503 = arith.truncf %502 : vector<8x128xf32> to vector<8x128xbf16>
      %c0_130 = arith.constant 0 : index
      %c0_131 = arith.constant 0 : index
      %504 = vector.load %arg9[%c0_130, %c0_131] : memref<128x128xbf16, #tpu.memory_space<vmem>>, vector<128x128xbf16>
      %cst_132 = arith.constant dense<0.000000e+00> : vector<8x128xf32>
      %505 = tpu.matmul %503, %504, %cst_132 {dimension_numbers = #tpu.dot_dimension_numbers<[1], [0], [0], [1], [0, 0, 1, 1], [], []>} : vector<8x128xbf16>, vector<128x128xbf16>, vector<8x128xf32> -> vector<8x128xf32>
      %c0_133 = arith.constant 0 : index
      %c0_134 = arith.constant 0 : index
      %506 = vector.load %arg10[%c0_133, %c0_134] : memref<1x128xf32, #tpu.memory_space<vmem>>, vector<1x128xf32>
      %507 = vector.broadcast %506 : vector<1x128xf32> to vector<8x128xf32>
      %508 = arith.addf %505, %507 : vector<8x128xf32>
      %c24 = arith.constant 24 : index
      %c0_135 = arith.constant 0 : index
      %509 = vector.load %arg25[%c24, %c0_135] : memref<32x128xf32, #tpu.memory_space<vmem>>, vector<8x128xf32>
      tpu.vector_store %arg25[%c24, %c0_135], %508 {strides = array<i32>} : memref<32x128xf32, #tpu.memory_space<vmem>>, vector<8x128xf32>,
    } else {
    }
    %c0 = arith.constant 0 : index
    %c0_1 = arith.constant 0 : index
    %3 = vector.load %arg25[%c0, %c0_1] : memref<32x128xf32, #tpu.memory_space<vmem>>, vector<32x128xf32>
    %4 = arith.truncf %3 : vector<32x128xf32> to vector<32x128xbf16>
    %c0_2 = arith.constant 0 : index
    %c0_3 = arith.constant 0 : index
    %c0_4 = arith.constant 0 : index
    %5 = vector.load %arg12[%c0_2, %c0_3, %c0_4] : memref<1x128x384xbf16, #tpu.memory_space<vmem>>, vector<1x128x384xbf16>
    %6 = vector.shape_cast %5 : vector<1x128x384xbf16> to vector<128x384xbf16>
    %cst = arith.constant dense<0.000000e+00> : vector<32x384xf32>
    %7 = tpu.matmul %4, %6, %cst {dimension_numbers = #tpu.dot_dimension_numbers<[1], [0], [0], [1], [0, 0, 1, 1], [], []>} : vector<32x128xbf16>, vector<128x384xbf16>, vector<32x384xf32> -> vector<32x384xf32>
    %c0_5 = arith.constant 0 : index
    %c0_6 = arith.constant 0 : index
    %c0_7 = arith.constant 0 : index
    %8 = vector.load %arg13[%c0_5, %c0_6, %c0_7] : memref<1x1x384xf32, #tpu.memory_space<vmem>>, vector<1x1x384xf32>
    %9 = vector.shape_cast %8 : vector<1x1x384xf32> to vector<1x384xf32>
    %10 = vector.broadcast %9 : vector<1x384xf32> to vector<32x384xf32>
    %11 = arith.addf %7, %10 : vector<32x384xf32>
    %12 = vector.extract_strided_slice %11 {offsets = [0, 0], sizes = [8, 64], strides = [1, 1]} : vector<32x384xf32> to vector<8x64xf32>
    %13 = vector.extract_strided_slice %11 {offsets = [0, 128], sizes = [8, 64], strides = [1, 1]} : vector<32x384xf32> to vector<8x64xf32>
    %14 = arith.mulf %12, %13 : vector<8x64xf32>
    %cst_8 = arith.constant dense<0.000000e+00> : vector<8xf32>
    %15 = vector.multi_reduction <add>, %14, %cst_8 [1] : vector<8x64xf32> to vector<8xf32>
    %16 = vector.shape_cast %15 : vector<8xf32> to vector<8x1xf32>
    %17 = vector.extract_strided_slice %11 {offsets = [8, 128], sizes = [8, 64], strides = [1, 1]} : vector<32x384xf32> to vector<8x64xf32>
    %18 = arith.mulf %12, %17 : vector<8x64xf32>
    %cst_9 = arith.constant dense<0.000000e+00> : vector<8xf32>
    %19 = vector.multi_reduction <add>, %18, %cst_9 [1] : vector<8x64xf32> to vector<8xf32>
    %20 = vector.shape_cast %19 : vector<8xf32> to vector<8x1xf32>
    %21 = vector.extract_strided_slice %11 {offsets = [16, 128], sizes = [8, 64], strides = [1, 1]} : vector<32x384xf32> to vector<8x64xf32>
    %22 = arith.mulf %12, %21 : vector<8x64xf32>
    %cst_10 = arith.constant dense<0.000000e+00> : vector<8xf32>
    %23 = vector.multi_reduction <add>, %22, %cst_10 [1] : vector<8x64xf32> to vector<8xf32>
    %24 = vector.shape_cast %23 : vector<8xf32> to vector<8x1xf32>
    %25 = vector.extract_strided_slice %11 {offsets = [24, 128], sizes = [8, 64], strides = [1, 1]} : vector<32x384xf32> to vector<8x64xf32>
    %26 = arith.mulf %12, %25 : vector<8x64xf32>
    %cst_11 = arith.constant dense<0.000000e+00> : vector<8xf32>
    %27 = vector.multi_reduction <add>, %26, %cst_11 [1] : vector<8x64xf32> to vector<8xf32>
    %28 = vector.shape_cast %27 : vector<8xf32> to vector<8x1xf32>
    %29 = tpu.concatenate %16, %20, %24, %28 in 1 : vector<8x1xf32>, vector<8x1xf32>, vector<8x1xf32>, vector<8x1xf32> -> vector<8x4xf32>
    %cst_12 = arith.constant dense<0xFF800000> : vector<8xf32>
    %30 = vector.multi_reduction <maximumf>, %29, %cst_12 [1] : vector<8x4xf32> to vector<8xf32>
    %31 = vector.shape_cast %30 : vector<8xf32> to vector<8x1xf32>
    %32 = vector.broadcast %31 : vector<8x1xf32> to vector<8x4xf32>
    %33 = arith.subf %29, %32 : vector<8x4xf32>
    %34 = math.exp %33 : vector<8x4xf32>
    %cst_13 = arith.constant dense<0.000000e+00> : vector<8xf32>
    %35 = vector.multi_reduction <add>, %34, %cst_13 [1] : vector<8x4xf32> to vector<8xf32>
    %36 = vector.shape_cast %35 : vector<8xf32> to vector<8x1xf32>
    %37 = tpu.reciprocal %36 {approx = true} : vector<8x1xf32> -> vector<8x1xf32>
    %38 = vector.broadcast %37 : vector<8x1xf32> to vector<8x4xf32>
    %39 = arith.mulf %34, %38 : vector<8x4xf32>
    %40 = vector.extract_strided_slice %39 {offsets = [0, 0], sizes = [8, 1], strides = [1, 1]} : vector<8x4xf32> to vector<8x1xf32>
    %41 = vector.extract_strided_slice %11 {offsets = [0, 256], sizes = [8, 64], strides = [1, 1]} : vector<32x384xf32> to vector<8x64xf32>
    %42 = vector.broadcast %40 : vector<8x1xf32> to vector<8x64xf32>
    %43 = arith.mulf %42, %41 : vector<8x64xf32>
    %44 = vector.extract_strided_slice %39 {offsets = [0, 1], sizes = [8, 1], strides = [1, 1]} : vector<8x4xf32> to vector<8x1xf32>
    %45 = vector.extract_strided_slice %11 {offsets = [8, 256], sizes = [8, 64], strides = [1, 1]} : vector<32x384xf32> to vector<8x64xf32>
    %46 = vector.broadcast %44 : vector<8x1xf32> to vector<8x64xf32>
    %47 = arith.mulf %46, %45 : vector<8x64xf32>
    %48 = arith.addf %43, %47 : vector<8x64xf32>
    %49 = vector.extract_strided_slice %39 {offsets = [0, 2], sizes = [8, 1], strides = [1, 1]} : vector<8x4xf32> to vector<8x1xf32>
    %50 = vector.extract_strided_slice %11 {offsets = [16, 256], sizes = [8, 64], strides = [1, 1]} : vector<32x384xf32> to vector<8x64xf32>
    %51 = vector.broadcast %49 : vector<8x1xf32> to vector<8x64xf32>
    %52 = arith.mulf %51, %50 : vector<8x64xf32>
    %53 = arith.addf %48, %52 : vector<8x64xf32>
    %54 = vector.extract_strided_slice %39 {offsets = [0, 3], sizes = [8, 1], strides = [1, 1]} : vector<8x4xf32> to vector<8x1xf32>
    %55 = vector.extract_strided_slice %11 {offsets = [24, 256], sizes = [8, 64], strides = [1, 1]} : vector<32x384xf32> to vector<8x64xf32>
    %56 = vector.broadcast %54 : vector<8x1xf32> to vector<8x64xf32>
    %57 = arith.mulf %56, %55 : vector<8x64xf32>
    %58 = arith.addf %53, %57 : vector<8x64xf32>
    %59 = vector.extract_strided_slice %11 {offsets = [0, 64], sizes = [8, 64], strides = [1, 1]} : vector<32x384xf32> to vector<8x64xf32>
    %60 = vector.extract_strided_slice %11 {offsets = [0, 192], sizes = [8, 64], strides = [1, 1]} : vector<32x384xf32> to vector<8x64xf32>
    %61 = arith.mulf %59, %60 : vector<8x64xf32>
    %cst_14 = arith.constant dense<0.000000e+00> : vector<8xf32>
    %62 = vector.multi_reduction <add>, %61, %cst_14 [1] : vector<8x64xf32> to vector<8xf32>
    %63 = vector.shape_cast %62 : vector<8xf32> to vector<8x1xf32>
    %64 = vector.extract_strided_slice %11 {offsets = [8, 192], sizes = [8, 64], strides = [1, 1]} : vector<32x384xf32> to vector<8x64xf32>
    %65 = arith.mulf %59, %64 : vector<8x64xf32>
    %cst_15 = arith.constant dense<0.000000e+00> : vector<8xf32>
    %66 = vector.multi_reduction <add>, %65, %cst_15 [1] : vector<8x64xf32> to vector<8xf32>
    %67 = vector.shape_cast %66 : vector<8xf32> to vector<8x1xf32>
    %68 = vector.extract_strided_slice %11 {offsets = [16, 192], sizes = [8, 64], strides = [1, 1]} : vector<32x384xf32> to vector<8x64xf32>
    %69 = arith.mulf %59, %68 : vector<8x64xf32>
    %cst_16 = arith.constant dense<0.000000e+00> : vector<8xf32>
    %70 = vector.multi_reduction <add>, %69, %cst_16 [1] : vector<8x64xf32> to vector<8xf32>
    %71 = vector.shape_cast %70 : vector<8xf32> to vector<8x1xf32>
    %72 = vector.extract_strided_slice %11 {offsets = [24, 192], sizes = [8, 64], strides = [1, 1]} : vector<32x384xf32> to vector<8x64xf32>
    %73 = arith.mulf %59, %72 : vector<8x64xf32>
    %cst_17 = arith.constant dense<0.000000e+00> : vector<8xf32>
    %74 = vector.multi_reduction <add>, %73, %cst_17 [1] : vector<8x64xf32> to vector<8xf32>
    %75 = vector.shape_cast %74 : vector<8xf32> to vector<8x1xf32>
    %76 = tpu.concatenate %63, %67, %71, %75 in 1 : vector<8x1xf32>, vector<8x1xf32>, vector<8x1xf32>, vector<8x1xf32> -> vector<8x4xf32>
    %cst_18 = arith.constant dense<0xFF800000> : vector<8xf32>
    %77 = vector.multi_reduction <maximumf>, %76, %cst_18 [1] : vector<8x4xf32> to vector<8xf32>
    %78 = vector.shape_cast %77 : vector<8xf32> to vector<8x1xf32>
    %79 = vector.broadcast %78 : vector<8x1xf32> to vector<8x4xf32>
    %80 = arith.subf %76, %79 : vector<8x4xf32>
    %81 = math.exp %80 : vector<8x4xf32>
    %cst_19 = arith.constant dense<0.000000e+00> : vector<8xf32>
    %82 = vector.multi_reduction <add>, %81, %cst_19 [1] : vector<8x4xf32> to vector<8xf32>
    %83 = vector.shape_cast %82 : vector<8xf32> to vector<8x1xf32>
    %84 = tpu.reciprocal %83 {approx = true} : vector<8x1xf32> -> vector<8x1xf32>
    %85 = vector.broadcast %84 : vector<8x1xf32> to vector<8x4xf32>
    %86 = arith.mulf %81, %85 : vector<8x4xf32>
    %87 = vector.extract_strided_slice %86 {offsets = [0, 0], sizes = [8, 1], strides = [1, 1]} : vector<8x4xf32> to vector<8x1xf32>
    %88 = vector.extract_strided_slice %11 {offsets = [0, 320], sizes = [8, 64], strides = [1, 1]} : vector<32x384xf32> to vector<8x64xf32>
    %89 = vector.broadcast %87 : vector<8x1xf32> to vector<8x64xf32>
    %90 = arith.mulf %89, %88 : vector<8x64xf32>
    %91 = vector.extract_strided_slice %86 {offsets = [0, 1], sizes = [8, 1], strides = [1, 1]} : vector<8x4xf32> to vector<8x1xf32>
    %92 = vector.extract_strided_slice %11 {offsets = [8, 320], sizes = [8, 64], strides = [1, 1]} : vector<32x384xf32> to vector<8x64xf32>
    %93 = vector.broadcast %91 : vector<8x1xf32> to vector<8x64xf32>
    %94 = arith.mulf %93, %92 : vector<8x64xf32>
    %95 = arith.addf %90, %94 : vector<8x64xf32>
    %96 = vector.extract_strided_slice %86 {offsets = [0, 2], sizes = [8, 1], strides = [1, 1]} : vector<8x4xf32> to vector<8x1xf32>
    %97 = vector.extract_strided_slice %11 {offsets = [16, 320], sizes = [8, 64], strides = [1, 1]} : vector<32x384xf32> to vector<8x64xf32>
    %98 = vector.broadcast %96 : vector<8x1xf32> to vector<8x64xf32>
    %99 = arith.mulf %98, %97 : vector<8x64xf32>
    %100 = arith.addf %95, %99 : vector<8x64xf32>
    %101 = vector.extract_strided_slice %86 {offsets = [0, 3], sizes = [8, 1], strides = [1, 1]} : vector<8x4xf32> to vector<8x1xf32>
    %102 = vector.extract_strided_slice %11 {offsets = [24, 320], sizes = [8, 64], strides = [1, 1]} : vector<32x384xf32> to vector<8x64xf32>
    %103 = vector.broadcast %101 : vector<8x1xf32> to vector<8x64xf32>
    %104 = arith.mulf %103, %102 : vector<8x64xf32>
    %105 = arith.addf %100, %104 : vector<8x64xf32>
    %106 = tpu.concatenate %58, %105 in 1 : vector<8x64xf32>, vector<8x64xf32> -> vector<8x128xf32>
    %107 = vector.extract_strided_slice %11 {offsets = [8, 0], sizes = [8, 64], strides = [1, 1]} : vector<32x384xf32> to vector<8x64xf32>
    %108 = vector.extract_strided_slice %11 {offsets = [0, 128], sizes = [8, 64], strides = [1, 1]} : vector<32x384xf32> to vector<8x64xf32>
    %109 = arith.mulf %107, %108 : vector<8x64xf32>
    %cst_20 = arith.constant dense<0.000000e+00> : vector<8xf32>
    %110 = vector.multi_reduction <add>, %109, %cst_20 [1] : vector<8x64xf32> to vector<8xf32>
    %111 = vector.shape_cast %110 : vector<8xf32> to vector<8x1xf32>
    %112 = vector.extract_strided_slice %11 {offsets = [8, 128], sizes = [8, 64], strides = [1, 1]} : vector<32x384xf32> to vector<8x64xf32>
    %113 = arith.mulf %107, %112 : vector<8x64xf32>
    %cst_21 = arith.constant dense<0.000000e+00> : vector<8xf32>
    %114 = vector.multi_reduction <add>, %113, %cst_21 [1] : vector<8x64xf32> to vector<8xf32>
    %115 = vector.shape_cast %114 : vector<8xf32> to vector<8x1xf32>
    %116 = vector.extract_strided_slice %11 {offsets = [16, 128], sizes = [8, 64], strides = [1, 1]} : vector<32x384xf32> to vector<8x64xf32>
    %117 = arith.mulf %107, %116 : vector<8x64xf32>
    %cst_22 = arith.constant dense<0.000000e+00> : vector<8xf32>
    %118 = vector.multi_reduction <add>, %117, %cst_22 [1] : vector<8x64xf32> to vector<8xf32>
    %119 = vector.shape_cast %118 : vector<8xf32> to vector<8x1xf32>
    %120 = vector.extract_strided_slice %11 {offsets = [24, 128], sizes = [8, 64], strides = [1, 1]} : vector<32x384xf32> to vector<8x64xf32>
    %121 = arith.mulf %107, %120 : vector<8x64xf32>
    %cst_23 = arith.constant dense<0.000000e+00> : vector<8xf32>
    %122 = vector.multi_reduction <add>, %121, %cst_23 [1] : vector<8x64xf32> to vector<8xf32>
    %123 = vector.shape_cast %122 : vector<8xf32> to vector<8x1xf32>
    %124 = tpu.concatenate %111, %115, %119, %123 in 1 : vector<8x1xf32>, vector<8x1xf32>, vector<8x1xf32>, vector<8x1xf32> -> vector<8x4xf32>
    %cst_24 = arith.constant dense<0xFF800000> : vector<8xf32>
    %125 = vector.multi_reduction <maximumf>, %124, %cst_24 [1] : vector<8x4xf32> to vector<8xf32>
    %126 = vector.shape_cast %125 : vector<8xf32> to vector<8x1xf32>
    %127 = vector.broadcast %126 : vector<8x1xf32> to vector<8x4xf32>
    %128 = arith.subf %124, %127 : vector<8x4xf32>
    %129 = math.exp %128 : vector<8x4xf32>
    %cst_25 = arith.constant dense<0.000000e+00> : vector<8xf32>
    %130 = vector.multi_reduction <add>, %129, %cst_25 [1] : vector<8x4xf32> to vector<8xf32>
    %131 = vector.shape_cast %130 : vector<8xf32> to vector<8x1xf32>
    %132 = tpu.reciprocal %131 {approx = true} : vector<8x1xf32> -> vector<8x1xf32>
    %133 = vector.broadcast %132 : vector<8x1xf32> to vector<8x4xf32>
    %134 = arith.mulf %129, %133 : vector<8x4xf32>
    %135 = vector.extract_strided_slice %134 {offsets = [0, 0], sizes = [8, 1], strides = [1, 1]} : vector<8x4xf32> to vector<8x1xf32>
    %136 = vector.extract_strided_slice %11 {offsets = [0, 256], sizes = [8, 64], strides = [1, 1]} : vector<32x384xf32> to vector<8x64xf32>
    %137 = vector.broadcast %135 : vector<8x1xf32> to vector<8x64xf32>
    %138 = arith.mulf %137, %136 : vector<8x64xf32>
    %139 = vector.extract_strided_slice %134 {offsets = [0, 1], sizes = [8, 1], strides = [1, 1]} : vector<8x4xf32> to vector<8x1xf32>
    %140 = vector.extract_strided_slice %11 {offsets = [8, 256], sizes = [8, 64], strides = [1, 1]} : vector<32x384xf32> to vector<8x64xf32>
    %141 = vector.broadcast %139 : vector<8x1xf32> to vector<8x64xf32>
    %142 = arith.mulf %141, %140 : vector<8x64xf32>
    %143 = arith.addf %138, %142 : vector<8x64xf32>
    %144 = vector.extract_strided_slice %134 {offsets = [0, 2], sizes = [8, 1], strides = [1, 1]} : vector<8x4xf32> to vector<8x1xf32>
    %145 = vector.extract_strided_slice %11 {offsets = [16, 256], sizes = [8, 64], strides = [1, 1]} : vector<32x384xf32> to vector<8x64xf32>
    %146 = vector.broadcast %144 : vector<8x1xf32> to vector<8x64xf32>
    %147 = arith.mulf %146, %145 : vector<8x64xf32>
    %148 = arith.addf %143, %147 : vector<8x64xf32>
    %149 = vector.extract_strided_slice %134 {offsets = [0, 3], sizes = [8, 1], strides = [1, 1]} : vector<8x4xf32> to vector<8x1xf32>
    %150 = vector.extract_strided_slice %11 {offsets = [24, 256], sizes = [8, 64], strides = [1, 1]} : vector<32x384xf32> to vector<8x64xf32>
    %151 = vector.broadcast %149 : vector<8x1xf32> to vector<8x64xf32>
    %152 = arith.mulf %151, %150 : vector<8x64xf32>
    %153 = arith.addf %148, %152 : vector<8x64xf32>
    %154 = vector.extract_strided_slice %11 {offsets = [8, 64], sizes = [8, 64], strides = [1, 1]} : vector<32x384xf32> to vector<8x64xf32>
    %155 = vector.extract_strided_slice %11 {offsets = [0, 192], sizes = [8, 64], strides = [1, 1]} : vector<32x384xf32> to vector<8x64xf32>
    %156 = arith.mulf %154, %155 : vector<8x64xf32>
    %cst_26 = arith.constant dense<0.000000e+00> : vector<8xf32>
    %157 = vector.multi_reduction <add>, %156, %cst_26 [1] : vector<8x64xf32> to vector<8xf32>
    %158 = vector.shape_cast %157 : vector<8xf32> to vector<8x1xf32>
    %159 = vector.extract_strided_slice %11 {offsets = [8, 192], sizes = [8, 64], strides = [1, 1]} : vector<32x384xf32> to vector<8x64xf32>
    %160 = arith.mulf %154, %159 : vector<8x64xf32>
    %cst_27 = arith.constant dense<0.000000e+00> : vector<8xf32>
    %161 = vector.multi_reduction <add>, %160, %cst_27 [1] : vector<8x64xf32> to vector<8xf32>
    %162 = vector.shape_cast %161 : vector<8xf32> to vector<8x1xf32>
    %163 = vector.extract_strided_slice %11 {offsets = [16, 192], sizes = [8, 64], strides = [1, 1]} : vector<32x384xf32> to vector<8x64xf32>
    %164 = arith.mulf %154, %163 : vector<8x64xf32>
    %cst_28 = arith.constant dense<0.000000e+00> : vector<8xf32>
    %165 = vector.multi_reduction <add>, %164, %cst_28 [1] : vector<8x64xf32> to vector<8xf32>
    %166 = vector.shape_cast %165 : vector<8xf32> to vector<8x1xf32>
    %167 = vector.extract_strided_slice %11 {offsets = [24, 192], sizes = [8, 64], strides = [1, 1]} : vector<32x384xf32> to vector<8x64xf32>
    %168 = arith.mulf %154, %167 : vector<8x64xf32>
    %cst_29 = arith.constant dense<0.000000e+00> : vector<8xf32>
    %169 = vector.multi_reduction <add>, %168, %cst_29 [1] : vector<8x64xf32> to vector<8xf32>
    %170 = vector.shape_cast %169 : vector<8xf32> to vector<8x1xf32>
    %171 = tpu.concatenate %158, %162, %166, %170 in 1 : vector<8x1xf32>, vector<8x1xf32>, vector<8x1xf32>, vector<8x1xf32> -> vector<8x4xf32>
    %cst_30 = arith.constant dense<0xFF800000> : vector<8xf32>
    %172 = vector.multi_reduction <maximumf>, %171, %cst_30 [1] : vector<8x4xf32> to vector<8xf32>
    %173 = vector.shape_cast %172 : vector<8xf32> to vector<8x1xf32>
    %174 = vector.broadcast %173 : vector<8x1xf32> to vector<8x4xf32>
    %175 = arith.subf %171, %174 : vector<8x4xf32>
    %176 = math.exp %175 : vector<8x4xf32>
    %cst_31 = arith.constant dense<0.000000e+00> : vector<8xf32>
    %177 = vector.multi_reduction <add>, %176, %cst_31 [1] : vector<8x4xf32> to vector<8xf32>
    %178 = vector.shape_cast %177 : vector<8xf32> to vector<8x1xf32>
    %179 = tpu.reciprocal %178 {approx = true} : vector<8x1xf32> -> vector<8x1xf32>
    %180 = vector.broadcast %179 : vector<8x1xf32> to vector<8x4xf32>
    %181 = arith.mulf %176, %180 : vector<8x4xf32>
    %182 = vector.extract_strided_slice %181 {offsets = [0, 0], sizes = [8, 1], strides = [1, 1]} : vector<8x4xf32> to vector<8x1xf32>
    %183 = vector.extract_strided_slice %11 {offsets = [0, 320], sizes = [8, 64], strides = [1, 1]} : vector<32x384xf32> to vector<8x64xf32>
    %184 = vector.broadcast %182 : vector<8x1xf32> to vector<8x64xf32>
    %185 = arith.mulf %184, %183 : vector<8x64xf32>
    %186 = vector.extract_strided_slice %181 {offsets = [0, 1], sizes = [8, 1], strides = [1, 1]} : vector<8x4xf32> to vector<8x1xf32>
    %187 = vector.extract_strided_slice %11 {offsets = [8, 320], sizes = [8, 64], strides = [1, 1]} : vector<32x384xf32> to vector<8x64xf32>
    %188 = vector.broadcast %186 : vector<8x1xf32> to vector<8x64xf32>
    %189 = arith.mulf %188, %187 : vector<8x64xf32>
    %190 = arith.addf %185, %189 : vector<8x64xf32>
    %191 = vector.extract_strided_slice %181 {offsets = [0, 2], sizes = [8, 1], strides = [1, 1]} : vector<8x4xf32> to vector<8x1xf32>
    %192 = vector.extract_strided_slice %11 {offsets = [16, 320], sizes = [8, 64], strides = [1, 1]} : vector<32x384xf32> to vector<8x64xf32>
    %193 = vector.broadcast %191 : vector<8x1xf32> to vector<8x64xf32>
    %194 = arith.mulf %193, %192 : vector<8x64xf32>
    %195 = arith.addf %190, %194 : vector<8x64xf32>
    %196 = vector.extract_strided_slice %181 {offsets = [0, 3], sizes = [8, 1], strides = [1, 1]} : vector<8x4xf32> to vector<8x1xf32>
    %197 = vector.extract_strided_slice %11 {offsets = [24, 320], sizes = [8, 64], strides = [1, 1]} : vector<32x384xf32> to vector<8x64xf32>
    %198 = vector.broadcast %196 : vector<8x1xf32> to vector<8x64xf32>
    %199 = arith.mulf %198, %197 : vector<8x64xf32>
    %200 = arith.addf %195, %199 : vector<8x64xf32>
    %201 = tpu.concatenate %153, %200 in 1 : vector<8x64xf32>, vector<8x64xf32> -> vector<8x128xf32>
    %202 = vector.extract_strided_slice %11 {offsets = [16, 0], sizes = [8, 64], strides = [1, 1]} : vector<32x384xf32> to vector<8x64xf32>
    %203 = vector.extract_strided_slice %11 {offsets = [0, 128], sizes = [8, 64], strides = [1, 1]} : vector<32x384xf32> to vector<8x64xf32>
    %204 = arith.mulf %202, %203 : vector<8x64xf32>
    %cst_32 = arith.constant dense<0.000000e+00> : vector<8xf32>
    %205 = vector.multi_reduction <add>, %204, %cst_32 [1] : vector<8x64xf32> to vector<8xf32>
    %206 = vector.shape_cast %205 : vector<8xf32> to vector<8x1xf32>
    %207 = vector.extract_strided_slice %11 {offsets = [8, 128], sizes = [8, 64], strides = [1, 1]} : vector<32x384xf32> to vector<8x64xf32>
    %208 = arith.mulf %202, %207 : vector<8x64xf32>
    %cst_33 = arith.constant dense<0.000000e+00> : vector<8xf32>
    %209 = vector.multi_reduction <add>, %208, %cst_33 [1] : vector<8x64xf32> to vector<8xf32>
    %210 = vector.shape_cast %209 : vector<8xf32> to vector<8x1xf32>
    %211 = vector.extract_strided_slice %11 {offsets = [16, 128], sizes = [8, 64], strides = [1, 1]} : vector<32x384xf32> to vector<8x64xf32>
    %212 = arith.mulf %202, %211 : vector<8x64xf32>
    %cst_34 = arith.constant dense<0.000000e+00> : vector<8xf32>
    %213 = vector.multi_reduction <add>, %212, %cst_34 [1] : vector<8x64xf32> to vector<8xf32>
    %214 = vector.shape_cast %213 : vector<8xf32> to vector<8x1xf32>
    %215 = vector.extract_strided_slice %11 {offsets = [24, 128], sizes = [8, 64], strides = [1, 1]} : vector<32x384xf32> to vector<8x64xf32>
    %216 = arith.mulf %202, %215 : vector<8x64xf32>
    %cst_35 = arith.constant dense<0.000000e+00> : vector<8xf32>
    %217 = vector.multi_reduction <add>, %216, %cst_35 [1] : vector<8x64xf32> to vector<8xf32>
    %218 = vector.shape_cast %217 : vector<8xf32> to vector<8x1xf32>
    %219 = tpu.concatenate %206, %210, %214, %218 in 1 : vector<8x1xf32>, vector<8x1xf32>, vector<8x1xf32>, vector<8x1xf32> -> vector<8x4xf32>
    %cst_36 = arith.constant dense<0xFF800000> : vector<8xf32>
    %220 = vector.multi_reduction <maximumf>, %219, %cst_36 [1] : vector<8x4xf32> to vector<8xf32>
    %221 = vector.shape_cast %220 : vector<8xf32> to vector<8x1xf32>
    %222 = vector.broadcast %221 : vector<8x1xf32> to vector<8x4xf32>
    %223 = arith.subf %219, %222 : vector<8x4xf32>
    %224 = math.exp %223 : vector<8x4xf32>
    %cst_37 = arith.constant dense<0.000000e+00> : vector<8xf32>
    %225 = vector.multi_reduction <add>, %224, %cst_37 [1] : vector<8x4xf32> to vector<8xf32>
    %226 = vector.shape_cast %225 : vector<8xf32> to vector<8x1xf32>
    %227 = tpu.reciprocal %226 {approx = true} : vector<8x1xf32> -> vector<8x1xf32>
    %228 = vector.broadcast %227 : vector<8x1xf32> to vector<8x4xf32>
    %229 = arith.mulf %224, %228 : vector<8x4xf32>
    %230 = vector.extract_strided_slice %229 {offsets = [0, 0], sizes = [8, 1], strides = [1, 1]} : vector<8x4xf32> to vector<8x1xf32>
    %231 = vector.extract_strided_slice %11 {offsets = [0, 256], sizes = [8, 64], strides = [1, 1]} : vector<32x384xf32> to vector<8x64xf32>
    %232 = vector.broadcast %230 : vector<8x1xf32> to vector<8x64xf32>
    %233 = arith.mulf %232, %231 : vector<8x64xf32>
    %234 = vector.extract_strided_slice %229 {offsets = [0, 1], sizes = [8, 1], strides = [1, 1]} : vector<8x4xf32> to vector<8x1xf32>
    %235 = vector.extract_strided_slice %11 {offsets = [8, 256], sizes = [8, 64], strides = [1, 1]} : vector<32x384xf32> to vector<8x64xf32>
    %236 = vector.broadcast %234 : vector<8x1xf32> to vector<8x64xf32>
    %237 = arith.mulf %236, %235 : vector<8x64xf32>
    %238 = arith.addf %233, %237 : vector<8x64xf32>
    %239 = vector.extract_strided_slice %229 {offsets = [0, 2], sizes = [8, 1], strides = [1, 1]} : vector<8x4xf32> to vector<8x1xf32>
    %240 = vector.extract_strided_slice %11 {offsets = [16, 256], sizes = [8, 64], strides = [1, 1]} : vector<32x384xf32> to vector<8x64xf32>
    %241 = vector.broadcast %239 : vector<8x1xf32> to vector<8x64xf32>
    %242 = arith.mulf %241, %240 : vector<8x64xf32>
    %243 = arith.addf %238, %242 : vector<8x64xf32>
    %244 = vector.extract_strided_slice %229 {offsets = [0, 3], sizes = [8, 1], strides = [1, 1]} : vector<8x4xf32> to vector<8x1xf32>
    %245 = vector.extract_strided_slice %11 {offsets = [24, 256], sizes = [8, 64], strides = [1, 1]} : vector<32x384xf32> to vector<8x64xf32>
    %246 = vector.broadcast %244 : vector<8x1xf32> to vector<8x64xf32>
    %247 = arith.mulf %246, %245 : vector<8x64xf32>
    %248 = arith.addf %243, %247 : vector<8x64xf32>
    %249 = vector.extract_strided_slice %11 {offsets = [16, 64], sizes = [8, 64], strides = [1, 1]} : vector<32x384xf32> to vector<8x64xf32>
    %250 = vector.extract_strided_slice %11 {offsets = [0, 192], sizes = [8, 64], strides = [1, 1]} : vector<32x384xf32> to vector<8x64xf32>
    %251 = arith.mulf %249, %250 : vector<8x64xf32>
    %cst_38 = arith.constant dense<0.000000e+00> : vector<8xf32>
    %252 = vector.multi_reduction <add>, %251, %cst_38 [1] : vector<8x64xf32> to vector<8xf32>
    %253 = vector.shape_cast %252 : vector<8xf32> to vector<8x1xf32>
    %254 = vector.extract_strided_slice %11 {offsets = [8, 192], sizes = [8, 64], strides = [1, 1]} : vector<32x384xf32> to vector<8x64xf32>
    %255 = arith.mulf %249, %254 : vector<8x64xf32>
    %cst_39 = arith.constant dense<0.000000e+00> : vector<8xf32>
    %256 = vector.multi_reduction <add>, %255, %cst_39 [1] : vector<8x64xf32> to vector<8xf32>
    %257 = vector.shape_cast %256 : vector<8xf32> to vector<8x1xf32>
    %258 = vector.extract_strided_slice %11 {offsets = [16, 192], sizes = [8, 64], strides = [1, 1]} : vector<32x384xf32> to vector<8x64xf32>
    %259 = arith.mulf %249, %258 : vector<8x64xf32>
    %cst_40 = arith.constant dense<0.000000e+00> : vector<8xf32>
    %260 = vector.multi_reduction <add>, %259, %cst_40 [1] : vector<8x64xf32> to vector<8xf32>
    %261 = vector.shape_cast %260 : vector<8xf32> to vector<8x1xf32>
    %262 = vector.extract_strided_slice %11 {offsets = [24, 192], sizes = [8, 64], strides = [1, 1]} : vector<32x384xf32> to vector<8x64xf32>
    %263 = arith.mulf %249, %262 : vector<8x64xf32>
    %cst_41 = arith.constant dense<0.000000e+00> : vector<8xf32>
    %264 = vector.multi_reduction <add>, %263, %cst_41 [1] : vector<8x64xf32> to vector<8xf32>
    %265 = vector.shape_cast %264 : vector<8xf32> to vector<8x1xf32>
    %266 = tpu.concatenate %253, %257, %261, %265 in 1 : vector<8x1xf32>, vector<8x1xf32>, vector<8x1xf32>, vector<8x1xf32> -> vector<8x4xf32>
    %cst_42 = arith.constant dense<0xFF800000> : vector<8xf32>
    %267 = vector.multi_reduction <maximumf>, %266, %cst_42 [1] : vector<8x4xf32> to vector<8xf32>
    %268 = vector.shape_cast %267 : vector<8xf32> to vector<8x1xf32>
    %269 = vector.broadcast %268 : vector<8x1xf32> to vector<8x4xf32>
    %270 = arith.subf %266, %269 : vector<8x4xf32>
    %271 = math.exp %270 : vector<8x4xf32>
    %cst_43 = arith.constant dense<0.000000e+00> : vector<8xf32>
    %272 = vector.multi_reduction <add>, %271, %cst_43 [1] : vector<8x4xf32> to vector<8xf32>
    %273 = vector.shape_cast %272 : vector<8xf32> to vector<8x1xf32>
    %274 = tpu.reciprocal %273 {approx = true} : vector<8x1xf32> -> vector<8x1xf32>
    %275 = vector.broadcast %274 : vector<8x1xf32> to vector<8x4xf32>
    %276 = arith.mulf %271, %275 : vector<8x4xf32>
    %277 = vector.extract_strided_slice %276 {offsets = [0, 0], sizes = [8, 1], strides = [1, 1]} : vector<8x4xf32> to vector<8x1xf32>
    %278 = vector.extract_strided_slice %11 {offsets = [0, 320], sizes = [8, 64], strides = [1, 1]} : vector<32x384xf32> to vector<8x64xf32>
    %279 = vector.broadcast %277 : vector<8x1xf32> to vector<8x64xf32>
    %280 = arith.mulf %279, %278 : vector<8x64xf32>
    %281 = vector.extract_strided_slice %276 {offsets = [0, 1], sizes = [8, 1], strides = [1, 1]} : vector<8x4xf32> to vector<8x1xf32>
    %282 = vector.extract_strided_slice %11 {offsets = [8, 320], sizes = [8, 64], strides = [1, 1]} : vector<32x384xf32> to vector<8x64xf32>
    %283 = vector.broadcast %281 : vector<8x1xf32> to vector<8x64xf32>
    %284 = arith.mulf %283, %282 : vector<8x64xf32>
    %285 = arith.addf %280, %284 : vector<8x64xf32>
    %286 = vector.extract_strided_slice %276 {offsets = [0, 2], sizes = [8, 1], strides = [1, 1]} : vector<8x4xf32> to vector<8x1xf32>
    %287 = vector.extract_strided_slice %11 {offsets = [16, 320], sizes = [8, 64], strides = [1, 1]} : vector<32x384xf32> to vector<8x64xf32>
    %288 = vector.broadcast %286 : vector<8x1xf32> to vector<8x64xf32>
    %289 = arith.mulf %288, %287 : vector<8x64xf32>
    %290 = arith.addf %285, %289 : vector<8x64xf32>
    %291 = vector.extract_strided_slice %276 {offsets = [0, 3], sizes = [8, 1], strides = [1, 1]} : vector<8x4xf32> to vector<8x1xf32>
    %292 = vector.extract_strided_slice %11 {offsets = [24, 320], sizes = [8, 64], strides = [1, 1]} : vector<32x384xf32> to vector<8x64xf32>
    %293 = vector.broadcast %291 : vector<8x1xf32> to vector<8x64xf32>
    %294 = arith.mulf %293, %292 : vector<8x64xf32>
    %295 = arith.addf %290, %294 : vector<8x64xf32>
    %296 = tpu.concatenate %248, %295 in 1 : vector<8x64xf32>, vector<8x64xf32> -> vector<8x128xf32>
    %297 = vector.extract_strided_slice %11 {offsets = [24, 0], sizes = [8, 64], strides = [1, 1]} : vector<32x384xf32> to vector<8x64xf32>
    %298 = vector.extract_strided_slice %11 {offsets = [0, 128], sizes = [8, 64], strides = [1, 1]} : vector<32x384xf32> to vector<8x64xf32>
    %299 = arith.mulf %297, %298 : vector<8x64xf32>
    %cst_44 = arith.constant dense<0.000000e+00> : vector<8xf32>
    %300 = vector.multi_reduction <add>, %299, %cst_44 [1] : vector<8x64xf32> to vector<8xf32>
    %301 = vector.shape_cast %300 : vector<8xf32> to vector<8x1xf32>
    %302 = vector.extract_strided_slice %11 {offsets = [8, 128], sizes = [8, 64], strides = [1, 1]} : vector<32x384xf32> to vector<8x64xf32>
    %303 = arith.mulf %297, %302 : vector<8x64xf32>
    %cst_45 = arith.constant dense<0.000000e+00> : vector<8xf32>
    %304 = vector.multi_reduction <add>, %303, %cst_45 [1] : vector<8x64xf32> to vector<8xf32>
    %305 = vector.shape_cast %304 : vector<8xf32> to vector<8x1xf32>
    %306 = vector.extract_strided_slice %11 {offsets = [16, 128], sizes = [8, 64], strides = [1, 1]} : vector<32x384xf32> to vector<8x64xf32>
    %307 = arith.mulf %297, %306 : vector<8x64xf32>
    %cst_46 = arith.constant dense<0.000000e+00> : vector<8xf32>
    %308 = vector.multi_reduction <add>, %307, %cst_46 [1] : vector<8x64xf32> to vector<8xf32>
    %309 = vector.shape_cast %308 : vector<8xf32> to vector<8x1xf32>
    %310 = vector.extract_strided_slice %11 {offsets = [24, 128], sizes = [8, 64], strides = [1, 1]} : vector<32x384xf32> to vector<8x64xf32>
    %311 = arith.mulf %297, %310 : vector<8x64xf32>
    %cst_47 = arith.constant dense<0.000000e+00> : vector<8xf32>
    %312 = vector.multi_reduction <add>, %311, %cst_47 [1] : vector<8x64xf32> to vector<8xf32>
    %313 = vector.shape_cast %312 : vector<8xf32> to vector<8x1xf32>
    %314 = tpu.concatenate %301, %305, %309, %313 in 1 : vector<8x1xf32>, vector<8x1xf32>, vector<8x1xf32>, vector<8x1xf32> -> vector<8x4xf32>
    %cst_48 = arith.constant dense<0xFF800000> : vector<8xf32>
    %315 = vector.multi_reduction <maximumf>, %314, %cst_48 [1] : vector<8x4xf32> to vector<8xf32>
    %316 = vector.shape_cast %315 : vector<8xf32> to vector<8x1xf32>
    %317 = vector.broadcast %316 : vector<8x1xf32> to vector<8x4xf32>
    %318 = arith.subf %314, %317 : vector<8x4xf32>
    %319 = math.exp %318 : vector<8x4xf32>
    %cst_49 = arith.constant dense<0.000000e+00> : vector<8xf32>
    %320 = vector.multi_reduction <add>, %319, %cst_49 [1] : vector<8x4xf32> to vector<8xf32>
    %321 = vector.shape_cast %320 : vector<8xf32> to vector<8x1xf32>
    %322 = tpu.reciprocal %321 {approx = true} : vector<8x1xf32> -> vector<8x1xf32>
    %323 = vector.broadcast %322 : vector<8x1xf32> to vector<8x4xf32>
    %324 = arith.mulf %319, %323 : vector<8x4xf32>
    %325 = vector.extract_strided_slice %324 {offsets = [0, 0], sizes = [8, 1], strides = [1, 1]} : vector<8x4xf32> to vector<8x1xf32>
    %326 = vector.extract_strided_slice %11 {offsets = [0, 256], sizes = [8, 64], strides = [1, 1]} : vector<32x384xf32> to vector<8x64xf32>
    %327 = vector.broadcast %325 : vector<8x1xf32> to vector<8x64xf32>
    %328 = arith.mulf %327, %326 : vector<8x64xf32>
    %329 = vector.extract_strided_slice %324 {offsets = [0, 1], sizes = [8, 1], strides = [1, 1]} : vector<8x4xf32> to vector<8x1xf32>
    %330 = vector.extract_strided_slice %11 {offsets = [8, 256], sizes = [8, 64], strides = [1, 1]} : vector<32x384xf32> to vector<8x64xf32>
    %331 = vector.broadcast %329 : vector<8x1xf32> to vector<8x64xf32>
    %332 = arith.mulf %331, %330 : vector<8x64xf32>
    %333 = arith.addf %328, %332 : vector<8x64xf32>
    %334 = vector.extract_strided_slice %324 {offsets = [0, 2], sizes = [8, 1], strides = [1, 1]} : vector<8x4xf32> to vector<8x1xf32>
    %335 = vector.extract_strided_slice %11 {offsets = [16, 256], sizes = [8, 64], strides = [1, 1]} : vector<32x384xf32> to vector<8x64xf32>
    %336 = vector.broadcast %334 : vector<8x1xf32> to vector<8x64xf32>
    %337 = arith.mulf %336, %335 : vector<8x64xf32>
    %338 = arith.addf %333, %337 : vector<8x64xf32>
    %339 = vector.extract_strided_slice %324 {offsets = [0, 3], sizes = [8, 1], strides = [1, 1]} : vector<8x4xf32> to vector<8x1xf32>
    %340 = vector.extract_strided_slice %11 {offsets = [24, 256], sizes = [8, 64], strides = [1, 1]} : vector<32x384xf32> to vector<8x64xf32>
    %341 = vector.broadcast %339 : vector<8x1xf32> to vector<8x64xf32>
    %342 = arith.mulf %341, %340 : vector<8x64xf32>
    %343 = arith.addf %338, %342 : vector<8x64xf32>
    %344 = vector.extract_strided_slice %11 {offsets = [24, 64], sizes = [8, 64], strides = [1, 1]} : vector<32x384xf32> to vector<8x64xf32>
    %345 = vector.extract_strided_slice %11 {offsets = [0, 192], sizes = [8, 64], strides = [1, 1]} : vector<32x384xf32> to vector<8x64xf32>
    %346 = arith.mulf %344, %345 : vector<8x64xf32>
    %cst_50 = arith.constant dense<0.000000e+00> : vector<8xf32>
    %347 = vector.multi_reduction <add>, %346, %cst_50 [1] : vector<8x64xf32> to vector<8xf32>
    %348 = vector.shape_cast %347 : vector<8xf32> to vector<8x1xf32>
    %349 = vector.extract_strided_slice %11 {offsets = [8, 192], sizes = [8, 64], strides = [1, 1]} : vector<32x384xf32> to vector<8x64xf32>
    %350 = arith.mulf %344, %349 : vector<8x64xf32>
    %cst_51 = arith.constant dense<0.000000e+00> : vector<8xf32>
    %351 = vector.multi_reduction <add>, %350, %cst_51 [1] : vector<8x64xf32> to vector<8xf32>
    %352 = vector.shape_cast %351 : vector<8xf32> to vector<8x1xf32>
    %353 = vector.extract_strided_slice %11 {offsets = [16, 192], sizes = [8, 64], strides = [1, 1]} : vector<32x384xf32> to vector<8x64xf32>
    %354 = arith.mulf %344, %353 : vector<8x64xf32>
    %cst_52 = arith.constant dense<0.000000e+00> : vector<8xf32>
    %355 = vector.multi_reduction <add>, %354, %cst_52 [1] : vector<8x64xf32> to vector<8xf32>
    %356 = vector.shape_cast %355 : vector<8xf32> to vector<8x1xf32>
    %357 = vector.extract_strided_slice %11 {offsets = [24, 192], sizes = [8, 64], strides = [1, 1]} : vector<32x384xf32> to vector<8x64xf32>
    %358 = arith.mulf %344, %357 : vector<8x64xf32>
    %cst_53 = arith.constant dense<0.000000e+00> : vector<8xf32>
    %359 = vector.multi_reduction <add>, %358, %cst_53 [1] : vector<8x64xf32> to vector<8xf32>
    %360 = vector.shape_cast %359 : vector<8xf32> to vector<8x1xf32>
    %361 = tpu.concatenate %348, %352, %356, %360 in 1 : vector<8x1xf32>, vector<8x1xf32>, vector<8x1xf32>, vector<8x1xf32> -> vector<8x4xf32>
    %cst_54 = arith.constant dense<0xFF800000> : vector<8xf32>
    %362 = vector.multi_reduction <maximumf>, %361, %cst_54 [1] : vector<8x4xf32> to vector<8xf32>
    %363 = vector.shape_cast %362 : vector<8xf32> to vector<8x1xf32>
    %364 = vector.broadcast %363 : vector<8x1xf32> to vector<8x4xf32>
    %365 = arith.subf %361, %364 : vector<8x4xf32>
    %366 = math.exp %365 : vector<8x4xf32>
    %cst_55 = arith.constant dense<0.000000e+00> : vector<8xf32>
    %367 = vector.multi_reduction <add>, %366, %cst_55 [1] : vector<8x4xf32> to vector<8xf32>
    %368 = vector.shape_cast %367 : vector<8xf32> to vector<8x1xf32>
    %369 = tpu.reciprocal %368 {approx = true} : vector<8x1xf32> -> vector<8x1xf32>
    %370 = vector.broadcast %369 : vector<8x1xf32> to vector<8x4xf32>
    %371 = arith.mulf %366, %370 : vector<8x4xf32>
    %372 = vector.extract_strided_slice %371 {offsets = [0, 0], sizes = [8, 1], strides = [1, 1]} : vector<8x4xf32> to vector<8x1xf32>
    %373 = vector.extract_strided_slice %11 {offsets = [0, 320], sizes = [8, 64], strides = [1, 1]} : vector<32x384xf32> to vector<8x64xf32>
    %374 = vector.broadcast %372 : vector<8x1xf32> to vector<8x64xf32>
    %375 = arith.mulf %374, %373 : vector<8x64xf32>
    %376 = vector.extract_strided_slice %371 {offsets = [0, 1], sizes = [8, 1], strides = [1, 1]} : vector<8x4xf32> to vector<8x1xf32>
    %377 = vector.extract_strided_slice %11 {offsets = [8, 320], sizes = [8, 64], strides = [1, 1]} : vector<32x384xf32> to vector<8x64xf32>
    %378 = vector.broadcast %376 : vector<8x1xf32> to vector<8x64xf32>
    %379 = arith.mulf %378, %377 : vector<8x64xf32>
    %380 = arith.addf %375, %379 : vector<8x64xf32>
    %381 = vector.extract_strided_slice %371 {offsets = [0, 2], sizes = [8, 1], strides = [1, 1]} : vector<8x4xf32> to vector<8x1xf32>
    %382 = vector.extract_strided_slice %11 {offsets = [16, 320], sizes = [8, 64], strides = [1, 1]} : vector<32x384xf32> to vector<8x64xf32>
    %383 = vector.broadcast %381 : vector<8x1xf32> to vector<8x64xf32>
    %384 = arith.mulf %383, %382 : vector<8x64xf32>
    %385 = arith.addf %380, %384 : vector<8x64xf32>
    %386 = vector.extract_strided_slice %371 {offsets = [0, 3], sizes = [8, 1], strides = [1, 1]} : vector<8x4xf32> to vector<8x1xf32>
    %387 = vector.extract_strided_slice %11 {offsets = [24, 320], sizes = [8, 64], strides = [1, 1]} : vector<32x384xf32> to vector<8x64xf32>
    %388 = vector.broadcast %386 : vector<8x1xf32> to vector<8x64xf32>
    %389 = arith.mulf %388, %387 : vector<8x64xf32>
    %390 = arith.addf %385, %389 : vector<8x64xf32>
    %391 = tpu.concatenate %343, %390 in 1 : vector<8x64xf32>, vector<8x64xf32> -> vector<8x128xf32>
    %392 = tpu.concatenate %106, %201, %296, %391 in 0 : vector<8x128xf32>, vector<8x128xf32>, vector<8x128xf32>, vector<8x128xf32> -> vector<32x128xf32>
    %393 = arith.truncf %392 : vector<32x128xf32> to vector<32x128xbf16>
    %c0_56 = arith.constant 0 : index
    %c0_57 = arith.constant 0 : index
    %c0_58 = arith.constant 0 : index
    %394 = vector.load %arg14[%c0_56, %c0_57, %c0_58] : memref<1x128x128xbf16, #tpu.memory_space<vmem>>, vector<1x128x128xbf16>
    %395 = vector.shape_cast %394 : vector<1x128x128xbf16> to vector<128x128xbf16>
    %cst_59 = arith.constant dense<0.000000e+00> : vector<32x128xf32>
    %396 = tpu.matmul %393, %395, %cst_59 {dimension_numbers = #tpu.dot_dimension_numbers<[1], [0], [0], [1], [0, 0, 1, 1], [], []>} : vector<32x128xbf16>, vector<128x128xbf16>, vector<32x128xf32> -> vector<32x128xf32>
    %c0_60 = arith.constant 0 : index
    %c0_61 = arith.constant 0 : index
    %c0_62 = arith.constant 0 : index
    %397 = vector.load %arg15[%c0_60, %c0_61, %c0_62] : memref<1x1x128xf32, #tpu.memory_space<vmem>>, vector<1x1x128xf32>
    %398 = vector.shape_cast %397 : vector<1x1x128xf32> to vector<1x128xf32>
    %399 = vector.broadcast %398 : vector<1x128xf32> to vector<32x128xf32>
    %400 = arith.addf %396, %399 : vector<32x128xf32>
    %401 = arith.addf %3, %400 : vector<32x128xf32>
    %c0_63 = arith.constant 0 : index
    %c0_64 = arith.constant 0 : index
    %c0_65 = arith.constant 0 : index
    %402 = vector.load %arg16[%c0_63, %c0_64, %c0_65] : memref<1x1x128xf32, #tpu.memory_space<vmem>>, vector<1x1x128xf32>
    %403 = vector.shape_cast %402 : vector<1x1x128xf32> to vector<1x128xf32>
    %c0_66 = arith.constant 0 : index
    %c0_67 = arith.constant 0 : index
    %c0_68 = arith.constant 0 : index
    %404 = vector.load %arg17[%c0_66, %c0_67, %c0_68] : memref<1x1x128xf32, #tpu.memory_space<vmem>>, vector<1x1x128xf32>
    %405 = vector.shape_cast %404 : vector<1x1x128xf32> to vector<1x128xf32>
    %cst_69 = arith.constant dense<0.000000e+00> : vector<32xf32>
    %406 = vector.multi_reduction <add>, %401, %cst_69 [1] : vector<32x128xf32> to vector<32xf32>
    %407 = vector.shape_cast %406 : vector<32xf32> to vector<32x1xf32>
    %cst_70 = arith.constant 1.280000e+02 : f32
    %408 = vector.broadcast %cst_70 : f32 to vector<32x1xf32>
    %409 = arith.divf %407, %408 : vector<32x1xf32>
    %410 = vector.broadcast %409 : vector<32x1xf32> to vector<32x128xf32>
    %411 = arith.subf %401, %410 : vector<32x128xf32>
    %412 = arith.mulf %411, %411 : vector<32x128xf32>
    %cst_71 = arith.constant dense<0.000000e+00> : vector<32xf32>
    %413 = vector.multi_reduction <add>, %412, %cst_71 [1] : vector<32x128xf32> to vector<32xf32>
    %414 = vector.shape_cast %413 : vector<32xf32> to vector<32x1xf32>
    %cst_72 = arith.constant 1.280000e+02 : f32
    %415 = vector.broadcast %cst_72 : f32 to vector<32x1xf32>
    %416 = arith.divf %414, %415 : vector<32x1xf32>
    %cst_73 = arith.constant 9.99999996E-13 : f32
    %417 = vector.broadcast %cst_73 : f32 to vector<32x1xf32>
    %418 = arith.addf %416, %417 : vector<32x1xf32>
    %419 = math.rsqrt %418 : vector<32x1xf32>
    %420 = vector.broadcast %419 : vector<32x1xf32> to vector<32x128xf32>
    %421 = arith.mulf %411, %420 : vector<32x128xf32>
    %422 = vector.broadcast %403 : vector<1x128xf32> to vector<32x128xf32>
    %423 = arith.mulf %421, %422 : vector<32x128xf32>
    %424 = vector.broadcast %405 : vector<1x128xf32> to vector<32x128xf32>
    %425 = arith.addf %423, %424 : vector<32x128xf32>
    %426 = arith.truncf %425 : vector<32x128xf32> to vector<32x128xbf16>
    %c0_74 = arith.constant 0 : index
    %c0_75 = arith.constant 0 : index
    %c0_76 = arith.constant 0 : index
    %427 = vector.load %arg18[%c0_74, %c0_75, %c0_76] : memref<1x128x512xbf16, #tpu.memory_space<vmem>>, vector<1x128x512xbf16>
    %428 = vector.shape_cast %427 : vector<1x128x512xbf16> to vector<128x512xbf16>
    %cst_77 = arith.constant dense<0.000000e+00> : vector<32x512xf32>
    %429 = tpu.matmul %426, %428, %cst_77 {dimension_numbers = #tpu.dot_dimension_numbers<[1], [0], [0], [1], [0, 0, 1, 1], [], []>} : vector<32x128xbf16>, vector<128x512xbf16>, vector<32x512xf32> -> vector<32x512xf32>
    %c0_78 = arith.constant 0 : index
    %c0_79 = arith.constant 0 : index
    %c0_80 = arith.constant 0 : index
    %430 = vector.load %arg19[%c0_78, %c0_79, %c0_80] : memref<1x1x512xf32, #tpu.memory_space<vmem>>, vector<1x1x512xf32>
    %431 = vector.shape_cast %430 : vector<1x1x512xf32> to vector<1x512xf32>
    %432 = vector.broadcast %431 : vector<1x512xf32> to vector<32x512xf32>
    %433 = arith.addf %429, %432 : vector<32x512xf32>
    %cst_81 = arith.constant 5.000000e-01 : f32
    %434 = vector.broadcast %cst_81 : f32 to vector<32x512xf32>
    %435 = arith.mulf %434, %433 : vector<32x512xf32>
    %cst_82 = arith.constant 0.707106769 : f32
    %436 = vector.broadcast %cst_82 : f32 to vector<32x512xf32>
    %437 = arith.mulf %433, %436 : vector<32x512xf32>
    %438 = math.erf %437 : vector<32x512xf32>
    %cst_83 = arith.constant 1.000000e+00 : f32
    %439 = vector.broadcast %cst_83 : f32 to vector<32x512xf32>
    %440 = arith.addf %439, %438 : vector<32x512xf32>
    %441 = arith.mulf %435, %440 : vector<32x512xf32>
    %442 = arith.truncf %441 : vector<32x512xf32> to vector<32x512xbf16>
    %c0_84 = arith.constant 0 : index
    %c0_85 = arith.constant 0 : index
    %c0_86 = arith.constant 0 : index
    %443 = vector.load %arg20[%c0_84, %c0_85, %c0_86] : memref<1x512x128xbf16, #tpu.memory_space<vmem>>, vector<1x512x128xbf16>
    %444 = vector.shape_cast %443 : vector<1x512x128xbf16> to vector<512x128xbf16>
    %cst_87 = arith.constant dense<0.000000e+00> : vector<32x128xf32>
    %445 = tpu.matmul %442, %444, %cst_87 {dimension_numbers = #tpu.dot_dimension_numbers<[1], [0], [0], [1], [0, 0, 1, 1], [], []>} : vector<32x512xbf16>, vector<512x128xbf16>, vector<32x128xf32> -> vector<32x128xf32>
    %c0_88 = arith.constant 0 : index
    %c0_89 = arith.constant 0 : index
    %c0_90 = arith.constant 0 : index
    %446 = vector.load %arg21[%c0_88, %c0_89, %c0_90] : memref<1x1x128xf32, #tpu.memory_space<vmem>>, vector<1x1x128xf32>
    %447 = vector.shape_cast %446 : vector<1x1x128xf32> to vector<1x128xf32>
    %448 = vector.broadcast %447 : vector<1x128xf32> to vector<32x128xf32>
    %449 = arith.addf %445, %448 : vector<32x128xf32>
    %450 = arith.addf %425, %449 : vector<32x128xf32>
    %c0_91 = arith.constant 0 : index
    %c0_92 = arith.constant 0 : index
    %c0_93 = arith.constant 0 : index
    %451 = vector.load %arg22[%c0_91, %c0_92, %c0_93] : memref<1x1x128xf32, #tpu.memory_space<vmem>>, vector<1x1x128xf32>
    %452 = vector.shape_cast %451 : vector<1x1x128xf32> to vector<1x128xf32>
    %c0_94 = arith.constant 0 : index
    %c0_95 = arith.constant 0 : index
    %c0_96 = arith.constant 0 : index
    %453 = vector.load %arg23[%c0_94, %c0_95, %c0_96] : memref<1x1x128xf32, #tpu.memory_space<vmem>>, vector<1x1x128xf32>
    %454 = vector.shape_cast %453 : vector<1x1x128xf32> to vector<1x128xf32>
    %cst_97 = arith.constant dense<0.000000e+00> : vector<32xf32>
    %455 = vector.multi_reduction <add>, %450, %cst_97 [1] : vector<32x128xf32> to vector<32xf32>
    %456 = vector.shape_cast %455 : vector<32xf32> to vector<32x1xf32>
    %cst_98 = arith.constant 1.280000e+02 : f32
    %457 = vector.broadcast %cst_98 : f32 to vector<32x1xf32>
    %458 = arith.divf %456, %457 : vector<32x1xf32>
    %459 = vector.broadcast %458 : vector<32x1xf32> to vector<32x128xf32>
    %460 = arith.subf %450, %459 : vector<32x128xf32>
    %461 = arith.mulf %460, %460 : vector<32x128xf32>
    %cst_99 = arith.constant dense<0.000000e+00> : vector<32xf32>
    %462 = vector.multi_reduction <add>, %461, %cst_99 [1] : vector<32x128xf32> to vector<32xf32>
    %463 = vector.shape_cast %462 : vector<32xf32> to vector<32x1xf32>
    %cst_100 = arith.constant 1.280000e+02 : f32
    %464 = vector.broadcast %cst_100 : f32 to vector<32x1xf32>
    %465 = arith.divf %463, %464 : vector<32x1xf32>
    %cst_101 = arith.constant 9.99999996E-13 : f32
    %466 = vector.broadcast %cst_101 : f32 to vector<32x1xf32>
    %467 = arith.addf %465, %466 : vector<32x1xf32>
    %468 = math.rsqrt %467 : vector<32x1xf32>
    %469 = vector.broadcast %468 : vector<32x1xf32> to vector<32x128xf32>
    %470 = arith.mulf %460, %469 : vector<32x128xf32>
    %471 = vector.broadcast %452 : vector<1x128xf32> to vector<32x128xf32>
    %472 = arith.mulf %470, %471 : vector<32x128xf32>
    %473 = vector.broadcast %454 : vector<1x128xf32> to vector<32x128xf32>
    %474 = arith.addf %472, %473 : vector<32x128xf32>
    %c0_102 = arith.constant 0 : index
    %c0_103 = arith.constant 0 : index
    %475 = vector.load %arg25[%c0_102, %c0_103] : memref<32x128xf32, #tpu.memory_space<vmem>>, vector<32x128xf32>
    tpu.vector_store %arg25[%c0_102, %c0_103], %474 {strides = array<i32>} : memref<32x128xf32, #tpu.memory_space<vmem>>, vector<32x128xf32>,
    %c1_i32 = arith.constant 1 : i32
    %476 = arith.cmpi eq, %arg1, %c1_i32 : i32
    %477 = arith.extui %476 : i1 to i32
    %c0_i32_104 = arith.constant 0 : i32
    %478 = arith.cmpi ne, %477, %c0_i32_104 : i32
    scf.if %478 {
      %479 = vector.extract_strided_slice %474 {offsets = [0, 0], sizes = [8, 128], strides = [1, 1]} : vector<32x128xf32> to vector<8x128xf32>
      %c0_105 = arith.constant 0 : index
      %c0_106 = arith.constant 0 : index
      %c0_107 = arith.constant 0 : index
      %480 = vector.load %arg24[%c0_105, %c0_106, %c0_107] : memref<1x8x128xf32, #tpu.memory_space<vmem>>, vector<1x8x128xf32>
      %481 = vector.shape_cast %480 : vector<1x8x128xf32> to vector<8x128xf32>
      %482 = vector.shape_cast %479 : vector<8x128xf32> to vector<1x8x128xf32>
      tpu.vector_store %arg24[%c0_105, %c0_106, %c0_107], %482 {strides = array<i32>} : memref<1x8x128xf32, #tpu.memory_space<vmem>>, vector<1x8x128xf32>,
    } else {
    }
    return
  }
  func.func @transform_0(%arg0: i32, %arg1: i32) -> (i32, i32, i32) {
    %c0_i32 = arith.constant 0 : i32
    %c0_i32_0 = arith.constant 0 : i32
    %c0_i32_1 = arith.constant 0 : i32
    return %arg0, %c0_i32, %c0_i32_0 : i32, i32, i32
  }
  func.func @transform_1(%arg0: i32, %arg1: i32) -> (i32, i32) {
    %c0_i32 = arith.constant 0 : i32
    %c0_i32_0 = arith.constant 0 : i32
    %c0_i32_1 = arith.constant 0 : i32
    return %c0_i32, %c0_i32_0 : i32, i32
  }
  func.func @transform_2(%arg0: i32, %arg1: i32) -> (i32, i32) {
    %c0_i32 = arith.constant 0 : i32
    %c0_i32_0 = arith.constant 0 : i32
    %c0_i32_1 = arith.constant 0 : i32
    return %c0_i32, %c0_i32_0 : i32, i32
  }
  func.func @transform_3(%arg0: i32, %arg1: i32) -> (i32, i32, i32) {
    %c0_i32 = arith.constant 0 : i32
    %c0_i32_0 = arith.constant 0 : i32
    %c0_i32_1 = arith.constant 0 : i32
    return %arg0, %c0_i32, %c0_i32_0 : i32, i32, i32
  }
  func.func @transform_4(%arg0: i32, %arg1: i32) -> (i32, i32) {
    %c0_i32 = arith.constant 0 : i32
    %c0_i32_0 = arith.constant 0 : i32
    %c0_i32_1 = arith.constant 0 : i32
    return %c0_i32, %c0_i32_0 : i32, i32
  }
  func.func @transform_5(%arg0: i32, %arg1: i32) -> (i32, i32) {
    %c0_i32 = arith.constant 0 : i32
    %c0_i32_0 = arith.constant 0 : i32
    %c0_i32_1 = arith.constant 0 : i32
    return %c0_i32, %c0_i32_0 : i32, i32
  }
  func.func @transform_6(%arg0: i32, %arg1: i32) -> (i32, i32, i32) {
    %c0_i32 = arith.constant 0 : i32
    %c0_i32_0 = arith.constant 0 : i32
    %c0_i32_1 = arith.constant 0 : i32
    return %arg0, %c0_i32, %c0_i32_0 : i32, i32, i32
  }
  func.func @transform_7(%arg0: i32, %arg1: i32) -> (i32, i32) {
    %c0_i32 = arith.constant 0 : i32
    %c0_i32_0 = arith.constant 0 : i32
    %c0_i32_1 = arith.constant 0 : i32
    return %c0_i32, %c0_i32_0 : i32, i32
  }
  func.func @transform_8(%arg0: i32, %arg1: i32) -> (i32, i32) {
    %c0_i32 = arith.constant 0 : i32
    %c0_i32_0 = arith.constant 0 : i32
    %c0_i32_1 = arith.constant 0 : i32
    return %c0_i32, %c0_i32_0 : i32, i32
  }
  func.func @transform_9(%arg0: i32, %arg1: i32) -> (i32, i32) {
    %c0_i32 = arith.constant 0 : i32
    %c0_i32_0 = arith.constant 0 : i32
    %c0_i32_1 = arith.constant 0 : i32
    return %c0_i32, %c0_i32_0 : i32, i32
  }
  func.func @transform_10(%arg0: i32, %arg1: i32) -> (i32, i32, i32) {
    %c0_i32 = arith.constant 0 : i32
    %c0_i32_0 = arith.constant 0 : i32
    %c0_i32_1 = arith.constant 0 : i32
    return %arg1, %c0_i32, %c0_i32_0 : i32, i32, i32
  }
  func.func @transform_11(%arg0: i32, %arg1: i32) -> (i32, i32, i32) {
    %c0_i32 = arith.constant 0 : i32
    %c0_i32_0 = arith.constant 0 : i32
    %c0_i32_1 = arith.constant 0 : i32
    return %arg1, %c0_i32, %c0_i32_0 : i32, i32, i32
  }
  func.func @transform_12(%arg0: i32, %arg1: i32) -> (i32, i32, i32) {
    %c0_i32 = arith.constant 0 : i32
    %c0_i32_0 = arith.constant 0 : i32
    %c0_i32_1 = arith.constant 0 : i32
    return %arg1, %c0_i32, %c0_i32_0 : i32, i32, i32
  }
  func.func @transform_13(%arg0: i32, %arg1: i32) -> (i32, i32, i32) {
    %c0_i32 = arith.constant 0 : i32
    %c0_i32_0 = arith.constant 0 : i32
    %c0_i32_1 = arith.constant 0 : i32
    return %arg1, %c0_i32, %c0_i32_0 : i32, i32, i32
  }
  func.func @transform_14(%arg0: i32, %arg1: i32) -> (i32, i32, i32) {
    %c0_i32 = arith.constant 0 : i32
    %c0_i32_0 = arith.constant 0 : i32
    %c0_i32_1 = arith.constant 0 : i32
    return %arg1, %c0_i32, %c0_i32_0 : i32, i32, i32
  }
  func.func @transform_15(%arg0: i32, %arg1: i32) -> (i32, i32, i32) {
    %c0_i32 = arith.constant 0 : i32
    %c0_i32_0 = arith.constant 0 : i32
    %c0_i32_1 = arith.constant 0 : i32
    return %arg1, %c0_i32, %c0_i32_0 : i32, i32, i32
  }
  func.func @transform_16(%arg0: i32, %arg1: i32) -> (i32, i32, i32) {
    %c0_i32 = arith.constant 0 : i32
    %c0_i32_0 = arith.constant 0 : i32
    %c0_i32_1 = arith.constant 0 : i32
    return %arg1, %c0_i32, %c0_i32_0 : i32, i32, i32
  }
  func.func @transform_17(%arg0: i32, %arg1: i32) -> (i32, i32, i32) {
    %c0_i32 = arith.constant 0 : i32
    %c0_i32_0 = arith.constant 0 : i32
    %c0_i32_1 = arith.constant 0 : i32
    return %arg1, %c0_i32, %c0_i32_0 : i32, i32, i32
  }
  func.func @transform_18(%arg0: i32, %arg1: i32) -> (i32, i32, i32) {
    %c0_i32 = arith.constant 0 : i32
    %c0_i32_0 = arith.constant 0 : i32
    %c0_i32_1 = arith.constant 0 : i32
    return %arg1, %c0_i32, %c0_i32_0 : i32, i32, i32
  }
  func.func @transform_19(%arg0: i32, %arg1: i32) -> (i32, i32, i32) {
    %c0_i32 = arith.constant 0 : i32
    %c0_i32_0 = arith.constant 0 : i32
    %c0_i32_1 = arith.constant 0 : i32
    return %arg1, %c0_i32, %c0_i32_0 : i32, i32, i32
  }
  func.func @transform_20(%arg0: i32, %arg1: i32) -> (i32, i32, i32) {
    %c0_i32 = arith.constant 0 : i32
    %c0_i32_0 = arith.constant 0 : i32
    %c0_i32_1 = arith.constant 0 : i32
    return %arg1, %c0_i32, %c0_i32_0 : i32, i32, i32
  }
  func.func @transform_21(%arg0: i32, %arg1: i32) -> (i32, i32, i32) {
    %c0_i32 = arith.constant 0 : i32
    %c0_i32_0 = arith.constant 0 : i32
    %c0_i32_1 = arith.constant 0 : i32
    return %arg1, %c0_i32, %c0_i32_0 : i32, i32, i32
  }
  func.func @transform_22(%arg0: i32, %arg1: i32) -> (i32, i32, i32) {
    %c0_i32 = arith.constant 0 : i32
    %c0_i32_0 = arith.constant 0 : i32
    %c0_i32_1 = arith.constant 0 : i32
    return %arg0, %c0_i32, %c0_i32_0 : i32, i32, i32
  }
}

</mosaic_0001>

<bundles_post_ra>
// kernel: tpu_custom_call.1
= control target key start
LH: loop header
LB: loop body
LE: loop exit
PB: predicated region body
PF: predicated region fallthrough
CT: control target
= control target key end

     0   :  { %s5889_s0 = inlined_call_operand.hbm [shape: f32[1,8,64], index: 0, kind: input, shape index: {}]   ;;  %s5890_s1 = inlined_call_operand.hbm [shape: bf16[64,128], index: 1, kind: input, shape index: {}]   ;;  %s5891_s2 = inlined_call_operand.hbm [shape: f32[1,128], index: 2, kind: input, shape index: {}]   ;;  %s5892_s3 = inlined_call_operand.hbm [shape: f32[1,8,128], index: 3, kind: input, shape index: {}]   ;;  %s5893_s4 = inlined_call_operand.hbm [shape: bf16[128,128], index: 4, kind: input, shape index: {}]   ;;  %s5894_s5 = inlined_call_operand.hbm [shape: f32[1,128], index: 5, kind: input, shape index: {}]   ;;  %s5895_s6 = inlined_call_operand.vmem [shape: f32[1,8,128], index: 6, kind: input, shape index: {}]   ;;  %s5896_s7 = inlined_call_operand.hbm [shape: bf16[128,128], index: 7, kind: input, shape index: {}]   ;;  %s5897_s8 = inlined_call_operand.hbm [shape: f32[1,128], index: 8, kind: input, shape index: {}]   ;;  %s5898_s9 = inlined_call_operand.hbm [shape: f32[1,128], index: 9, kind: input, shape index: {}]   ;;  %s5899_s10 = inlined_call_operand.hbm [shape: bf16[2,128,384], index: 10, kind: input, shape index: {}]   ;;  %s5900_s11 = inlined_call_operand.hbm [shape: f32[2,1,384], index: 11, kind: input, shape index: {}]   ;;  %s5901_s12 = inlined_call_operand.hbm [shape: bf16[2,128,128], index: 12, kind: input, shape index: {}]   ;;  %s5902_s13 = inlined_call_operand.vmem [shape: f32[2,1,128], index: 13, kind: input, shape index: {}]   ;;  %s5903_s14 = inlined_call_operand.vmem [shape: f32[2,1,128], index: 14, kind: input, shape index: {}]   ;;  %s5904_s15 = inlined_call_operand.vmem [shape: f32[2,1,128], index: 15, kind: input, shape index: {}]   ;;  %s5905_s16 = inlined_call_operand.hbm [shape: bf16[2,128,512], index: 16, kind: input, shape index: {}]   ;;  %s5906_s17 = inlined_call_operand.vmem [shape: f32[2,1,512], index: 17, kind: input, shape index: {}]   ;;  %s5907_s18 = inlined_call_operand.hbm [shape: bf16[2,512,128], index: 18, kind: input, shape index: {}]   ;;  %s5908_s19 = inlined_call_operand.vmem [shape: f32[2,1,128], index: 19, kind: input, shape index: {}]   ;;  %s5909_s20 = inlined_call_operand.vmem [shape: f32[2,1,128], index: 20, kind: input, shape index: {}]   ;;  %s5910_s21 = inlined_call_operand.vmem [shape: f32[2,1,128], index: 21, kind: input, shape index: {}]   ;;  %s5911_s22 = inlined_call_operand.hbm [shape: f32[1,8,128], index: 22, kind: output, shape index: {}]  }
   0x1   :  { %5931 = sst [smem:[#allocation43_spill]] %s5889_s0 }
   0x2   :  { %5932 = sst [smem:[#allocation44_spill]] %s5890_s1 }
   0x3   :  { %5933 = sst [smem:[#allocation45_spill]] %s5891_s2 }
   0x4   :  { %5934 = sst [smem:[#allocation46_spill]] %s5892_s3 }
   0x5   :  { %5935 = sst [smem:[#allocation47_spill]] %s5893_s4 }
   0x6   :  { %5936 = sst [smem:[#allocation48_spill]] %s5894_s5 }
   0x7   :  { %5937 = sst [smem:[#allocation49_spill]] %s5895_s6 }
   0x8   :  { %5938 = sst [smem:[#allocation50_spill]] %s5896_s7 }
   0x9   :  { %5939 = sst [smem:[#allocation51_spill]] %s5897_s8 }
   0xa   :  { %5940 = sst [smem:[#allocation52_spill]] %s5898_s9 }
   0xb   :  { %5941 = sst [smem:[#allocation53_spill]] %s5899_s10 }
   0xc   :  { %5942 = sst [smem:[#allocation54_spill]] %s5900_s11 }
   0xd   :  { %5943 = sst [smem:[#allocation55_spill]] %s5901_s12 }
   0xe   :  { %5944 = sst [smem:[#allocation56_spill]] %s5902_s13 }
   0xf   :  { %5945 = sst [smem:[#allocation57_spill]] %s5903_s14 }
  0x10   :  { %5946 = sst [smem:[#allocation58_spill]] %s5904_s15 }
  0x11   :  { %5947 = sst [smem:[#allocation59_spill]] %s5905_s16 }
  0x12   :  { %5948 = sst [smem:[#allocation60_spill]] %s5906_s17 }
  0x13   :  { %5949 = sst [smem:[#allocation61_spill]] %s5908_s19 }
  0x14   :  { %5950 = sst [smem:[#allocation62_spill]] %s5909_s20 }
  0x15   :  { %5951 = sst [smem:[#allocation63_spill]] %s5910_s21 }
  0x16   :  { %5952 = sst [smem:[#allocation64_spill]] %s5911_s22 }
  0x17   :  { %27 = vsyncpa [#allocation4], 0 }
  0x18   :  { %28 = vsyncpa [#allocation7], 0 }
  0x19   :  { %29 = vsyncpa [#allocation10], 0 }
  0x1a   :  { %30 = vsyncpa [#allocation13], 0 }
  0x1b   :  { %31 = vsyncpa [#allocation16], 0 }
  0x1c   :  { %32 = vsyncpa [#allocation19], 0 }
  0x1d   :  { %34 = vsyncpa [#allocation19 + $0x1], 0 }
  0x1e   :  { %35 = vsyncpa [#allocation22], 0 }
  0x1f   :  { %37 = vsyncpa [#allocation22 + $0x1], 0 }
  0x20   :  { %38 = vsyncpa [#allocation25], 0 }
  0x21   :  { %40 = vsyncpa [#allocation25 + $0x1], 0 }
  0x22   :  { %41 = vsyncpa [#allocation5], 0  ;;  %s5026_s3 = smov 0   ;;  %s5028_s28 = smov 0  }
  0x23   :  { %s5030_s29 = smov 0   ;;  %s5032_s30 = smov 0  }
  0x24   :  { %s5034_s4 = smov 0   ;;  %s5036_s0 = smov 0  }
  0x25 LB: > { %5953 = sst [smem:[#allocation36_spill]] %s4865_s28  ;;  %s4883_s23 = smov [#allocation6]   ;;  %s4881_s0 = sphi %s5036_s0, %s47_s0   ;;  %s4877_s4 = sphi %s5034_s4, %s6023_s4   ;;  %s4873_s30 = sphi %s5032_s30, %s6022_s30   ;;  %s4869_s29 = sphi %s5030_s29, %s6020_s29   ;;  %s4865_s28 = sphi %s5028_s28, %s6019_s28   ;;  %s4861_s3 = sphi %s5026_s3, %s6018_s3  }
  0x26   : > { %5954 = sst [smem:[#allocation37_spill]] %s4869_s29  ;;  %s652_s1 = sshll.u32 %s4883_s23, 4  ;;  %s653_s1 = int_to_ptr.vmem [resolvable:$true] %s652_s1 }
  0x27   : > { %5955 = sst [smem:[#allocation38_spill]] %s4873_s30  ;;  %s5057_s5 = sadd.s32 4294967295, %s4881_s0  }
  0x28   : > { %5956 = sst [smem:[#allocation39_spill]] %s5057_s5  ;;  %p3584_p0 = scmp.ge.s32.totalorder %s4881_s0, 1 }
  0x29   : > { %p5926_p1 = scmp.eq.s32.totalorder %s5057_s5, 0  ;;  %p627_p2 = scmp.lt.s32.totalorder %s4881_s0, 3 }
  0x2a   : > { %s4884_s6 = smov [#allocation9]   ;;  %s4885_s2 = smov [#allocation12]  }
  0x2b   : > { %p5062_p3 = pnand %p3584_p0, %p627_p2  ;;  %s679_s25 = sshll.u32 %s4884_s6, 4  ;;  %s680_s25 = int_to_ptr.vmem [resolvable:$true] %s679_s25 }
  0x2c   : > { %s703_s27 = sshll.u32 %s4885_s2, 4  ;;  %s4412_s22 = scalar_lea.vmem %s653_s1, 512  ;;  %s5074_s27 = int_to_ptr.vmem [resolvable:$true] %s703_s27 }
  0x2d   : > { %s5957_s24 = scalar_select %p5062_p3, 1, 0 }
  0x2e   : > { %p4020_p4 = pneg %p5062_p3  ;;  %p4413_p7 = scmp.ne.s32.totalorder %s653_s1, %s4412_s22 }
  0x2f   : > { %p4420_p10 = scmp.lt.s32.totalorder %s653_s1, %s653_s1  ;;  %p4421_p11 = scmp.lt.s32.totalorder %s4412_s22, %s4412_s22 }
  0x30   : > { %p5070_p5 = pnand %p4020_p4, %p5926_p1 }
  0x31   : > { %p4422_p12 = por %p4421_p11, %p4420_p10 }
  0x32   : > { %p5078_p6 = pneg %p5070_p5 }
  0x34   : > { %p4415_p8 = pnand %p4413_p7, %p5078_p6 }
  0x36   : > { %p4416_p9 = pneg %p4415_p8 }
  0x38   : > { %p4423_p13 = pnand %p4422_p12, %p4416_p9 }
  0x3a   : > { %4426 = shalt.err (!%p4423_p13)
}
  0x3b   : > { %s5912_s6 = smov 64   ;;  %s5914_s2 = smov 4  }
  0x3c   : > { %s5960_s19 = sld [smem:[#allocation44_spill]]  ;;  %s4438_s17 = scalar_lea.vmem %s680_s25, 128 }
  0x3d   : > { %p4439_p0 = scmp.ne.s32.totalorder %s680_s25, %s4438_s17  ;;  %p4446_p7 = scmp.lt.s32.totalorder %s680_s25, %s680_s25 }
  0x3e   : > { %p4447_p8 = scmp.lt.s32.totalorder %s4438_s17, %s4438_s17 }
  0x3f   : > { %p4441_p2 = pnand %p4439_p0, %p5078_p6 }
  0x40   : > { %p4448_p9 = por %p4447_p8, %p4446_p7 }
  0x41   : > { %p4442_p4 = pneg %p4441_p2 }
  0x42   : > { %4026 = dma.hbm_to_vmem [thread:$0]  (!%p5070_p5), %s5960_s19, 512, %s653_s1, [#allocation7], %s5912_s6, %s5912_s6, %s5914_s2  }
  0x43   : > { %p4449_p10 = pnand %p4448_p9, %p4442_p4 }
  0x45   : > { %4452 = shalt.err (!%p4449_p10)
}
  0x46   : > { %s5961_s14 = sld [smem:[#allocation46_spill]]  ;;  %s4464_s19 = scalar_lea.vmem %s5074_s27, 16 }
  0x47   : > { %p4465_p11 = scmp.ne.s32.totalorder %s5074_s27, %s4464_s19  ;;  %s4471_s17 = scalar_lea.vmem %s5074_s27, 32 }
  0x48   : > { %p4472_p0 = scmp.lt.s32.totalorder %s5074_s27, %s5074_s27  ;;  %p4473_p2 = scmp.lt.s32.totalorder %s4471_s17, %s4464_s19 }
  0x49   : > { %p4467_p12 = pnand %p4465_p11, %p5078_p6 }
  0x4a   : > { %p4474_p4 = por %p4473_p2, %p4472_p0 }
  0x4b   : > { %p4468_p13 = pneg %p4467_p12 }
  0x4c   : > { %4032 = dma.hbm_to_vmem [thread:$0]  (!%p5070_p5), %s5961_s14, 128, %s680_s25, [#allocation10]  }
  0x4d   : > { %p4475_p7 = pnand %p4474_p4, %p4468_p13 }
  0x4f   : > { %4478 = shalt.err (!%p4475_p7)
}
  0x50   : > { %s5962_s21 = sld [smem:[#allocation48_spill]]  ;;  %s4888_s14 = smov [#allocation15]  }
  0x51   : > { %s734_s1 = sshll.u32 %s4888_s14, 4  ;;  %s735_s1 = int_to_ptr.vmem [resolvable:$true] %s734_s1 }
  0x52   : > { %s4490_s25 = scalar_lea.vmem %s735_s1, 16  ;;  %s4497_s22 = scalar_lea.vmem %s735_s1, 32 }
  0x53   : > { %p4491_p8 = scmp.ne.s32.totalorder %s735_s1, %s4490_s25  ;;  %p4498_p11 = scmp.lt.s32.totalorder %s735_s1, %s735_s1 }
  0x54   : > { %p4499_p12 = scmp.lt.s32.totalorder %s4497_s22, %s4490_s25 }
  0x55   : > { %p4493_p9 = pnand %p4491_p8, %p5078_p6 }
  0x56   : > { %4038 = dma.hbm_to_vmem [thread:$0]  (!%p5070_p5), %s5962_s21, 16, %s5074_s27, [#allocation13]  }
  0x57   : > { %p4494_p10 = pneg %p4493_p9  ;;  %p4500_p13 = por %p4499_p12, %p4498_p11 }
  0x59   : > { %p4501_p0 = pnand %p4500_p13, %p4494_p10 }
  0x5b   : > { %4504 = shalt.err (!%p4501_p0)
}
  0x5c   : > { %s5963_s8 = sld [smem:[#allocation51_spill]]  ;;  %s56_s27 = sadd.s32 1, %s4877_s4 }
  0x5d   : > { %s291_s15 = sadd.s32 1, %s4869_s29  ;;  %p57_p2 = scmp.ge.s32.totalorder %s56_s27, 2 }
  0x5e   : > { %p298_p4 = scmp.ne.s32.totalorder %s4869_s29, %s4865_s28  ;;  %p299_p7 = scmp.eq.s32.totalorder %s4881_s0, 0 }
  0x5f   : > { %p304_p8 = scmp.ne.s32.totalorder %s4865_s28, %s4861_s3  ;;  %s6025_s27 = smov (%p57_p2, %s56_s27), 0 }
  0x60   : > { %5964 = sst [smem:[#allocation40_spill]] %s6025_s27  ;;  %p300_p9 = por %p299_p7, %p298_p4 }
  0x61   : > { %p5130_p10 = por %p5926_p1, %p304_p8  ;;  %s288_s21 = ssub.s32 %s4877_s4, %s6025_s27 }
  0x62   : > { %4044 = dma.hbm_to_vmem [thread:$0]  (!%p5070_p5), %s5963_s8, 16, %s735_s1, [#allocation16]  }
  0x63   : > { %s5965_s20 = scalar_select %p5130_p10, 1, 0 }
  0x64   : > { %p4073_p11 = scmp.lt.s32.totalorder %s4881_s0, 2  ;;  %p289_p12 = scmp.eq.s32.totalorder %s288_s21, 0 }
  0x65   : > { %5966 = sst [smem:[#allocation41_spill]] %s5965_s20  ;;  %s5918_s14 = sand.u32 1, %s4881_s0  }
  0x66   : > { %s5139_s1 = sand.u32 1, %s4869_s29   ;;  %p5145_p13 = pnand %p4073_p11, %p300_p9 }
  0x67   : > { %s5142_s25 = scalar_select %p289_p12, %s4869_s29, %s291_s15  }
  0x68   : > { %s3964_s3 = smul.u32 192, %s5139_s1  ;;  %s5969_s10 = sld [smem:[#allocation53_spill]] }
  0x69   : > { %5967 = sst [smem:[#allocation42_spill]] %s5142_s25  ;;  %s3965_s19 = smul.u32 3072, %s4877_s4 }
  0x6a   : > { %s5968_s22 = scalar_select %p5145_p13, 1, 0 }
  0x6b   : > { %s760_s8 = scalar_lea.vmem [#allocation18], %s3964_s3  ;;  %s5155_s21 = scalar_lea.sflag [#allocation19], %s5918_s14 }
  0x6c   : > { %s767_s27 = sshll.u32 %s760_s8, 4  ;;  %p5159_p0 = pneg %p5145_p13  ;;  %s768_s27 = int_to_ptr.vmem [resolvable:$true] %s767_s27 }
  0x6d   : > { %s4518_s25 = scalar_lea.vmem %s768_s27, 3072  ;;  %s4889_s29 = smov [#allocation18]  }
  0x6e   : > { %s766_s2 = scalar_lea.hbm %s5969_s10, %s3965_s19  ;;  %p4519_p2 = scmp.ne.s32.totalorder %s768_s27, %s4518_s25 }
  0x6f   : > { %s4523_s6 = sshll.u32 %s4889_s29, 4  ;;  %s4524_s6 = int_to_ptr.vmem [resolvable:$false] %s4523_s6 }
  0x70   : > { %p4521_p4 = pnand %p4519_p2, %p5159_p0  ;;  %s4525_s3 = scalar_lea.vmem %s4524_s6, 6144 }
  0x71   : > { %p4526_p8 = scmp.lt.s32.totalorder %s768_s27, %s4524_s6  ;;  %p4527_p9 = scmp.lt.s32.totalorder %s4525_s3, %s4518_s25 }
  0x72   : > { %p4522_p7 = pneg %p4521_p4 }
  0x73   : > { %p4528_p11 = por %p4527_p9, %p4526_p8 }
  0x75   : > { %p4529_p12 = pnand %p4528_p11, %p4522_p7 }
  0x77   : > { %4532 = shalt.err (!%p4529_p12)
}
  0x78   : > { %s4890_s8 = smov 192   ;;  %s4891_s19 = smov 12  }
  0x79   : > { %4051 = dma.hbm_to_vmem [thread:$0]  (!%p5145_p13), %s766_s2, 3072, %s768_s27, %s5155_s21, %s4890_s8, %s4890_s8, %s4891_s19  }
  0x7a   : > { %s3598_s17 = sshll.u32 %s5139_s1, 6  ;;  %s3754_s14 = sshll.u32 %s4877_s4, 10 }
  0x7b   : > { %s5971_s12 = sld [smem:[#allocation55_spill]]  ;;  %s800_s25 = scalar_lea.vmem [#allocation21], %s3598_s17 }
  0x7c   : > { %s807_s3 = sshll.u32 %s800_s25, 4  ;;  %s5972_s13 = sand.u32 1, %s4881_s0   ;;  %s808_s3 = int_to_ptr.vmem [resolvable:$true] %s807_s3 }
  0x7d   : > { %s5175_s30 = scalar_lea.sflag [#allocation22], %s5972_s13  ;;  %s4546_s20 = scalar_lea.vmem %s808_s3, 1024 }
  0x7e   : > { %p4547_p2 = scmp.ne.s32.totalorder %s808_s3, %s4546_s20  ;;  %s4892_s28 = smov [#allocation21]  }
  0x7f   : > { %s4551_s5 = sshll.u32 %s4892_s28, 4  ;;  %s4552_s5 = int_to_ptr.vmem [resolvable:$false] %s4551_s5 }
  0x80   : > { %p4549_p4 = pnand %p4547_p2, %p5159_p0  ;;  %s4553_s2 = scalar_lea.vmem %s4552_s5, 2048 }
  0x81   : > { %s806_s6 = scalar_lea.hbm %s5971_s12, %s3754_s14  ;;  %p4554_p8 = scmp.lt.s32.totalorder %s808_s3, %s4552_s5 }
  0x82   : > { %p4550_p7 = pneg %p4549_p4  ;;  %p4555_p9 = scmp.lt.s32.totalorder %s4553_s2, %s4546_s20 }
  0x84   : > { %p4556_p11 = por %p4555_p9, %p4554_p8 }
  0x86   : > { %p4557_p12 = pnand %p4556_p11, %p4550_p7 }
  0x88   : > { %4560 = shalt.err (!%p4557_p12)
}
  0x89   : > { %s5973_s10 = smov 4   ;;  %s5974_s27 = smov 64  }
  0x8a   : > { %4057 = dma.hbm_to_vmem [thread:$0]  (!%p5145_p13), %s806_s6, 1024, %s808_s3, %s5175_s30, %s5974_s27, %s5974_s27, %s5973_s10  }
  0x8b   : > { %s4893_s13 = smov [#allocation3]   ;;  %s4894_s8 = smov [#allocation8]  }
  0x8c   : > { %s642_s14 = sshll.u32 %s4893_s13, 4  ;;  %s666_s28 = sshll.u32 %s4894_s8, 4  ;;  %s643_s14 = int_to_ptr.vmem [resolvable:$true] %s642_s14  ;;  %s667_s28 = int_to_ptr.vmem [resolvable:$true] %s666_s28 }
  0x8d   : > { %s4572_s19 = scalar_lea.vmem %s643_s14, 128  ;;  %p4580_p7 = scmp.lt.s32.totalorder %s643_s14, %s643_s14 }
  0x8e   : > { %p4573_p2 = scmp.ne.s32.totalorder %s643_s14, %s4572_s19  ;;  %p4581_p9 = scmp.lt.s32.totalorder %s4572_s19, %s4572_s19 }
  0x90   : > { %p4575_p4 = pnand %p4573_p2, %p5078_p6  ;;  %p4582_p11 = por %p4581_p9, %p4580_p7 }
  0x92   : > { %p4576_p8 = pneg %p4575_p4 }
  0x94   : > { %p4583_p12 = pnand %p4582_p11, %p4576_p8 }
  0x96   : > { %4586 = shalt.err (!%p4583_p12)
}
  0x97   : > { %s5975_s17 = sld [smem:[#allocation43_spill]]  ;;  %s4598_s29 = scalar_lea.vmem %s667_s28, 16 }
  0x98   : > { %p4599_p1 = scmp.ne.s32.totalorder %s667_s28, %s4598_s29  ;;  %s4605_s6 = scalar_lea.vmem %s667_s28, 32 }
  0x99   : > { %p4606_p2 = scmp.lt.s32.totalorder %s667_s28, %s667_s28  ;;  %p4607_p4 = scmp.lt.s32.totalorder %s4605_s6, %s4598_s29 }
  0x9a   : > { %p4601_p10 = pnand %p4599_p1, %p5078_p6 }
  0x9b   : > { %p4608_p13 = por %p4607_p4, %p4606_p2 }
  0x9c   : > { %p4602_p3 = pneg %p4601_p10 }
  0x9d   : > { %4023 = dma.hbm_to_vmem [thread:$0]  (!%p5070_p5), %s5975_s17, 128, %s643_s14, [#allocation4]  }
  0x9e   : > { %p4609_p7 = pnand %p4608_p13, %p4602_p3 }
  0xa0   : > { %4612 = shalt.err (!%p4609_p7)
}
  0xa1   : > { %s5976_s2 = sld [smem:[#allocation45_spill]]  ;;  %s4895_s13 = smov [#allocation11]  }
  0xa2   : > { %s689_s14 = sshll.u32 %s4895_s13, 4  ;;  %s4896_s8 = smov [#allocation14]   ;;  %s690_s14 = int_to_ptr.vmem [resolvable:$true] %s689_s14 }
  0xa3   : > { %s720_s19 = sshll.u32 %s4896_s8, 4  ;;  %s4624_s5 = scalar_lea.vmem %s690_s14, 1024  ;;  %s721_s19 = int_to_ptr.vmem [resolvable:$true] %s720_s19 }
  0xa4   : > { %p4625_p1 = scmp.ne.s32.totalorder %s690_s14, %s4624_s5  ;;  %p4632_p9 = scmp.lt.s32.totalorder %s690_s14, %s690_s14 }
  0xa5   : > { %p4633_p3 = scmp.lt.s32.totalorder %s4624_s5, %s4624_s5 }
  0xa6   : > { %p4627_p10 = pnand %p4625_p1, %p5078_p6 }
  0xa7   : > { %4029 = dma.hbm_to_vmem [thread:$0]  (!%p5070_p5), %s5976_s2, 16, %s667_s28, [#allocation7]  }
  0xa8   : > { %p4628_p8 = pneg %p4627_p10  ;;  %p4634_p13 = por %p4633_p3, %p4632_p9 }
  0xaa   : > { %p4635_p11 = pnand %p4634_p13, %p4628_p8 }
  0xac   : > { %4638 = shalt.err (!%p4635_p11)
}
  0xad   : > { %s5977_s17 = sld [smem:[#allocation47_spill]]  ;;  %s4650_s29 = scalar_lea.vmem %s721_s19, 1024 }
  0xae   : > { %p4651_p12 = scmp.ne.s32.totalorder %s721_s19, %s4650_s29  ;;  %p4658_p7 = scmp.lt.s32.totalorder %s721_s19, %s721_s19 }
  0xaf   : > { %p4659_p1 = scmp.lt.s32.totalorder %s4650_s29, %s4650_s29 }
  0xb0   : > { %p4653_p2 = pnand %p4651_p12, %p5078_p6 }
  0xb1   : > { %p4660_p10 = por %p4659_p1, %p4658_p7 }
  0xb2   : > { %p4654_p4 = pneg %p4653_p2 }
  0xb3   : > { %4035 = dma.hbm_to_vmem [thread:$0]  (!%p5070_p5), %s5977_s17, 1024, %s690_s14, [#allocation10], %s5974_s27, %s5974_s27, %s5973_s10  }
  0xb4   : > { %p4661_p8 = pnand %p4660_p10, %p4654_p4 }
  0xb6   : > { %4664 = shalt.err (!%p4661_p8)
}
  0xb7   : > { %s5978_s7 = sld [smem:[#allocation50_spill]]  ;;  %s4897_s3 = smov [#allocation17]  }
  0xb8   : > { %s745_s2 = sshll.u32 %s4897_s3, 4  ;;  %s3966_s13 = smul.u32 3, %s5139_s1  ;;  %s746_s2 = int_to_ptr.vmem [resolvable:$true] %s745_s2 }
  0xb9   : > { %s3967_s14 = smul.u32 48, %s4877_s4  ;;  %s4676_s8 = scalar_lea.vmem %s746_s2, 16 }
  0xba   : > { %p4677_p9 = scmp.ne.s32.totalorder %s746_s2, %s4676_s8  ;;  %s4683_s5 = scalar_lea.vmem %s746_s2, 32 }
  0xbb   : > { %p4684_p11 = scmp.lt.s32.totalorder %s746_s2, %s746_s2  ;;  %p4685_p12 = scmp.lt.s32.totalorder %s4683_s5, %s4676_s8 }
  0xbc   : > { %p4679_p3 = pnand %p4677_p9, %p5078_p6 }
  0xbd   : > { %4041 = dma.hbm_to_vmem [thread:$0]  (!%p5070_p5), %s5978_s7, 1024, %s721_s19, [#allocation13], %s5974_s27, %s5974_s27, %s5973_s10  }
  0xbe   : > { %p4680_p13 = pneg %p4679_p3  ;;  %p4686_p2 = por %p4685_p12, %p4684_p11 }
  0xc0   : > { %p4687_p4 = pnand %p4686_p2, %p4680_p13 }
  0xc2   : > { %4690 = shalt.err (!%p4687_p4)
}
  0xc3   : > { %s5979_s9 = sld [smem:[#allocation52_spill]]  ;;  %s781_s29 = scalar_lea.vmem [#allocation20], %s3966_s13 }
  0xc4   : > { %s5980_s11 = sld [smem:[#allocation54_spill]]  ;;  %s789_s6 = sshll.u32 %s781_s29, 4  ;;  %s790_s6 = int_to_ptr.vmem [resolvable:$true] %s789_s6 }
  0xc5   : > { %s3601_s25 = sshll.u32 %s5139_s1, 8  ;;  %s4704_s3 = scalar_lea.vmem %s790_s6, 48 }
  0xc6   : > { %p4705_p6 = scmp.ne.s32.totalorder %s790_s6, %s4704_s3  ;;  %s4898_s26 = smov [#allocation20]  }
  0xc7   : > { %s4709_s8 = sshll.u32 %s4898_s26, 4  ;;  %s4710_s8 = int_to_ptr.vmem [resolvable:$false] %s4709_s8 }
  0xc8   : > { %p4707_p7 = pnand %p4705_p6, %p5159_p0  ;;  %s4711_s5 = scalar_lea.vmem %s4710_s8, 96 }
  0xc9   : > { %4047 = dma.hbm_to_vmem [thread:$0]  (!%p5070_p5), %s5979_s9, 16, %s746_s2, [#allocation16]  }
  0xca   : > { %s787_s23 = scalar_lea.hbm %s5980_s11, %s3967_s14  ;;  %p4708_p1 = pneg %p4707_p7 }
  0xcb   : > { %p4712_p10 = scmp.lt.s32.totalorder %s790_s6, %s4710_s8  ;;  %p4713_p8 = scmp.lt.s32.totalorder %s4711_s5, %s4704_s3 }
  0xcd   : > { %p4714_p5 = por %p4713_p8, %p4712_p10 }
  0xcf   : > { %p4715_p9 = pnand %p4714_p5, %p4708_p1 }
  0xd1   : > { %4718 = shalt.err (!%p4715_p9)
}
  0xd2   : > { %p5981_p3 = scmp.ne.s32.totalorder %s5968_s22, 0  ;;  %s3755_s2 = sshll.u32 %s4877_s4, 12 }
  0xd3   : > { %s839_s13 = scalar_lea.vmem [#allocation23], %s3601_s25  ;;  %s5982_s16 = sld [smem:[#allocation59_spill]] }
  0xd4   : > { %4054 = dma.hbm_to_vmem [thread:$0]  (!%p5981_p3), %s787_s23, 48, %s790_s6, %s5155_s21  }
  0xd5   : > { %s846_s14 = sshll.u32 %s839_s13, 4  ;;  %s4899_s29 = smov [#allocation23]   ;;  %s847_s14 = int_to_ptr.vmem [resolvable:$true] %s846_s14 }
  0xd6   : > { %s4732_s17 = scalar_lea.vmem %s847_s14, 4096  ;;  %s4737_s3 = sshll.u32 %s4899_s29, 4  ;;  %s4738_s3 = int_to_ptr.vmem [resolvable:$false] %s4737_s3 }
  0xd7   : > { %p4733_p13 = scmp.ne.s32.totalorder %s847_s14, %s4732_s17  ;;  %s4739_s26 = scalar_lea.vmem %s4738_s3, 8192 }
  0xd8   : > { %p4740_p2 = scmp.lt.s32.totalorder %s847_s14, %s4738_s3  ;;  %p4741_p4 = scmp.lt.s32.totalorder %s4739_s26, %s4732_s17 }
  0xd9   : > { %s845_s20 = scalar_lea.hbm %s5982_s16, %s3755_s2  ;;  %p4735_p11 = pnand %p4733_p13, %p5159_p0 }
  0xda   : > { %p4742_p6 = por %p4741_p4, %p4740_p2 }
  0xdb   : > { %p4736_p12 = pneg %p4735_p11 }
  0xdd   : > { %p4743_p7 = pnand %p4742_p6, %p4736_p12 }
  0xdf   : > { %4746 = shalt.err (!%p4743_p7)
}
  0xe0   : > { %s4900_s21 = smov 256   ;;  %s4901_s23 = smov 16  }
  0xe1   : > { %4060 = dma.hbm_to_vmem [thread:$0]  (!%p5981_p3), %s845_s20, 4096, %s847_s14, %s5175_s30, %s4900_s21, %s4900_s21, %s4901_s23  }
  0xe2   : > { %s873_s5 = scalar_lea.hbm %s5907_s18, %s3755_s2  ;;  %s867_s13 = scalar_lea.vmem [#allocation24], %s3601_s25 }
  0xe3   : > { %s874_s28 = sshll.u32 %s867_s13, 4  ;;  %s864_s19 = scalar_lea.sflag [#allocation25], %s5139_s1  ;;  %s875_s28 = int_to_ptr.vmem [resolvable:$true] %s874_s28 }
  0xe4   : > { %s4760_s17 = scalar_lea.vmem %s875_s28, 4096  ;;  %s4902_s29 = smov [#allocation24]  }
  0xe5   : > { %p4761_p1 = scmp.ne.s32.totalorder %s875_s28, %s4760_s17  ;;  %s4765_s3 = sshll.u32 %s4902_s29, 4  ;;  %s4766_s3 = int_to_ptr.vmem [resolvable:$false] %s4765_s3 }
  0xe6   : > { %s4767_s26 = scalar_lea.vmem %s4766_s3, 8192  ;;  %p4768_p5 = scmp.lt.s32.totalorder %s875_s28, %s4766_s3 }
  0xe7   : > { %p4763_p10 = pnand %p4761_p1, %p5159_p0  ;;  %p4769_p9 = scmp.lt.s32.totalorder %s4767_s26, %s4760_s17 }
  0xe9   : > { %p4764_p8 = pneg %p4763_p10  ;;  %p4770_p13 = por %p4769_p9, %p4768_p5 }
  0xeb   : > { %p4771_p11 = pnand %p4770_p13, %p4764_p8 }
  0xed   : > { %4774 = shalt.err (!%p4771_p11)
}
  0xee   : > { %4063 = dma.hbm_to_vmem [thread:$0]  (!%p5981_p3), %s873_s5, 4096, %s875_s28, %s864_s19, %s5974_s27, %s5974_s27, %s5973_s10  }
  0xef   : > { %p5983_p12 = scmp.ne.s32.totalorder %s5957_s24, 0 }
  0xf0   : > { %s5984_s30 = sld [smem:[#allocation39_spill]] (!%p5983_p12) }
  0xf1   : > { %904 = sbr.rel (%p5983_p12) target bundleno = 3006 (0xbbe), region = 108 }
  0xf6   : > { %p5985_p0 = scmp.eq.s32.totalorder %s5984_s30, 0 }
  0xf8   : > { %4824 = dma.done.wait (%p5985_p0), [#allocation4], 128   ;;  %p5986_p2 = pmov %p5985_p0 }
  0xf9   : > { %p5987_p4 = pmov %p5985_p0 }
  0xfa   : > { %4826 = vsyncadd (%p5986_p2), [#allocation4], 4294967168 }
  0xfb   : > { %4828 = dma.done.wait (%p5987_p4), [#allocation7], 528   ;;  %p5988_p6 = pmov %p5985_p0 }
  0xfc   : > { %p5989_p7 = pmov %p5985_p0 }
  0xfd   : > { %4830 = vsyncadd (%p5988_p6), [#allocation7], 4294966768 }
  0xfe   : > { %4832 = dma.done.wait (%p5989_p7), [#allocation10], 1152   ;;  %p5990_p3 = pmov %p5985_p0 }
  0xff   : > { %p5991_p1 = pmov %p5985_p0 }
 0x100   : > { %4834 = vsyncadd (%p5990_p3), [#allocation10], 4294966144 }
 0x101   : > { %4836 = dma.done.wait (%p5991_p1), [#allocation13], 1040   ;;  %p5992_p10 = pmov %p5985_p0 }
 0x102   : > { %p5993_p8 = pmov %p5985_p0 }
 0x103   : > { %4838 = vsyncadd (%p5992_p10), [#allocation13], 4294966256 }
 0x104   : > { %4840 = dma.done.wait (%p5993_p8), [#allocation16], 32   ;;  %p5994_p5 = pmov %p5985_p0 }
 0x105   : > { %s5995_s24 = sld [smem:[#allocation36_spill]]  ;;  %s942_s22 = sand.u32 1, %s5984_s30  }
 0x106   : > { %4842 = vsyncadd (%p5994_p5), [#allocation16], 4294967264  ;;  %s5996_s1 = sld [smem:[#allocation41_spill]]  ;;  %s943_s27 = scalar_lea.sflag [#allocation19], %s942_s22 }
 0x10b   : > { %s944_s15 = sand.u32 1, %s5995_s24  }
 0x10c   : > { %s3968_s10 = smul.u32 192, %s944_s15  ;;  %p5997_p9 = scmp.ne.s32.totalorder %s5996_s1, 0 }
 0x10e   : > { %s5285_s25 = scalar_lea.vmem [#allocation18], %s3968_s10 }
 0x10f   : > { %4844 = dma.done.wait (%p5997_p9), %s943_s27, 3120  }
 0x110   : > { %4846 = vsyncadd (%p5997_p9), %s943_s27, 4294964176  ;;  %s3969_s2 = smul.u32 3, %s944_s15  ;;  %s3617_s14 = sshll.u32 %s944_s15, 6 }
 0x111   : > { %s961_s21 = scalar_lea.sflag [#allocation22], %s942_s22  ;;  %s5293_s23 = scalar_lea.vmem [#allocation21], %s3617_s14 }
 0x112   : > { %s5291_s20 = scalar_lea.vmem [#allocation20], %s3969_s2 }
 0x113   : > { %4848 = dma.done.wait (%p5997_p9), %s961_s21, 5120  }
 0x114   : > { %4850 = vsyncadd (%p5997_p9), %s961_s21, 4294962176  ;;  %s3618_s6 = sshll.u32 %s944_s15, 8  ;;  %s979_s5 = scalar_lea.sflag [#allocation25], %s944_s15 }
 0x115   : > { %s5299_s8 = scalar_lea.vmem [#allocation23], %s3618_s6  ;;  %s5301_s13 = scalar_lea.vmem [#allocation24], %s3618_s6 }
 0x116   : > { %4852 = dma.done.wait (%p5997_p9), %s979_s5, 4096  }
 0x117   : > { %4854 = vsyncadd (%p5997_p9), %s979_s5, 4294963200  ;;  %s5998_s28 = sld [smem:[#allocation38_spill]] }
 0x118   : > { %s6001_s27 = sld [smem:[#allocation58_spill]] }
 0x119   : > { %s6002_s5 = sld [smem:[#allocation60_spill]] }
 0x11a   : > { %s6003_s9 = sld [smem:[#allocation61_spill]] }
 0x11b   : > { %s6004_s26 = sld [smem:[#allocation62_spill]] }
 0x11c   : > { %s6005_s1 = sld [smem:[#allocation63_spill]] }
 0x11d   : > { %p1088_p13 = scmp.lt.s32.totalorder %s5998_s28, 1  ;;  %p3621_p11 = scmp.ne.s32.totalorder %s5998_s28, 0 }
 0x11e   : > { %s6006_s12 = sld [smem:[#allocation49_spill]] (!%p3621_p11) }
 0x11f   : > { %s5309_s19 = scalar_select %p1088_p13, %s5998_s28, 1 }
 0x120   : > { %1114 = sbr.rel (%p3621_p11) target bundleno = 541 (0x21d), region = 168 }
 0x121   : > { %s1096_s2 = scalar_lea.vmem %s6001_s27, %s5309_s19  ;;  %s3620_s14 = sshll.u32 %s5309_s19, 2 }
 0x122   : > { %s5327_s17 = scalar_lea.vmem %s6002_s5, %s3620_s14  ;;  %s1103_s11 = scalar_lea.vmem %s6003_s9, %s5309_s19 }
 0x123   : > { %s1106_s16 = scalar_lea.vmem %s6004_s26, %s5309_s19  ;;  %s1109_s22 = scalar_lea.vmem %s6005_s1, %s5309_s19 }
 0x125   : > { %v3622_v0 = vld [vmem:[#allocation17] ss:$0 sm:$0xff]  ;;  %v4156_v1 = vld [vmem:[#allocation6 + $0x18] sm:$0xff]   ;;  %v4903_v2 = vmov 0.0   ;;  %v4157_v3 = vld [vmem:[#allocation6 + $0x10] sm:$0xff]   ;;  %vm4904_vm0 = vmmov 0  }
 0x126   : > { %1122 = vst [vmem:[#allocation2 + $0x10] sm:$0xff] %v3622_v0  ;;  %3856 = vmatprep.subr.bf16.mxu0 %v4903_v2  ;;  %3868 = vmatprep.subr.bf16.mxu1 %v4903_v2  ;;  %v4159_v4 = vld [vmem:[#allocation11 + $0x38] sm:$0xff]   ;;  %v4161_v6 = vld [vmem:[#allocation11 + $0x30] sm:$0xff]   ;;  %v4163_v9 = vld [vmem:[#allocation11 + $0x28] sm:$0xff]   ;;  %vm1164_vm1 = vcmask 523264  }
 0x127   : > { %3857 = vmatpush3.bf16.msra.mxu0 %v4156_v1  ;;  %3864 = vmatprep.mubr.msk.bf16.mxu0 %vm4904_vm0, %v4903_v2  ;;  %v4158_v5 = vld [vmem:[#allocation6 + $0x8] sm:$0xff]   ;;  %v4160_v7 = vld [vmem:[#allocation6] sm:$0xff]   ;;  %v1123_v8 = vld [vmem:[#allocation3] sm:$0xff] }
 0x128   : > { %3858 = vmatprep.subr.bf16.mxu0 %v4903_v2  ;;  %3884 = vmatprep.mubr.msk.bf16.mxu1 %vm4904_vm0, %v4903_v2  ;;  %v1124_v10 = vpack.c.bf16 %v1123_v8, %v1123_v8  ;;  %v4162_v11 = vld [vmem:[#allocation14 + $0x38] sm:$0xff]   ;;  %v4164_v13 = vld [vmem:[#allocation14 + $0x30] sm:$0xff]   ;;  %v4166_v15 = vld [vmem:[#allocation14 + $0x28] sm:$0xff]  }
 0x129   : > { %3869 = vmatpush3.bf16.msra.mxu1 %v4159_v4  ;;  %v4165_v12 = vld [vmem:[#allocation11 + $0x20] sm:$0xff]   ;;  %v4167_v14 = vld [vmem:[#allocation11 + $0x18] sm:$0xff]   ;;  %v4169_v16 = vld [vmem:[#allocation11 + $0x10] sm:$0xff]  }
 0x12a   : > { %3870 = vmatprep.subr.bf16.mxu1 %v4903_v2  ;;  %v4168_v17 = vld [vmem:[#allocation14 + $0x20] sm:$0xff]   ;;  %v4170_v19 = vld [vmem:[#allocation14 + $0x18] sm:$0xff]   ;;  %v4172_v23 = vld [vmem:[#allocation14 + $0x10] sm:$0xff]  }
 0x12b   : > { %3859 = vmatpush3.bf16.msra.mxu0 %v4157_v3  ;;  %v4171_v18 = vld [vmem:[#allocation11 + $0x8] sm:$0xff]   ;;  %v4173_v20 = vld [vmem:[#allocation11] sm:$0xff]   ;;  %v1209_v21 = vld [vmem:[#allocation9] sm:$0xff] }
 0x12c   : > { %3860 = vmatprep.subr.bf16.mxu0 %v4903_v2  ;;  %v1210_v22 = vpack.c.bf16 %v1209_v21, %v1209_v21  ;;  %v4174_v24 = vld [vmem:[#allocation14 + $0x8] sm:$0xff]   ;;  %v4175_v25 = vld [vmem:[#allocation14] sm:$0xff]   ;;  %v3623_v28 = vld [vmem:[#allocation8] ss:$0 sm:$0xff] }
 0x12d   : > { %3871 = vmatpush3.bf16.msra.mxu1 %v4161_v6  ;;  %v1323_v26 = vld [vmem:[%s6006_s12] sm:$0xff]  ;;  %v3629_v34 = vld [vmem:[#allocation12] ss:$0 sm:$0xff]  ;;  %v3638_v40 = vld [vmem:[#allocation15] ss:$0 sm:$0xff] }
 0x12e   : > { %3872 = vmatprep.subr.bf16.mxu1 %v4903_v2  ;;  %v1324_v27 = vpack.c.bf16 %v1323_v26, %v1323_v26 }
 0x12f   : > { %3861 = vmatpush3.bf16.msra.mxu0 %v4158_v5 }
 0x130   : > { %3862 = vmatprep.subr.bf16.mxu0 %v4903_v2 }
 0x131   : > { %3873 = vmatpush3.bf16.msra.mxu1 %v4163_v9 }
 0x132   : > { %3874 = vmatprep.subr.bf16.mxu1 %v4903_v2 }
 0x133   : > { %3863 = vmatpush3.bf16.msra.mxu0 %v4160_v7 }
 0x134   : > { %3888 = vmatprep.subr.bf16.mxu0 %v4903_v2 }
 0x135   : > { %3875 = vmatpush3.bf16.msra.mxu1 %v4165_v12 }
 0x136   : > { %3865 = vmatmul.mubr.msk.bf16.vlgmr.msra.gmra.mxu0 %vm1164_vm1, %v1124_v10  ;;  %3876 = vmatprep.subr.bf16.mxu1 %v4903_v2 }
 0x137   : > { %3889 = vmatpush3.bf16.msra.mxu0 %v4162_v11  ;;  %3904 = vmatprep.mubr.msk.bf16.mxu0 %vm4904_vm0, %v4903_v2 }
 0x138   : > { %3890 = vmatprep.subr.bf16.mxu0 %v4903_v2 }
 0x139   : > { %3877 = vmatpush3.bf16.msra.mxu1 %v4167_v14 }
 0x13a   : > { %3878 = vmatprep.subr.bf16.mxu1 %v4903_v2 }
 0x13b   : > { %3891 = vmatpush3.bf16.msra.mxu0 %v4164_v13 }
 0x13c   : > { %3892 = vmatprep.subr.bf16.mxu0 %v4903_v2 }
 0x13d   : > { %3879 = vmatpush3.bf16.msra.mxu1 %v4169_v16 }
 0x13e   : > { %3880 = vmatprep.subr.bf16.mxu1 %v4903_v2 }
 0x13f   : > { %3893 = vmatpush3.bf16.msra.mxu0 %v4166_v15 }
 0x140   : > { %3894 = vmatprep.subr.bf16.mxu0 %v4903_v2 }
 0x141   : > { %3881 = vmatpush3.bf16.msra.mxu1 %v4171_v18 }
 0x142   : > { %3882 = vmatprep.subr.bf16.mxu1 %v4903_v2 }
 0x143   : > { %3895 = vmatpush3.bf16.msra.mxu0 %v4168_v17 }
 0x144   : > { %3896 = vmatprep.subr.bf16.mxu0 %v4903_v2 }
 0x145   : > { %3883 = vmatpush3.bf16.msra.mxu1 %v4173_v20 }
 0x147   : > { %3897 = vmatpush3.bf16.msra.mxu0 %v4170_v19 }
 0x148   : > { %3898 = vmatprep.subr.bf16.mxu0 %v4903_v2  ;;  %3885 = vmatmul.mubr.bf16.vlgmr.msra.gmra.mxu1 %v1210_v22 }
 0x14b   : > { %3899 = vmatpush3.bf16.msra.mxu0 %v4172_v23 }
 0x14c   : > { %3900 = vmatprep.subr.bf16.mxu0 %v4903_v2 }
 0x14f   : > { %3901 = vmatpush3.bf16.msra.mxu0 %v4174_v24 }
 0x150   : > { %3902 = vmatprep.subr.bf16.mxu0 %v4903_v2 }
 0x153   : > { %3903 = vmatpush3.bf16.msra.mxu0 %v4175_v25 }
 0x156   : > { %3905 = vmatmul.mubr.bf16.vlgmr.msra.gmra.mxu0 %v1324_v27 }
 0x1f6   : > { %v1202_v29 = vpop.f32.mrf.mxu0 }
 0x1f7   : > { %v1203_v30 = vadd.f32 %v3623_v28, %v1202_v29 }
 0x1f8   : > { %v3866_v31 = vpop.f32.mrf.mxu0 }
 0x1f9   : > { %1208 = vst [vmem:[#allocation2] sm:$0xff] %v1203_v30 }
 0x1fa   : > { %v1205_v32 = vpop.f32.mrf.mxu0 }
 0x1fc   : > { %v3867_v33 = vpop.f32.mrf.mxu0 }
 0x208   : > { %v1316_v35 = vpop.f32.mrf.mxu1 }
 0x209   : > { %v1317_v36 = vadd.f32 %v3629_v34, %v1316_v35 }
 0x20a   : > { %v3886_v37 = vpop.f32.mrf.mxu1 }
 0x20b   : > { %1322 = vst [vmem:[#allocation2 + $0x18] sm:$0xff] %v1317_v36 }
 0x20c   : > { %v1319_v38 = vpop.f32.mrf.mxu1 }
 0x20e   : > { %v3887_v39 = vpop.f32.mrf.mxu1 }
 0x216   : > { %v1430_v41 = vpop.f32.mrf.mxu0 }
 0x217   : > { %v1431_v42 = vadd.f32 %v3638_v40, %v1430_v41 }
 0x218   : > { %v3906_v43 = vpop.f32.mrf.mxu0 }
 0x219   : > { %1436 = vst [vmem:[#allocation2 + $0x8] sm:$0xff] %v1431_v42 }
 0x21a   : > { %v1433_v44 = vpop.f32.mrf.mxu0 }
 0x21c   : > { %v3907_v45 = vpop.f32.mrf.mxu0 }
 0x21d PF: > { %v4197_v46 = vld [vmem:[%s5285_s25 + $0xac] ss:$12 sps:$4 sm:$0xff]   ;;  %v4199_v47 = vld [vmem:[%s5285_s25 + $0xa8] ss:$12 sps:$4 sm:$0xff]   ;;  %v4905_v48 = vmov 0   ;;  %v1439_v2 = vld [vmem:[#allocation2 + $0x18] sm:$0xff]  ;;  %v1477_v5 = vlaneseq }
 0x21e   : > { %1652 = vmatprep.mubr.bf16.mxu0 %v4905_v48  ;;  %4176 = vset.pattern.permute.xlu1 %v4905_v48  ;;  %v4200_v49 = vld [vmem:[%s5285_s25 + $0x94] ss:$12 sps:$4 sm:$0xff]   ;;  %v4202_v50 = vld [vmem:[%s5285_s25 + $0x90] ss:$12 sps:$4 sm:$0xff]   ;;  %v4205_v52 = vld [vmem:[%s5285_s25 + $0x78] ss:$12 sps:$4 sm:$0xff]  }
 0x21f   : > { %1620 = vmatprep.subr.bf16.mxu0 %v4197_v46  ;;  %v4203_v51 = vld [vmem:[%s5285_s25 + $0x7c] ss:$12 sps:$4 sm:$0xff]   ;;  %v4206_v53 = vld [vmem:[%s5285_s25 + $0x64] ss:$12 sps:$4 sm:$0xff]   ;;  %v4208_v55 = vld [vmem:[%s5285_s25 + $0x60] ss:$12 sps:$4 sm:$0xff]  }
 0x220   : > { %1621 = vmatpush1.bf16.msra.mxu0 %v4199_v47  ;;  %v1437_v54 = vld [vmem:[#allocation2 + $0x10] sm:$0xff]  ;;  %v1438_v56 = vld [vmem:[#allocation2] sm:$0xff]  ;;  %v4212_v60 = vld [vmem:[%s5285_s25 + $0x34] ss:$12 sps:$4 sm:$0xff]   ;;  %v5393_v6 = vshrl.u32 %v1477_v5, 7  ;;  %s4906_s28 = smov 64  }
 0x221   : > { %1622 = vmatprep.subr.bf16.mxu0 %v4200_v49  ;;  %v4209_v57 = vld [vmem:[%s5285_s25 + $0x4c] ss:$12 sps:$4 sm:$0xff]   ;;  %v1441_v58 = vpack.c.bf16 %v1438_v56, %v1437_v54  ;;  %v4211_v59 = vld [vmem:[%s5285_s25 + $0x48] ss:$12 sps:$4 sm:$0xff]   ;;  %v4214_v61 = vld [vmem:[%s5285_s25 + $0x30] ss:$12 sps:$4 sm:$0xff]  }
 0x222   : > { %v4215_v62 = vld [vmem:[%s5285_s25 + $0x1c] ss:$12 sps:$4 sm:$0xff]   ;;  %v4217_v63 = vld [vmem:[%s5285_s25 + $0x18] ss:$12 sps:$4 sm:$0xff]   ;;  %v4220_v1 = vld [vmem:[%s5285_s25] ss:$12 sps:$4 sm:$0xff]  }
 0x223   : > { %3924 = vmatprep.mubr.bf16.mxu1 %v1441_v58  ;;  %v4218_v0 = vld [vmem:[%s5285_s25 + $0x4] ss:$12 sps:$4 sm:$0xff]   ;;  %v1479_v7 = vsub.s32 0, %v5393_v6  ;;  %v1483_v8 = vsub.s32 1, %v5393_v6  ;;  %vm1723_vm2 = vcmask 523264   ;;  %vm1741_vm3 = vcmask 15360  }
 0x224   : > { %1623 = vmatpush1.bf16.msra.mxu0 %v4202_v50  ;;  %v1440_v3 = vld [vmem:[#allocation2 + $0x8] sm:$0xff]  ;;  %v5398_v9 = vld [vmem:[%s5291_s20] sm:$0x7]  ;;  %vm1739_vm4 = vcmask 7168   ;;  %vm1743_vm5 = vcmask 23552   ;;  %vm1745_vm6 = vcmask 31744  }
 0x225   : > { %1624 = vmatprep.subr.bf16.mxu0 %v4203_v51  ;;  %v5390_v4 = vpack.c.bf16 %v1440_v3, %v1439_v2  ;;  %v1480_v10 = vrot.slane %v5398_v9, %v1479_v7  ;;  %v1484_v11 = vrot.slane %v5398_v9, %v1483_v8  ;;  %s6009_s10 = sld [smem:[#allocation57_spill]] }
 0x228   : > { %1625 = vmatpush1.bf16.msra.mxu0 %v4205_v52 }
 0x229   : > { %1626 = vmatprep.subr.bf16.mxu0 %v4206_v53 }
 0x22b   : > { %s6010_s27 = scalar_lea.vmem %s6009_s10, %s5309_s19 }
 0x22c   : > { %1627 = vmatpush1.bf16.msra.mxu0 %v4208_v55 }
 0x22d   : > { %1628 = vmatprep.subr.bf16.mxu0 %v4209_v57 }
 0x230   : > { %1629 = vmatpush1.bf16.msra.mxu0 %v4211_v59 }
 0x231   : > { %1630 = vmatprep.subr.bf16.mxu0 %v4212_v60 }
 0x234   : > { %1631 = vmatpush1.bf16.msra.mxu0 %v4214_v61 }
 0x235   : > { %1632 = vmatprep.subr.bf16.mxu0 %v4215_v62 }
 0x238   : > { %1633 = vmatpush1.bf16.msra.mxu0 %v4217_v63 }
 0x239   : > { %1634 = vmatprep.subr.bf16.mxu0 %v4218_v0 }
 0x23c   : > { %1635 = vmatpush1.bf16.msra.mxu0 %v4220_v1 }
 0x23f   : > { %1653 = vmatmul.mubr.bf16.vlgmr.msra.gmra.mxu0 %v1441_v58 }
 0x240   : > { %1662 = vmatprep.mubr.bf16.mxu0 %v4905_v48 }
 0x247   : > { %1663 = vmatmul.mubr.bf16.gmra.mxu0 %v5390_v4 }
 0x2ff   : > { %v1654_v12 = vpop.f32.mrf.mxu0 }
 0x300   : > { %v1655_v14 = vadd.f32 %v1654_v12, %v1480_v10 }
 0x301   : > { %v1656_v13 = vpop.f32.mrf.mxu0 }
 0x302   : > { %v1657_v15 = vadd.f32 %v1656_v13, %v1484_v11 }
 0x303   : > { %v1658_v16 = vpop.f32.mrf.mxu0 }
 0x304   : > { %v1659_v17 = vadd.f32 %v1658_v16, %v1480_v10  ;;  %v1722_v18 = vmul.f32 %v1657_v15, %v1655_v14 }
 0x305   : > { %v1660_v19 = vpop.f32.mrf.mxu0 }
 0x306   : > { %1782 = vrot.lane.b32.xlu0 %v1722_v18, %s4906_s28  ;;  %v1848_v20 = vmul.f32 %v1659_v17, %v1657_v15  ;;  %v1661_v26 = vadd.f32 %v1660_v19, %v1484_v11  ;;  %v1724_v41 = vsel %vm1723_vm2, %v1722_v18, 0.0 }
 0x307   : > { %v1664_v21 = vpop.f32.mrf.mxu0 }
 0x308   : > { %v1665_v22 = vadd.f32 %v1664_v21, %v1480_v10  ;;  %1903 = vrot.lane.b32.xlu1 %v1848_v20, %s4906_s28  ;;  %v1849_v42 = vsel %vm1723_vm2, %v1848_v20, 0.0  ;;  %v1727_v43 = vmul.f32 %v1661_v26, %v1655_v14  ;;  %v1852_v44 = vmul.f32 %v1661_v26, %v1659_v17 }
 0x309   : > { %v1666_v23 = vpop.f32.mrf.mxu0 }
 0x30a   : > { %v1667_v24 = vadd.f32 %v1666_v23, %v1484_v11  ;;  %v1969_v25 = vmul.f32 %v1665_v22, %v1657_v15  ;;  %v1853_v45 = vsel %vm1723_vm2, %v1852_v44, 0.0  ;;  %v1728_v46 = vsel %vm1723_vm2, %v1727_v43, 0.0 }
 0x30b   : > { %v1668_v27 = vpop.f32.mrf.mxu0  ;;  %v1973_v47 = vmul.f32 %v1665_v22, %v1661_v26 }
 0x30c   : > { %v1669_v28 = vadd.f32 %v1668_v27, %v1480_v10  ;;  %v1731_v29 = vmul.f32 %v1667_v24, %v1655_v14  ;;  %v1856_v30 = vmul.f32 %v1667_v24, %v1659_v17  ;;  %v1977_v31 = vmul.f32 %v1667_v24, %v1665_v22 }
 0x30d   : > { %v1670_v32 = vpop.f32.mrf.mxu0  ;;  %v1974_v50 = vsel %vm1723_vm2, %v1973_v47, 0.0  ;;  %v1970_v62 = vsel %vm1723_vm2, %v1969_v25, 0.0 }
 0x30e   : > { %v1671_v33 = vadd.f32 %v1670_v32, %v1484_v11  ;;  %v2090_v34 = vmul.f32 %v1669_v28, %v1657_v15  ;;  %v2094_v35 = vmul.f32 %v1669_v28, %v1661_v26  ;;  %v2098_v36 = vmul.f32 %v1669_v28, %v1667_v24 }
 0x30f   : > { %v1732_v49 = vsel %vm1723_vm2, %v1731_v29, 0.0  ;;  %v1857_v61 = vsel %vm1723_vm2, %v1856_v30, 0.0  ;;  %v1978_v1 = vsel %vm1723_vm2, %v1977_v31, 0.0 }
 0x310   : > { %v1735_v37 = vmul.f32 %v1671_v33, %v1655_v14  ;;  %v5408_v38 = vmul.f32 %v1671_v33, %v1665_v22  ;;  %v5410_v39 = vmul.f32 %v1671_v33, %v1659_v17  ;;  %v5412_v40 = vmul.f32 %v1671_v33, %v1669_v28 }
 0x311   : > { %v2095_v51 = vsel %vm1723_vm2, %v2094_v35, 0.0  ;;  %v2091_v63 = vsel %vm1723_vm2, %v2090_v34, 0.0  ;;  %v2099_v5 = vsel %vm1723_vm2, %v2098_v36, 0.0 }
 0x312   : > { %v1736_v11 = vsel %vm1723_vm2, %v1735_v37, 0.0  ;;  %v1861_v14 = vsel %vm1723_vm2, %v5410_v39, 0.0  ;;  %v1982_v17 = vsel %vm1723_vm2, %v5408_v38, 0.0 }
 0x325   : > { %1725 = vadd.xlane.f32.xlu0 %v1724_v41 }
 0x32c   : > { %1850 = vadd.xlane.f32.xlu1 %v1849_v42 }
 0x33b   : > { %1789 = vrot.lane.b32.xlu0 %v1727_v43, %s4906_s28 }
 0x33d   : > { %1910 = vrot.lane.b32.xlu1 %v1852_v44, %s4906_s28 }
 0x35a   : > { %1854 = vadd.xlane.f32.xlu0 %v1853_v45 }
 0x361   : > { %1729 = vadd.xlane.f32.xlu1 %v1728_v46 }
 0x370   : > { %2024 = vrot.lane.b32.xlu0 %v1969_v25, %s4906_s28  ;;  %v2103_v25 = vsel %vm1723_vm2, %v5412_v40, 0.0 }
 0x372   : > { %2031 = vrot.lane.b32.xlu1 %v1973_v47, %s4906_s28 }
 0x374   : > { %1796 = vrot.lane.b32.xlu0 %v1731_v29, %s4906_s28 }
 0x376   : > { %1917 = vrot.lane.b32.xlu1 %v1856_v30, %s4906_s28 }
 0x378   : > { %2038 = vrot.lane.b32.xlu0 %v1977_v31, %s4906_s28  ;;  %v1783_v52 = vpop.permute.xlu0 %1782 }
 0x379   : > { %v1785_v53 = vsel %vm1723_vm2, %v1783_v52, 0.0 }
 0x37a   : > { %v1904_v55 = vpop.permute.xlu1 %1903 }
 0x37b   : > { %v1906_v20 = vsel %vm1723_vm2, %v1904_v55, 0.0 }
 0x37c   : > { %2145 = vrot.lane.b32.xlu0 %v2090_v34, %s4906_s28 }
 0x380   : > { %1803 = vrot.lane.b32.xlu0 %v1735_v37, %s4906_s28 }
 0x384   : > { %2045 = vrot.lane.b32.xlu0 %v5408_v38, %s4906_s28 }
 0x39a   : > { %1733 = vadd.xlane.f32.xlu1 %v1732_v49 }
 0x3a3   : > { %1975 = vadd.xlane.f32.xlu0 %v1974_v50 }
 0x3a7   : > { %2096 = vadd.xlane.f32.xlu0 %v2095_v51 }
 0x3ab   : > { %2152 = vrot.lane.b32.xlu1 %v2094_v35, %s4906_s28  ;;  %1786 = vadd.xlane.f32.xlu0 %v1785_v53 }
 0x3ae   : > { %v5434_v54 = vpop.xlane.xlu0 %1725 }
 0x3af   : > { %2159 = vrot.lane.b32.xlu1 %v2098_v36, %s4906_s28 }
 0x3b2   : > { %v1790_v56 = vpop.permute.xlu0 %1789 }
 0x3b3   : > { %1924 = vrot.lane.b32.xlu1 %v5410_v39, %s4906_s28  ;;  %v1792_v57 = vsel %vm1723_vm2, %v1790_v56, 0.0 }
 0x3b4   : > { %1793 = vadd.xlane.f32.xlu0 %v1792_v57 }
 0x3b5   : > { %v5440_v58 = vpop.xlane.xlu1 %1850 }
 0x3b7   : > { %2166 = vrot.lane.b32.xlu1 %v5412_v40, %s4906_s28 }
 0x3b9   : > { %v1911_v59 = vpop.permute.xlu1 %1910 }
 0x3ba   : > { %v1913_v60 = vsel %vm1723_vm2, %v1911_v59, 0.0 }
 0x3bb   : > { %1914 = vadd.xlane.f32.xlu0 %v1913_v60 }
 0x3db   : > { %1858 = vadd.xlane.f32.xlu1 %v1857_v61 }
 0x3df   : > { %1971 = vadd.xlane.f32.xlu1 %v1970_v62 }
 0x3e3   : > { %2092 = vadd.xlane.f32.xlu1 %v2091_v63  ;;  %v5448_v0 = vpop.xlane.xlu0 %1854 }
 0x3e4   : > { %v1864_v50 = vsel %vm1739_vm4, %v5440_v58, %v5448_v0 }
 0x3e7   : > { %1979 = vadd.xlane.f32.xlu1 %v1978_v1  ;;  %v2025_v2 = vpop.permute.xlu0 %2024 }
 0x3e8   : > { %v2027_v22 = vsel %vm1723_vm2, %v2025_v2, 0.0 }
 0x3ea   : > { %v1730_v3 = vpop.xlane.xlu1 %1729 }
 0x3eb   : > { %2100 = vadd.xlane.f32.xlu1 %v2099_v5  ;;  %v1797_v13 = vpop.permute.xlu0 %1796  ;;  %v1740_v44 = vsel %vm1739_vm4, %v5434_v54, %v1730_v3 }
 0x3ec   : > { %v1799_v15 = vsel %vm1723_vm2, %v1797_v13, 0.0 }
 0x3ee   : > { %v2032_v10 = vpop.permute.xlu1 %2031 }
 0x3ef   : > { %1737 = vadd.xlane.f32.xlu1 %v1736_v11  ;;  %v2034_v12 = vsel %vm1723_vm2, %v2032_v10, 0.0  ;;  %v2039_v19 = vpop.permute.xlu0 %2038 }
 0x3f0   : > { %2035 = vadd.xlane.f32.xlu0 %v2034_v12  ;;  %v2041_v21 = vsel %vm1723_vm2, %v2039_v19, 0.0 }
 0x3f2   : > { %v1918_v16 = vpop.permute.xlu1 %1917 }
 0x3f3   : > { %1862 = vadd.xlane.f32.xlu1 %v1861_v14  ;;  %v1920_v18 = vsel %vm1723_vm2, %v1918_v16, 0.0  ;;  %v2146_v23 = vpop.permute.xlu0 %2145 }
 0x3f4   : > { %1800 = vadd.xlane.f32.xlu0 %v1799_v15  ;;  %v2148_v24 = vsel %vm1723_vm2, %v2146_v23, 0.0 }
 0x3f7   : > { %1983 = vadd.xlane.f32.xlu1 %v1982_v17  ;;  %v1804_v31 = vpop.permute.xlu0 %1803 }
 0x3f8   : > { %1921 = vadd.xlane.f32.xlu0 %v1920_v18  ;;  %v1806_v32 = vsel %vm1723_vm2, %v1804_v31, 0.0  ;;  %v4221_v18 = vld [vmem:[%s5285_s25 + $0xb0] ss:$12 sps:$4 sm:$0xff]  }
 0x3f9   : > { %3908 = vmatprep.subr.bf16.mxu1 %v4221_v18 }
 0x3fa   : > { %3909 = vmatpush3.bf16.msra.mxu1 %v4221_v18 }
 0x3fb   : > { %1907 = vadd.xlane.f32.xlu1 %v1906_v20  ;;  %v2046_v35 = vpop.permute.xlu0 %2045 }
 0x3fc   : > { %2042 = vadd.xlane.f32.xlu0 %v2041_v21  ;;  %v2048_v36 = vsel %vm1723_vm2, %v2046_v35, 0.0 }
 0x3ff   : > { %2028 = vadd.xlane.f32.xlu1 %v2027_v22 }
 0x403   : > { %2149 = vadd.xlane.f32.xlu1 %v2148_v24 }
 0x407   : > { %2104 = vadd.xlane.f32.xlu1 %v2103_v25 }
 0x423   : > { %v1734_v26 = vpop.xlane.xlu1 %1733 }
 0x424   : > { %v1742_v45 = vsel %vm1741_vm3, %v1740_v44, %v1734_v26  ;;  %v4225_v44 = vld [vmem:[%s5285_s25 + $0x50] ss:$12 sps:$4 sm:$0xff]  }
 0x427   : > { %v2153_v27 = vpop.permute.xlu1 %2152 }
 0x428   : > { %v2155_v28 = vsel %vm1723_vm2, %v2153_v27, 0.0 }
 0x429   : > { %2156 = vadd.xlane.f32.xlu0 %v2155_v28 }
 0x42b   : > { %v2160_v29 = vpop.permute.xlu1 %2159 }
 0x42c   : > { %v2162_v30 = vsel %vm1723_vm2, %v2160_v29, 0.0  ;;  %v1976_v54 = vpop.xlane.xlu0 %1975 }
 0x42d   : > { %2163 = vadd.xlane.f32.xlu0 %v2162_v30 }
 0x42f   : > { %v1925_v33 = vpop.permute.xlu1 %1924 }
 0x430   : > { %v1927_v34 = vsel %vm1723_vm2, %v1925_v33, 0.0  ;;  %v2097_v63 = vpop.xlane.xlu0 %2096 }
 0x431   : > { %1807 = vadd.xlane.f32.xlu0 %v1806_v32 }
 0x433   : > { %v2167_v37 = vpop.permute.xlu1 %2166 }
 0x434   : > { %v2169_v38 = vsel %vm1723_vm2, %v2167_v37, 0.0  ;;  %v1787_v2 = vpop.xlane.xlu0 %1786 }
 0x435   : > { %1928 = vadd.xlane.f32.xlu0 %v1927_v34 }
 0x439   : > { %2049 = vadd.xlane.f32.xlu0 %v2048_v36 }
 0x43d   : > { %2170 = vadd.xlane.f32.xlu0 %v2169_v38  ;;  %v1794_v12 = vpop.xlane.xlu0 %1793 }
 0x43e   : > { %v1809_v21 = vsel %vm1739_vm4, %v1787_v2, %v1794_v12 }
 0x444   : > { %v1915_v13 = vpop.xlane.xlu0 %1914 }
 0x464   : > { %v1859_v39 = vpop.xlane.xlu1 %1858 }
 0x465   : > { %v1865_v51 = vsel %vm1741_vm3, %v1864_v50, %v1859_v39 }
 0x468   : > { %v1972_v40 = vpop.xlane.xlu1 %1971 }
 0x469   : > { %v1985_v56 = vsel %vm1739_vm4, %v1972_v40, %v1976_v54 }
 0x46c   : > { %v2093_v41 = vpop.xlane.xlu1 %2092 }
 0x46d   : > { %v2106_v1 = vsel %vm1739_vm4, %v2093_v41, %v2097_v63  ;;  %v4222_v41 = vld [vmem:[%s5285_s25 + $0x98] ss:$12 sps:$4 sm:$0xff]  }
 0x46e   : > { %3910 = vmatprep.subr.bf16.mxu1 %v4222_v41 }
 0x46f   : > { %3911 = vmatpush3.bf16.msra.mxu1 %v4222_v41 }
 0x470   : > { %v1980_v42 = vpop.xlane.xlu1 %1979 }
 0x471   : > { %v1986_v57 = vsel %vm1741_vm3, %v1985_v56, %v1980_v42  ;;  %v4223_v42 = vld [vmem:[%s5285_s25 + $0x80] ss:$12 sps:$4 sm:$0xff]  }
 0x472   : > { %3912 = vmatprep.subr.bf16.mxu1 %v4223_v42 }
 0x473   : > { %3913 = vmatpush3.bf16.msra.mxu1 %v4223_v42  ;;  %v4908_v42 = vmov 2  }
 0x474   : > { %v2101_v43 = vpop.xlane.xlu1 %2100 }
 0x475   : > { %v2107_v3 = vsel %vm1741_vm3, %v2106_v1, %v2101_v43  ;;  %v4224_v43 = vld [vmem:[%s5285_s25 + $0x68] ss:$12 sps:$4 sm:$0xff]  }
 0x476   : > { %3914 = vmatprep.subr.bf16.mxu1 %v4224_v43 }
 0x477   : > { %3915 = vmatpush3.bf16.msra.mxu1 %v4224_v43  ;;  %v4909_v43 = vmov 3  }
 0x478   : > { %v1738_v46 = vpop.xlane.xlu1 %1737  ;;  %3916 = vmatprep.subr.bf16.mxu1 %v4225_v44 }
 0x479   : > { %v5476_v47 = vsel %vm1743_vm5, %v1742_v45, %v1738_v46  ;;  %v2036_v14 = vpop.xlane.xlu0 %2035  ;;  %v4226_v45 = vld [vmem:[%s5285_s25 + $0x38] ss:$12 sps:$4 sm:$0xff]   ;;  %v4227_v46 = vld [vmem:[%s5285_s25 + $0x20] ss:$12 sps:$4 sm:$0xff]  }
 0x47a   : > { %v1746_v49 = vsel %vm1745_vm6, %v5476_v47, -inf }
 0x47b   : > { %1747 = vmax.xlane.f32.xlu1 %v1746_v49  ;;  %3917 = vmatpush3.bf16.msra.mxu1 %v4225_v44  ;;  %v4228_v49 = vld [vmem:[%s5285_s25 + $0x8] ss:$12 sps:$4 sm:$0xff]  }
 0x47c   : > { %v1863_v52 = vpop.xlane.xlu1 %1862  ;;  %3918 = vmatprep.subr.bf16.mxu1 %v4226_v45 }
 0x47d   : > { %v5485_v53 = vsel %vm1743_vm5, %v1865_v51, %v1863_v52  ;;  %v1801_v15 = vpop.xlane.xlu0 %1800 }
 0x47e   : > { %v1867_v55 = vsel %vm1745_vm6, %v5485_v53, -inf  ;;  %v1810_v22 = vsel %vm1741_vm3, %v1809_v21, %v1801_v15 }
 0x47f   : > { %1868 = vmax.xlane.f32.xlu1 %v1867_v55  ;;  %3919 = vmatpush3.bf16.msra.mxu1 %v4226_v45 }
 0x480   : > { %v1984_v59 = vpop.xlane.xlu1 %1983  ;;  %3920 = vmatprep.subr.bf16.mxu1 %v4227_v46 }
 0x481   : > { %v5492_v60 = vsel %vm1743_vm5, %v1986_v57, %v1984_v59  ;;  %v1922_v16 = vpop.xlane.xlu0 %1921 }
 0x482   : > { %v1988_v58 = vsel %vm1745_vm6, %v5492_v60, -inf }
 0x483   : > { %1989 = vmax.xlane.f32.xlu1 %v1988_v58  ;;  %3921 = vmatpush3.bf16.msra.mxu1 %v4227_v46 }
 0x484   : > { %v1908_v61 = vpop.xlane.xlu1 %1907  ;;  %3922 = vmatprep.subr.bf16.mxu1 %v4228_v49 }
 0x485   : > { %v2043_v17 = vpop.xlane.xlu0 %2042  ;;  %v1930_v24 = vsel %vm1739_vm4, %v1908_v61, %v1915_v13 }
 0x486   : > { %v1931_v28 = vsel %vm1741_vm3, %v1930_v24, %v1922_v16 }
 0x487   : > { %3923 = vmatpush3.bf16.msra.mxu1 %v4228_v49 }
 0x488   : > { %v2029_v62 = vpop.xlane.xlu1 %2028 }
 0x489   : > { %v2051_v29 = vsel %vm1739_vm4, %v2029_v62, %v2036_v14 }
 0x48a   : > { %v2052_v33 = vsel %vm1741_vm3, %v2051_v29, %v2043_v17  ;;  %3925 = vmatmul.mubr.bf16.vlgmr.msra.gmra.mxu1 %v5390_v4 }
 0x48b   : > { %2652 = vmatprep.mubr.bf16.mxu1 %v4905_v48 }
 0x48c   : > { %v2150_v0 = vpop.xlane.xlu1 %2149 }
 0x490   : > { %v2105_v5 = vpop.xlane.xlu1 %2104 }
 0x491   : > { %v5499_v10 = vsel %vm1743_vm5, %v2107_v3, %v2105_v5 }
 0x492   : > { %v2109_v11 = vsel %vm1745_vm6, %v5499_v10, -inf }
 0x493   : > { %2110 = vmax.xlane.f32.xlu1 %v2109_v11 }
 0x4b2   : > { %v2157_v19 = vpop.xlane.xlu0 %2156 }
 0x4b3   : > { %v2172_v36 = vsel %vm1739_vm4, %v2150_v0, %v2157_v19 }
 0x4b6   : > { %v2164_v20 = vpop.xlane.xlu0 %2163 }
 0x4b7   : > { %v2173_v37 = vsel %vm1741_vm3, %v2172_v36, %v2164_v20 }
 0x4ba   : > { %v1808_v23 = vpop.xlane.xlu0 %1807 }
 0x4bb   : > { %v5508_v25 = vsel %vm1743_vm5, %v1810_v22, %v1808_v23 }
 0x4bc   : > { %v1812_v26 = vsel %vm1745_vm6, %v5508_v25, -inf }
 0x4bd   : > { %1813 = vmax.xlane.f32.xlu0 %v1812_v26 }
 0x4be   : > { %v1929_v27 = vpop.xlane.xlu0 %1928 }
 0x4bf   : > { %v5515_v30 = vsel %vm1743_vm5, %v1931_v28, %v1929_v27 }
 0x4c0   : > { %v1933_v31 = vsel %vm1745_vm6, %v5515_v30, -inf }
 0x4c1   : > { %1934 = vmax.xlane.f32.xlu0 %v1933_v31 }
 0x4c2   : > { %v2050_v32 = vpop.xlane.xlu0 %2049 }
 0x4c3   : > { %v5521_v34 = vsel %vm1743_vm5, %v2052_v33, %v2050_v32 }
 0x4c4   : > { %v2054_v35 = vsel %vm1745_vm6, %v5521_v34, -inf }
 0x4c5   : > { %2055 = vmax.xlane.f32.xlu0 %v2054_v35 }
 0x4c6   : > { %v2171_v38 = vpop.xlane.xlu0 %2170 }
 0x4c7   : > { %v5528_v39 = vsel %vm1743_vm5, %v2173_v37, %v2171_v38 }
 0x4c8   : > { %v2175_v40 = vsel %vm1745_vm6, %v5528_v39, -inf }
 0x4c9   : > { %2176 = vmax.xlane.f32.xlu0 %v2175_v40 }
 0x504   : > { %v1748_v50 = vpop.xlane.xlu1 %1747 }
 0x505   : > { %v1749_v51 = vsub.f32 %v5476_v47, %v1748_v50 }
 0x507   : > { %v1750_v52 = vmul.f32 1.442695, %v1749_v51 }
 0x508   : > { %v1869_v54 = vpop.xlane.xlu1 %1868 }
 0x509   : > { %4317 = vpow2.f32 %v1750_v52  ;;  %v1870_v55 = vsub.f32 %v5485_v53, %v1869_v54 }
 0x50b   : > { %v1871_v56 = vmul.f32 1.442695, %v1870_v55 }
 0x50c   : > { %v1990_v57 = vpop.xlane.xlu1 %1989 }
 0x50d   : > { %4319 = vpow2.f32 %v1871_v56  ;;  %v1991_v59 = vsub.f32 %v5492_v60, %v1990_v57  ;;  %v4907_v60 = vmov 1  }
 0x50e   : > { %4177 = vset.pattern.permute.xlu0 %v4907_v60 }
 0x50f   : > { %v1992_v58 = vmul.f32 1.442695, %v1991_v59  ;;  %v4229_v59 = vld [vmem:[%s5293_s23 + $0x38] sm:$0xff]  }
 0x510   : > { %3928 = vmatprep.subr.bf16.mxu0 %v4229_v59 }
 0x511   : > { %4321 = vpow2.f32 %v1992_v58  ;;  %3929 = vmatpush3.bf16.msra.mxu0 %v4229_v59 }
 0x516   : > { %v4318_v61 = vpop.eup %4317 }
 0x517   : > { %v1752_v4 = vsel %vm1745_vm6, %v4318_v61, 0.0 }
 0x518   : > { %1753 = vadd.xlane.f32.xlu1 %v1752_v4  ;;  %v4231_v4 = vld [vmem:[%s5293_s23 + $0x28] sm:$0xff]  }
 0x51a   : > { %v4320_v62 = vpop.eup %4319 }
 0x51b   : > { %v1873_v63 = vsel %vm1745_vm6, %v4320_v62, 0.0 }
 0x51c   : > { %1874 = vadd.xlane.f32.xlu1 %v1873_v63  ;;  %v2111_v47 = vpop.xlane.xlu1 %2110  ;;  %v4233_v63 = vld [vmem:[%s5293_s23 + $0x18] sm:$0xff]  }
 0x51d   : > { %v2112_v0 = vsub.f32 %v5499_v10, %v2111_v47  ;;  %v4234_v47 = vld [vmem:[%s5293_s23 + $0x10] sm:$0xff]  }
 0x51e   : > { %v4322_v1 = vpop.eup %4321 }
 0x51f   : > { %v2113_v53 = vmul.f32 1.442695, %v2112_v0  ;;  %v1994_v2 = vsel %vm1745_vm6, %v4322_v1, 0.0  ;;  %v4235_v0 = vld [vmem:[%s5293_s23 + $0x8] sm:$0xff]  }
 0x520   : > { %1995 = vadd.xlane.f32.xlu1 %v1994_v2 }
 0x521   : > { %4323 = vpow2.f32 %v2113_v53 }
 0x52e   : > { %v4324_v3 = vpop.eup %4323 }
 0x52f   : > { %v2115_v5 = vsel %vm1745_vm6, %v4324_v3, 0.0 }
 0x530   : > { %2116 = vadd.xlane.f32.xlu1 %v2115_v5 }
 0x546   : > { %v1814_v11 = vpop.xlane.xlu0 %1813 }
 0x547   : > { %v1815_v12 = vsub.f32 %v5508_v25, %v1814_v11 }
 0x549   : > { %v1816_v13 = vmul.f32 1.442695, %v1815_v12 }
 0x54a   : > { %v1935_v14 = vpop.xlane.xlu0 %1934  ;;  %v3926_v53 = vpop.f32.mrf.mxu1 }
 0x54b   : > { %4325 = vpow2.f32 %v1816_v13  ;;  %v1936_v10 = vsub.f32 %v5515_v30, %v1935_v14 }
 0x54c   : > { %v1707_v2 = vpop.f32.mrf.mxu1 }
 0x54d   : > { %v1937_v15 = vmul.f32 1.442695, %v1936_v10 }
 0x54e   : > { %v2056_v16 = vpop.xlane.xlu0 %2055  ;;  %v3927_v5 = vpop.f32.mrf.mxu1 }
 0x54f   : > { %4327 = vpow2.f32 %v1937_v15  ;;  %v2057_v17 = vsub.f32 %v5521_v34, %v2056_v16 }
 0x550   : > { %v1710_v13 = vpop.f32.mrf.mxu1 }
 0x551   : > { %v2058_v18 = vmul.f32 1.442695, %v2057_v17 }
 0x552   : > { %v2177_v19 = vpop.xlane.xlu0 %2176 }
 0x553   : > { %4329 = vpow2.f32 %v2058_v18  ;;  %v2178_v20 = vsub.f32 %v5528_v39, %v2177_v19 }
 0x555   : > { %v2179_v21 = vmul.f32 1.442695, %v2178_v20 }
 0x557   : > { %4331 = vpow2.f32 %v2179_v21 }
 0x558   : > { %v4326_v22 = vpop.eup %4325 }
 0x559   : > { %v1818_v23 = vsel %vm1745_vm6, %v4326_v22, 0.0 }
 0x55a   : > { %1819 = vadd.xlane.f32.xlu0 %v1818_v23 }
 0x55c   : > { %v5555_v24 = vpop.eup %4327 }
 0x55d   : > { %v1939_v25 = vsel %vm1745_vm6, %v5555_v24, 0.0 }
 0x55e   : > { %1940 = vadd.xlane.f32.xlu0 %v1939_v25 }
 0x560   : > { %v5559_v26 = vpop.eup %4329 }
 0x561   : > { %v2060_v27 = vsel %vm1745_vm6, %v5559_v26, 0.0 }
 0x562   : > { %2061 = vadd.xlane.f32.xlu0 %v2060_v27 }
 0x564   : > { %v5563_v28 = vpop.eup %4331 }
 0x565   : > { %v2181_v29 = vsel %vm1745_vm6, %v5563_v28, 0.0 }
 0x566   : > { %2182 = vadd.xlane.f32.xlu0 %v2181_v29 }
 0x5a1   : > { %v1754_v30 = vpop.xlane.xlu1 %1753 }
 0x5a2   : > { %4333 = vrcp.f32 %v1754_v30 }
 0x5a5   : > { %v1875_v31 = vpop.xlane.xlu1 %1874 }
 0x5a6   : > { %4335 = vrcp.f32 %v1875_v31 }
 0x5a9   : > { %v1996_v32 = vpop.xlane.xlu1 %1995 }
 0x5aa   : > { %4337 = vrcp.f32 %v1996_v32 }
 0x5af   : > { %v4334_v33 = vpop.eup %4333 }
 0x5b0   : > { %v1756_v34 = vmul.f32 %v4334_v33, %v4318_v61  ;;  %v4230_v61 = vld [vmem:[%s5293_s23 + $0x30] sm:$0xff]  }
 0x5b1   : > { %3930 = vmatprep.subr.bf16.mxu0 %v4230_v61 }
 0x5b2   : > { %1759 = vperm.xlu1 %4176, %v1756_v34   ;;  %1764 = vperm.xlu0 %4177, %v1756_v34  }
 0x5b3   : > { %v4336_v35 = vpop.eup %4335  ;;  %3931 = vmatpush3.bf16.msra.mxu0 %v4230_v61 }
 0x5b4   : > { %v1877_v36 = vmul.f32 %v4336_v35, %v4320_v62  ;;  %3932 = vmatprep.subr.bf16.mxu0 %v4231_v4  ;;  %v4232_v62 = vld [vmem:[%s5293_s23 + $0x20] sm:$0xff]  }
 0x5b6   : > { %1880 = vperm.xlu1 %4176, %v1877_v36  }
 0x5b7   : > { %v4338_v38 = vpop.eup %4337  ;;  %3933 = vmatpush3.bf16.msra.mxu0 %v4231_v4 }
 0x5b8   : > { %v1998_v39 = vmul.f32 %v4338_v38, %v4322_v1  ;;  %3934 = vmatprep.subr.bf16.mxu0 %v4232_v62  ;;  %v4236_v1 = vld [vmem:[%s5293_s23] sm:$0xff]   ;;  %s6007_s23 = sld [smem:[#allocation56_spill]] }
 0x5b9   : > { %v2117_v37 = vpop.xlane.xlu1 %2116 }
 0x5ba   : > { %4339 = vrcp.f32 %v2117_v37  ;;  %4178 = vset.pattern.permute.xlu1 %v4907_v60 }
 0x5bb   : > { %1885 = vperm.xlu1 %4178, %v1877_v36   ;;  %3935 = vmatpush3.bf16.msra.mxu0 %v4232_v62 }
 0x5bc   : > { %3936 = vmatprep.subr.bf16.mxu0 %v4233_v63 }
 0x5be   : > { %s6008_s26 = scalar_lea.vmem %s6007_s23, %s5309_s19 }
 0x5bf   : > { %4179 = vset.pattern.permute.xlu1 %v4905_v48  ;;  %3937 = vmatpush3.bf16.msra.mxu0 %v4233_v63 }
 0x5c0   : > { %2001 = vperm.xlu1 %4179, %v1998_v39   ;;  %3938 = vmatprep.subr.bf16.mxu0 %v4234_v47 }
 0x5c3   : > { %3939 = vmatpush3.bf16.msra.mxu0 %v4234_v47 }
 0x5c4   : > { %4180 = vset.pattern.permute.xlu1 %v4907_v60  ;;  %3940 = vmatprep.subr.bf16.mxu0 %v4235_v0 }
 0x5c5   : > { %2006 = vperm.xlu1 %4180, %v1998_v39  }
 0x5c7   : > { %v4340_v40 = vpop.eup %4339  ;;  %3941 = vmatpush3.bf16.msra.mxu0 %v4235_v0 }
 0x5c8   : > { %v5570_v41 = vmul.f32 %v4340_v40, %v4324_v3  ;;  %3942 = vmatprep.subr.bf16.mxu0 %v4236_v1 }
 0x5c9   : > { %4181 = vset.pattern.permute.xlu1 %v4905_v48 }
 0x5ca   : > { %2122 = vperm.xlu1 %4181, %v5570_v41   ;;  %2127 = vperm.xlu0 %4177, %v5570_v41  }
 0x5cb   : > { %3943 = vmatpush3.bf16.msra.mxu0 %v4236_v1 }
 0x5ce   : > { %4183 = vset.pattern.permute.xlu1 %v4908_v42  ;;  %4182 = vset.pattern.permute.xlu0 %v4908_v42 }
 0x5cf   : > { %1891 = vperm.xlu1 %4183, %v1877_v36   ;;  %1770 = vperm.xlu0 %4182, %v1756_v34  }
 0x5d3   : > { %2012 = vperm.xlu1 %4183, %v1998_v39   ;;  %4185 = vset.pattern.permute.xlu0 %v4909_v43 }
 0x5d4   : > { %2018 = vperm.xlu0 %4185, %v1998_v39  }
 0x5d7   : > { %2133 = vperm.xlu1 %4183, %v5570_v41  }
 0x5d8   : > { %4190 = vset.pattern.permute.xlu0 %v4905_v48 }
 0x5db   : > { %4184 = vset.pattern.permute.xlu1 %v4909_v43 }
 0x5dc   : > { %1776 = vperm.xlu1 %4184, %v1756_v34  }
 0x5e0   : > { %1897 = vperm.xlu1 %4184, %v1877_v36  }
 0x5e3   : > { %v1820_v44 = vpop.xlane.xlu0 %1819 }
 0x5e4   : > { %4341 = vrcp.f32 %v1820_v44  ;;  %4186 = vset.pattern.permute.xlu1 %v4905_v48 }
 0x5e7   : > { %v1941_v45 = vpop.xlane.xlu0 %1940 }
 0x5e8   : > { %4343 = vrcp.f32 %v1941_v45 }
 0x5eb   : > { %v2062_v46 = vpop.xlane.xlu0 %2061 }
 0x5ec   : > { %4345 = vrcp.f32 %v2062_v46 }
 0x5ef   : > { %v2183_v51 = vpop.xlane.xlu0 %2182 }
 0x5f0   : > { %4347 = vrcp.f32 %v2183_v51 }
 0x5f1   : > { %v4342_v49 = vpop.eup %4341 }
 0x5f2   : > { %v1822_v50 = vmul.f32 %v4342_v49, %v4326_v22 }
 0x5f4   : > { %1825 = vperm.xlu1 %4186, %v1822_v50  }
 0x5f5   : > { %v4344_v52 = vpop.eup %4343 }
 0x5f6   : > { %v1943_v56 = vmul.f32 %v4344_v52, %v5555_v24 }
 0x5f8   : > { %4187 = vset.pattern.permute.xlu1 %v4907_v60 }
 0x5f9   : > { %v4346_v54 = vpop.eup %4345  ;;  %1830 = vperm.xlu1 %4187, %v1822_v50  }
 0x5fa   : > { %v2064_v55 = vmul.f32 %v4346_v54, %v5559_v26 }
 0x5fc   : > { %2067 = vperm.xlu0 %4190, %v2064_v55  }
 0x5fd   : > { %4188 = vset.pattern.permute.xlu1 %v4905_v48  ;;  %v4348_v57 = vpop.eup %4347 }
 0x5fe   : > { %1946 = vperm.xlu1 %4188, %v1943_v56   ;;  %v2185_v58 = vmul.f32 %v4348_v57, %v5563_v28 }
 0x600   : > { %4194 = vset.pattern.permute.xlu0 %v4908_v42 }
 0x601   : > { %1957 = vperm.xlu0 %4194, %v1943_v56  }
 0x602   : > { %4189 = vset.pattern.permute.xlu1 %v4907_v60 }
 0x603   : > { %1951 = vperm.xlu1 %4189, %v1943_v56  }
 0x605   : > { %2078 = vperm.xlu0 %4194, %v2064_v55  }
 0x607   : > { %2072 = vperm.xlu1 %4189, %v2064_v55  }
 0x609   : > { %2199 = vperm.xlu0 %4194, %v2185_v58  }
 0x60b   : > { %4191 = vset.pattern.permute.xlu1 %v4905_v48 }
 0x60c   : > { %2188 = vperm.xlu1 %4191, %v2185_v58  }
 0x60d   : > { %4195 = vset.pattern.permute.xlu0 %v4909_v43 }
 0x60e   : > { %1842 = vperm.xlu0 %4195, %v1822_v50  }
 0x610   : > { %4192 = vset.pattern.permute.xlu1 %v4907_v60  ;;  %v1487_v60 = vsub.s32 2, %v5393_v6 }
 0x611   : > { %2193 = vperm.xlu1 %4192, %v2185_v58  }
 0x612   : > { %2139 = vperm.xlu0 %4195, %v5570_v41   ;;  %v1488_v11 = vrot.slane %v5398_v9, %v1487_v60 }
 0x614   : > { %v5599_v14 = vadd.f32 %v1707_v2, %v1488_v11  ;;  %v1711_v10 = vadd.f32 %v1710_v13, %v1488_v11  ;;  %v1716_v44 = vadd.f32 %v3926_v53, %v1488_v11  ;;  %v1719_v52 = vadd.f32 %v3927_v5, %v1488_v11 }
 0x615   : > { %4193 = vset.pattern.permute.xlu1 %v4908_v42 }
 0x616   : > { %1836 = vperm.xlu1 %4193, %v1822_v50  }
 0x61a   : > { %4196 = vset.pattern.permute.xlu1 %v4909_v43 }
 0x61b   : > { %1963 = vperm.xlu1 %4196, %v1943_v56  }
 0x61f   : > { %2084 = vperm.xlu1 %4196, %v2064_v55  }
 0x623   : > { %2205 = vperm.xlu1 %4196, %v2185_v58  }
 0x62d   : > { %v1760_v3 = vpop.permute.xlu1 %1759  ;;  %v1765_v28 = vpop.permute.xlu0 %1764 }
 0x62e   : > { %v1762_v49 = vmul.f32 %v1760_v3, %v5599_v14  ;;  %v1767_v50 = vmul.f32 %v1765_v28, %v1711_v10 }
 0x630   : > { %v1768_v62 = vadd.f32 %v1767_v50, %v1762_v49 }
 0x631   : > { %v1881_v12 = vpop.permute.xlu1 %1880 }
 0x632   : > { %v1883_v16 = vmul.f32 %v1881_v12, %v5599_v14 }
 0x636   : > { %v1886_v15 = vpop.permute.xlu1 %1885 }
 0x637   : > { %v1888_v17 = vmul.f32 %v1886_v15, %v1711_v10 }
 0x639   : > { %v1889_v18 = vadd.f32 %v1888_v17, %v1883_v16 }
 0x63b   : > { %v2002_v19 = vpop.permute.xlu1 %2001 }
 0x63c   : > { %v2004_v21 = vmul.f32 %v2002_v19, %v5599_v14 }
 0x640   : > { %v2007_v20 = vpop.permute.xlu1 %2006 }
 0x641   : > { %v2009_v22 = vmul.f32 %v2007_v20, %v1711_v10 }
 0x643   : > { %v5603_v23 = vadd.f32 %v2009_v22, %v2004_v21 }
 0x645   : > { %v2123_v24 = vpop.permute.xlu1 %2122  ;;  %v2128_v29 = vpop.permute.xlu0 %2127 }
 0x646   : > { %v2125_v19 = vmul.f32 %v2123_v24, %v5599_v14  ;;  %v2130_v20 = vmul.f32 %v2128_v29, %v1711_v10 }
 0x64a   : > { %v1892_v25 = vpop.permute.xlu1 %1891  ;;  %v1771_v32 = vpop.permute.xlu0 %1770 }
 0x64b   : > { %v1894_v56 = vmul.f32 %v1892_v25, %v1716_v44  ;;  %v1773_v57 = vmul.f32 %v1771_v32, %v1716_v44 }
 0x64d   : > { %v1895_v3 = vadd.f32 %v1894_v56, %v1889_v18  ;;  %v1774_v12 = vadd.f32 %v1773_v57, %v1768_v62 }
 0x64e   : > { %v2013_v9 = vpop.permute.xlu1 %2012 }
 0x64f   : > { %v2019_v34 = vpop.permute.xlu0 %2018  ;;  %v2015_v21 = vmul.f32 %v2013_v9, %v1716_v44 }
 0x650   : > { %v2021_v24 = vmul.f32 %v2019_v34, %v1719_v52 }
 0x651   : > { %v2016_v9 = vadd.f32 %v2015_v21, %v5603_v23 }
 0x652   : > { %v2134_v26 = vpop.permute.xlu1 %2133 }
 0x653   : > { %v2022_v49 = vadd.f32 %v2021_v24, %v2016_v9  ;;  %v4254_v24 = vld [vmem:[%s5299_s8 + $0xac] ss:$16 sps:$4 sm:$0xff]   ;;  %v4252_v9 = vld [vmem:[%s5299_s8 + $0xa8] ss:$16 sps:$4 sm:$0xff]  }
 0x657   : > { %v1777_v27 = vpop.permute.xlu1 %1776 }
 0x658   : > { %v1779_v63 = vmul.f32 %v1777_v27, %v1719_v52 }
 0x65a   : > { %v1780_v22 = vadd.f32 %v1779_v63, %v1774_v12  ;;  %v4398_v63 = vld [vmem:[#allocation2] sm:$0xff] }
 0x65b   : > { %v1898_v30 = vpop.permute.xlu1 %1897  ;;  %v4239_v12 = vld [vmem:[%s5299_s8 + $0xe4] ss:$16 sps:$4 sm:$0xff]  }
 0x65c   : > { %v1900_v0 = vmul.f32 %v1898_v30, %v1719_v52  ;;  %2620 = vmatprep.subr.bf16.mxu1 %v4239_v12 }
 0x65e   : > { %v1901_v25 = vadd.f32 %v1900_v0, %v1895_v3  ;;  %v4399_v0 = vld [vmem:[#allocation2 + $0x18] sm:$0xff] }
 0x65f   : > { %v4237_v3 = vld [vmem:[%s5299_s8 + $0xe0] ss:$16 sps:$4 sm:$0xff]  }
 0x660   : > { %2621 = vmatpush1.bf16.msra.mxu1 %v4237_v3 }
 0x66f   : > { %v1826_v31 = vpop.permute.xlu1 %1825 }
 0x670   : > { %v1828_v51 = vmul.f32 %v1826_v31, %v5599_v14  ;;  %v2136_v31 = vmul.f32 %v2134_v26, %v1716_v44 }
 0x674   : > { %v1831_v33 = vpop.permute.xlu1 %1830 }
 0x675   : > { %v1833_v45 = vmul.f32 %v1831_v33, %v1711_v10 }
 0x677   : > { %v2068_v36 = vpop.permute.xlu0 %2067  ;;  %v1834_v59 = vadd.f32 %v1833_v45, %v1828_v51 }
 0x678   : > { %v2070_v5 = vmul.f32 %v2068_v36, %v5599_v14 }
 0x679   : > { %v1947_v35 = vpop.permute.xlu1 %1946 }
 0x67a   : > { %v1949_v54 = vmul.f32 %v1947_v35, %v5599_v14 }
 0x67c   : > { %v1958_v38 = vpop.permute.xlu0 %1957 }
 0x67d   : > { %v1960_v1 = vmul.f32 %v1958_v38, %v1716_v44 }
 0x67e   : > { %v1952_v37 = vpop.permute.xlu1 %1951 }
 0x67f   : > { %v1954_v46 = vmul.f32 %v1952_v37, %v1711_v10 }
 0x680   : > { %v2079_v40 = vpop.permute.xlu0 %2078 }
 0x681   : > { %v1955_v4 = vadd.f32 %v1954_v46, %v1949_v54  ;;  %v2081_v18 = vmul.f32 %v2079_v40, %v1716_v44 }
 0x682   : > { %v2073_v39 = vpop.permute.xlu1 %2072 }
 0x683   : > { %v2075_v53 = vmul.f32 %v2073_v39, %v1711_v10  ;;  %v1961_v16 = vadd.f32 %v1960_v1, %v1955_v4  ;;  %v2131_v39 = vadd.f32 %v2130_v20, %v2125_v19 }
 0x684   : > { %v2200_v42 = vpop.permute.xlu0 %2199 }
 0x685   : > { %v2076_v27 = vadd.f32 %v2075_v53, %v2070_v5  ;;  %v2202_v29 = vmul.f32 %v2200_v42, %v1716_v44  ;;  %v2137_v26 = vadd.f32 %v2136_v31, %v2131_v39  ;;  %v3671_v42 = vld [vmem:[%s6008_s26] ss:$0 sm:$0xff]  ;;  %v4400_v53 = vld [vmem:[#allocation2 + $0x8] sm:$0xff]  ;;  %v4251_v39 = vld [vmem:[%s5299_s8 + $0xa4] ss:$16 sps:$4 sm:$0xff]  }
 0x686   : > { %v4240_v5 = vld [vmem:[%s5299_s8 + $0xe8] ss:$16 sps:$4 sm:$0xff]  }
 0x687   : > { %v2189_v41 = vpop.permute.xlu1 %2188  ;;  %v2082_v45 = vadd.f32 %v2081_v18, %v2076_v27 }
 0x688   : > { %v2191_v28 = vmul.f32 %v2189_v41, %v5599_v14 }
 0x689   : > { %v1843_v58 = vpop.permute.xlu0 %1842 }
 0x68a   : > { %v1845_v2 = vmul.f32 %v1843_v58, %v1719_v52 }
 0x68c   : > { %v2194_v43 = vpop.permute.xlu1 %2193 }
 0x68d   : > { %v2196_v13 = vmul.f32 %v2194_v43, %v1711_v10  ;;  %v2140_v32 = vpop.permute.xlu0 %2139 }
 0x68e   : > { %v2142_v43 = vmul.f32 %v2140_v32, %v1719_v52 }
 0x68f   : > { %v2197_v35 = vadd.f32 %v2196_v13, %v2191_v28 }
 0x690   : > { %v2143_v50 = vadd.f32 %v2142_v43, %v2137_v26  ;;  %v4260_v43 = vld [vmem:[%s5299_s8 + $0x8c] ss:$16 sps:$4 sm:$0xff]   ;;  %v4261_v26 = vld [vmem:[%s5299_s8 + $0x60] ss:$16 sps:$4 sm:$0xff]  }
 0x691   : > { %v1837_v55 = vpop.permute.xlu1 %1836  ;;  %v2203_v41 = vadd.f32 %v2202_v29, %v2197_v35  ;;  %v4245_v35 = vld [vmem:[%s5299_s8 + $0xc4] ss:$16 sps:$4 sm:$0xff]  }
 0x692   : > { %v1839_v61 = vmul.f32 %v1837_v55, %v1716_v44  ;;  %2622 = vmatprep.subr.bf16.mxu1 %v4245_v35  ;;  %v4257_v29 = vld [vmem:[%s5299_s8 + $0x84] ss:$16 sps:$4 sm:$0xff]  }
 0x694   : > { %v1840_v47 = vadd.f32 %v1839_v61, %v1834_v59  ;;  %v4397_v59 = vld [vmem:[#allocation2 + $0x10] sm:$0xff] }
 0x696   : > { %v1964_v11 = vpop.permute.xlu1 %1963  ;;  %v1846_v15 = vadd.f32 %v1845_v2, %v1840_v47 }
 0x697   : > { %v1966_v17 = vmul.f32 %v1964_v11, %v1719_v52  ;;  %v4242_v11 = vld [vmem:[%s5299_s8 + $0xec] ss:$16 sps:$4 sm:$0xff]  }
 0x698   : > { %v1847_v37 = vsel %vm1723_vm2, %v1780_v22, %v1846_v15  ;;  %2673 = vmatprep.subr.bf16.mxu0 %v4242_v11 }
 0x699   : > { %v1967_v30 = vadd.f32 %v1966_v17, %v1961_v16 }
 0x69a   : > { %v2085_v33 = vpop.permute.xlu1 %2084 }
 0x69b   : > { %v2087_v36 = vmul.f32 %v2085_v33, %v1719_v52  ;;  %v1968_v38 = vsel %vm1723_vm2, %v1901_v25, %v1967_v30 }
 0x69c   : > { %v2211_v10 = vpack.c.bf16 %v1968_v38, %v1847_v37  ;;  %v4243_v37 = vld [vmem:[%s5299_s8 + $0xc0] ss:$16 sps:$4 sm:$0xff]   ;;  %v4246_v38 = vld [vmem:[%s5299_s8 + $0xc8] ss:$16 sps:$4 sm:$0xff]  }
 0x69d   : > { %v2088_v40 = vadd.f32 %v2087_v36, %v2082_v45  ;;  %v4248_v36 = vld [vmem:[%s5299_s8 + $0xcc] ss:$16 sps:$4 sm:$0xff]   ;;  %2623 = vmatpush1.bf16.msra.mxu1 %v4243_v37  ;;  %v4255_v45 = vld [vmem:[%s5299_s8 + $0x80] ss:$16 sps:$4 sm:$0xff]  }
 0x69e   : > { %v2206_v14 = vpop.permute.xlu1 %2205  ;;  %3944 = vmatprep.mubr.bf16.mxu0 %v2211_v10  ;;  %v4249_v10 = vld [vmem:[%s5299_s8 + $0xa0] ss:$16 sps:$4 sm:$0xff]   ;;  %2624 = vmatprep.subr.bf16.mxu1 %v4251_v39  ;;  %v4286_v37 = vld [vmem:[%s5301_s13 + $0x38] sm:$0xff]  }
 0x69f   : > { %v2208_v46 = vmul.f32 %v2206_v14, %v1719_v52  ;;  %v2089_v54 = vsel %vm1723_vm2, %v2022_v49, %v2088_v40  ;;  %v4258_v14 = vld [vmem:[%s5299_s8 + $0x88] ss:$16 sps:$4 sm:$0xff]   ;;  %v4263_v40 = vld [vmem:[%s5299_s8 + $0x64] ss:$16 sps:$4 sm:$0xff]  }
 0x6a0   : > { %v4269_v49 = vld [vmem:[%s5299_s8 + $0x44] ss:$16 sps:$4 sm:$0xff]   ;;  %v5702_v39 = vld [vmem:[%s5301_s13 + $0xb8] sm:$0xff]  }
 0x6a1   : > { %v2209_v51 = vadd.f32 %v2208_v46, %v2203_v41  ;;  %2625 = vmatpush1.bf16.msra.mxu1 %v4249_v10  ;;  %v4264_v41 = vld [vmem:[%s5299_s8 + $0x68] ss:$16 sps:$4 sm:$0xff]   ;;  %v4266_v46 = vld [vmem:[%s5299_s8 + $0x6c] ss:$16 sps:$4 sm:$0xff]   ;;  %v5708_v10 = vld [vmem:[%s5301_s13 + $0xf0] sm:$0xff]  }
 0x6a2   : > { %2626 = vmatprep.subr.bf16.mxu1 %v4257_v29  ;;  %v4293_v29 = vld [vmem:[%s5301_s13 + $0x68] sm:$0xff]  }
 0x6a3   : > { %v2210_v34 = vsel %vm1723_vm2, %v2143_v50, %v2209_v51  ;;  %v4272_v50 = vld [vmem:[%s5299_s8 + $0x4c] ss:$16 sps:$4 sm:$0xff]   ;;  %v4267_v51 = vld [vmem:[%s5299_s8 + $0x40] ss:$16 sps:$4 sm:$0xff]  }
 0x6a4   : > { %v2212_v55 = vpack.c.bf16 %v2210_v34, %v2089_v54  ;;  %v4270_v54 = vld [vmem:[%s5299_s8 + $0x48] ss:$16 sps:$4 sm:$0xff]   ;;  %v4275_v34 = vld [vmem:[%s5299_s8 + $0x24] ss:$16 sps:$4 sm:$0xff]  }
 0x6a5   : > { %2627 = vmatpush1.bf16.msra.mxu1 %v4255_v45  ;;  %v5718_v45 = vld [vmem:[%s5301_s13 + $0xe8] sm:$0xff]  }
 0x6a6   : > { %3945 = vmatmul.mubr.bf16.vlgmr.msra.gmra.mxu0 %v2212_v55  ;;  %2628 = vmatprep.subr.bf16.mxu1 %v4263_v40  ;;  %v4278_v55 = vld [vmem:[%s5299_s8 + $0x2c] ss:$16 sps:$4 sm:$0xff]   ;;  %v4298_v40 = vld [vmem:[%s5301_s13 + $0x20] sm:$0xff]  }
 0x6a7   : > { %2705 = vmatprep.mubr.bf16.mxu0 %v4905_v48  ;;  %2674 = vmatpush1.bf16.msra.mxu0 %v4240_v5 }
 0x6a8   : > { %2675 = vmatprep.subr.bf16.mxu0 %v4248_v36 }
 0x6a9   : > { %2629 = vmatpush1.bf16.msra.mxu1 %v4261_v26  ;;  %v4297_v26 = vld [vmem:[%s5301_s13 + $0x60] sm:$0xff]  }
 0x6aa   : > { %2630 = vmatprep.subr.bf16.mxu1 %v4269_v49  ;;  %v4301_v49 = vld [vmem:[%s5301_s13 + $0x58] sm:$0xff]  }
 0x6ab   : > { %2676 = vmatpush1.bf16.msra.mxu0 %v4246_v38  ;;  %v4287_v38 = vld [vmem:[%s5301_s13 + $0xf8] sm:$0xff]  }
 0x6ac   : > { %2677 = vmatprep.subr.bf16.mxu0 %v4254_v24  ;;  %v4290_v24 = vld [vmem:[%s5301_s13 + $0x30] sm:$0xff]  }
 0x6ad   : > { %2631 = vmatpush1.bf16.msra.mxu1 %v4267_v51  ;;  %v5738_v51 = vld [vmem:[%s5301_s13 + $0xd8] sm:$0xff]  }
 0x6ae   : > { %2632 = vmatprep.subr.bf16.mxu1 %v4275_v34  ;;  %v4305_v34 = vld [vmem:[%s5301_s13 + $0x50] sm:$0xff]  }
 0x6af   : > { %2678 = vmatpush1.bf16.msra.mxu0 %v4252_v9  ;;  %v5711_v9 = vld [vmem:[%s5301_s13 + $0xb0] sm:$0xff]  }
 0x6b0   : > { %2679 = vmatprep.subr.bf16.mxu0 %v4260_v43  ;;  %v4294_v43 = vld [vmem:[%s5301_s13 + $0x28] sm:$0xff]  }
 0x6b3   : > { %2680 = vmatpush1.bf16.msra.mxu0 %v4258_v14  ;;  %v5721_v14 = vld [vmem:[%s5301_s13 + $0xa8] sm:$0xff]  }
 0x6b4   : > { %2681 = vmatprep.subr.bf16.mxu0 %v4266_v46  ;;  %v5731_v46 = vld [vmem:[%s5301_s13 + $0xa0] sm:$0xff]  }
 0x6b7   : > { %2682 = vmatpush1.bf16.msra.mxu0 %v4264_v41  ;;  %v5728_v41 = vld [vmem:[%s5301_s13 + $0xe0] sm:$0xff]  }
 0x6b8   : > { %2683 = vmatprep.subr.bf16.mxu0 %v4272_v50  ;;  %v4302_v50 = vld [vmem:[%s5301_s13 + $0x18] sm:$0xff]  }
 0x6bb   : > { %2684 = vmatpush1.bf16.msra.mxu0 %v4270_v54  ;;  %v5741_v54 = vld [vmem:[%s5301_s13 + $0x98] sm:$0xff]  }
 0x6bc   : > { %2685 = vmatprep.subr.bf16.mxu0 %v4278_v55  ;;  %v4306_v55 = vld [vmem:[%s5301_s13 + $0x10] sm:$0xff]  }
 0x766   : > { %v3946_v23 = vpop.f32.mrf.mxu0 }
 0x767   : > { %v2327_v57 = vadd.f32 %v3946_v23, %v3671_v42  ;;  %v4273_v23 = vld [vmem:[%s5299_s8 + $0x20] ss:$16 sps:$4 sm:$0xff]  }
 0x768   : > { %v2318_v44 = vpop.f32.mrf.mxu0  ;;  %2633 = vmatpush1.bf16.msra.mxu1 %v4273_v23  ;;  %v5748_v23 = vld [vmem:[%s5301_s13 + $0xd0] sm:$0xff]  }
 0x769   : > { %v2319_v56 = vadd.f32 %v3671_v42, %v2318_v44  ;;  %v2335_v1 = vadd.f32 %v4399_v0, %v2327_v57  ;;  %v4281_v44 = vld [vmem:[%s5299_s8 + $0x4] ss:$16 sps:$4 sm:$0xff]   ;;  %v4282_v57 = vld [vmem:[%s5299_s8 + $0x8] ss:$16 sps:$4 sm:$0xff]  }
 0x76a   : > { %v3947_v52 = vpop.f32.mrf.mxu0  ;;  %2634 = vmatprep.subr.bf16.mxu1 %v4281_v44  ;;  %v4309_v44 = vld [vmem:[%s5301_s13 + $0x48] sm:$0xff]  }
 0x76b   : > { %v2333_v58 = vadd.f32 %v4397_v59, %v2319_v56  ;;  %v2330_v62 = vadd.f32 %v3947_v52, %v3671_v42  ;;  %v4284_v56 = vld [vmem:[%s5299_s8 + $0xc] ss:$16 sps:$4 sm:$0xff]   ;;  %v4279_v52 = vld [vmem:[%s5299_s8] ss:$16 sps:$4 sm:$0xff]  }
 0x76c   : > { %v2321_v61 = vpop.f32.mrf.mxu0  ;;  %2635 = vmatpush1.bf16.msra.mxu1 %v4279_v52  ;;  %v4285_v59 = vld [vmem:[%s5301_s13 + $0x78] sm:$0xff]   ;;  %v5758_v52 = vld [vmem:[%s5301_s13 + $0xc8] sm:$0xff]  }
 0x76d   : > { %v2322_v4 = vadd.f32 %v3671_v42, %v2321_v61  ;;  %2339 = vadd.xlane.f32.xlu0 %v2333_v58  ;;  %v2336_v2 = vadd.f32 %v4400_v53, %v2330_v62  ;;  %v4276_v42 = vld [vmem:[%s5299_s8 + $0x28] ss:$16 sps:$4 sm:$0xff]   ;;  %3800 = vmatprep.subr.bf16.mxu1 %v4285_v59  ;;  %v4313_v59 = vld [vmem:[%s5301_s13 + $0x40] sm:$0xff]  }
 0x76e   : > { %2686 = vmatpush1.bf16.msra.mxu0 %v4276_v42  ;;  %v5751_v42 = vld [vmem:[%s5301_s13 + $0x90] sm:$0xff]  }
 0x76f   : > { %v2334_v47 = vadd.f32 %v4398_v63, %v2322_v4  ;;  %2687 = vmatprep.subr.bf16.mxu0 %v4284_v56  ;;  %v4310_v56 = vld [vmem:[%s5301_s13 + $0x8] sm:$0xff]  }
 0x771   : > { %2341 = vadd.xlane.f32.xlu1 %v2334_v47  ;;  %2343 = vadd.xlane.f32.xlu0 %v2335_v1 }
 0x772   : > { %2688 = vmatpush1.bf16.msra.mxu0 %v4282_v57  ;;  %v5761_v57 = vld [vmem:[%s5301_s13 + $0x88] sm:$0xff]  }
 0x773   : > { %3828 = vmatprep.subr.bf16.mxu0 %v4287_v38 }
 0x775   : > { %2345 = vadd.xlane.f32.xlu0 %v2336_v2 }
 0x7f6   : > { %v2340_v13 = vpop.xlane.xlu0 %2339 }
 0x7f7   : > { %v2348_v15 = vmul.f32 0.0078125, %v2340_v13  ;;  %v3680_v13 = vld [vmem:[%s6010_s27] ss:$0 sm:$0xff] }
 0x7f9   : > { %v5626_v16 = vsub.f32 %v2333_v58, %v2348_v15 }
 0x7fa   : > { %v2342_v17 = vpop.xlane.xlu1 %2341  ;;  %v2344_v19 = vpop.xlane.xlu0 %2343 }
 0x7fb   : > { %v2349_v20 = vmul.f32 0.0078125, %v2342_v17  ;;  %v2350_v21 = vmul.f32 0.0078125, %v2344_v19  ;;  %v2356_v22 = vmul.f32 %v5626_v16, %v5626_v16 }
 0x7fd   : > { %v5630_v25 = vsub.f32 %v2334_v47, %v2349_v20  ;;  %v5632_v27 = vsub.f32 %v2335_v1, %v2350_v21  ;;  %2360 = vadd.xlane.f32.xlu1 %v2356_v22  ;;  %v3681_v21 = vld [vmem:[%s1096_s2] ss:$0 sm:$0xff] }
 0x7fe   : > { %v2346_v28 = vpop.xlane.xlu0 %2345 }
 0x7ff   : > { %v2351_v30 = vmul.f32 0.0078125, %v2346_v28  ;;  %v2357_v31 = vmul.f32 %v5630_v25, %v5630_v25  ;;  %v2358_v18 = vmul.f32 %v5632_v27, %v5632_v27 }
 0x801   : > { %v5638_v32 = vsub.f32 %v2336_v2, %v2351_v30  ;;  %2362 = vadd.xlane.f32.xlu0 %v2357_v31  ;;  %2364 = vadd.xlane.f32.xlu1 %v2358_v18 }
 0x803   : > { %v2359_v33 = vmul.f32 %v5638_v32, %v5638_v32 }
 0x805   : > { %2366 = vadd.xlane.f32.xlu0 %v2359_v33 }
 0x886   : > { %v2361_v58 = vpop.xlane.xlu1 %2360 }
 0x887   : > { %v2368_v61 = vmul.f32 0.0078125, %v2361_v58  ;;  %v4314_v58 = vld [vmem:[%s5301_s13] sm:$0xff]  }
 0x889   : > { %v2372_v4 = vadd.f32 1e-12, %v2368_v61  ;;  %v5768_v61 = vld [vmem:[%s5301_s13 + $0xc0] sm:$0xff]  }
 0x88a   : > { %v2365_v62 = vpop.xlane.xlu1 %2364  ;;  %v2363_v63 = vpop.xlane.xlu0 %2362 }
 0x88b   : > { %4349 = vrsqrt.f32 %v2372_v4  ;;  %v2370_v47 = vmul.f32 0.0078125, %v2365_v62  ;;  %v2369_v0 = vmul.f32 0.0078125, %v2363_v63  ;;  %v5771_v4 = vld [vmem:[%s5301_s13 + $0x80] sm:$0xff]   ;;  %v2454_v63 = vsub.s32 3, %v5393_v6 }
 0x88c   : > { %v2438_v62 = vld [vmem:[%s5327_s17] sm:$0xf] }
 0x88d   : > { %v2373_v1 = vadd.f32 1e-12, %v2369_v0  ;;  %v2374_v53 = vadd.f32 1e-12, %v2370_v47  ;;  %v2443_v47 = vrot.slane %v2438_v62, %v1479_v7  ;;  %v5781_v0 = vrot.slane %v2438_v62, %v1487_v60 }
 0x88e   : > { %v2367_v2 = vpop.xlane.xlu0 %2366 }
 0x88f   : > { %v2371_v3 = vmul.f32 0.0078125, %v2367_v2  ;;  %4351 = vrsqrt.f32 %v2373_v1  ;;  %v2447_v2 = vrot.slane %v2438_v62, %v1483_v8 }
 0x890   : > { %4353 = vrsqrt.f32 %v2374_v53 }
 0x891   : > { %v2375_v12 = vadd.f32 1e-12, %v2371_v3  ;;  %v2455_v3 = vrot.slane %v2438_v62, %v2454_v63 }
 0x893   : > { %4355 = vrsqrt.f32 %v2375_v12 }
 0x898   : > { %v4350_v5 = vpop.eup %4349 }
 0x899   : > { %v2380_v11 = vmul.f32 %v4350_v5, %v5626_v16 }
 0x89b   : > { %v2390_v19 = vmul.f32 %v3680_v13, %v2380_v11 }
 0x89c   : > { %v4352_v15 = vpop.eup %4351 }
 0x89d   : > { %v2381_v17 = vmul.f32 %v4352_v15, %v5630_v25  ;;  %v4354_v20 = vpop.eup %4353  ;;  %v5684_v16 = vadd.f32 %v3681_v21, %v2390_v19 }
 0x89e   : > { %v2382_v25 = vmul.f32 %v4354_v20, %v5632_v27 }
 0x89f   : > { %v2391_v28 = vmul.f32 %v3680_v13, %v2381_v17 }
 0x8a0   : > { %v4356_v22 = vpop.eup %4355  ;;  %v2392_v35 = vmul.f32 %v3680_v13, %v2382_v25 }
 0x8a1   : > { %v2383_v30 = vmul.f32 %v4356_v22, %v5638_v32  ;;  %v5686_v31 = vadd.f32 %v3681_v21, %v2391_v28 }
 0x8a2   : > { %v5695_v36 = vadd.f32 %v3681_v21, %v2392_v35 }
 0x8a3   : > { %v2404_v18 = vpack.c.bf16 %v5686_v31, %v5684_v16  ;;  %v2393_v33 = vmul.f32 %v3680_v13, %v2383_v30 }
 0x8a5   : > { %2653 = vmatmul.mubr.bf16.vlgmr.msra.gmra.mxu1 %v2404_v18  ;;  %2706 = vmatmul.mubr.bf16.vlgmr.msra.gmra.mxu0 %v2404_v18  ;;  %v5693_v32 = vadd.f32 %v3681_v21, %v2393_v33 }
 0x8a6   : > { %2662 = vmatprep.mubr.bf16.mxu1 %v4905_v48  ;;  %2715 = vmatprep.mubr.bf16.mxu0 %v4905_v48  ;;  %v4289_v48 = vld [vmem:[%s5301_s13 + $0x70] sm:$0xff]  }
 0x8a7   : > { %v2405_v27 = vpack.c.bf16 %v5693_v32, %v5695_v36  ;;  %3801 = vmatpush3.bf16.msra.mxu1 %v4286_v37  ;;  %3829 = vmatpush3.bf16.msra.mxu0 %v5702_v39 }
 0x8a8   : > { %3802 = vmatprep.subr.bf16.mxu1 %v4289_v48  ;;  %3830 = vmatprep.subr.bf16.mxu0 %v5708_v10 }
 0x8ab   : > { %3803 = vmatpush3.bf16.msra.mxu1 %v4290_v24  ;;  %3831 = vmatpush3.bf16.msra.mxu0 %v5711_v9 }
 0x8ac   : > { %3804 = vmatprep.subr.bf16.mxu1 %v4293_v29  ;;  %3832 = vmatprep.subr.bf16.mxu0 %v5718_v45 }
 0x8ad   : > { %2663 = vmatmul.mubr.bf16.gmra.mxu1 %v2405_v27  ;;  %2716 = vmatmul.mubr.bf16.gmra.mxu0 %v2405_v27 }
 0x8af   : > { %3805 = vmatpush3.bf16.msra.mxu1 %v4294_v43  ;;  %3833 = vmatpush3.bf16.msra.mxu0 %v5721_v14 }
 0x8b0   : > { %3806 = vmatprep.subr.bf16.mxu1 %v4297_v26  ;;  %3834 = vmatprep.subr.bf16.mxu0 %v5728_v41 }
 0x8b3   : > { %3807 = vmatpush3.bf16.msra.mxu1 %v4298_v40  ;;  %3835 = vmatpush3.bf16.msra.mxu0 %v5731_v46 }
 0x8b4   : > { %3808 = vmatprep.subr.bf16.mxu1 %v4301_v49  ;;  %3836 = vmatprep.subr.bf16.mxu0 %v5738_v51 }
 0x8b7   : > { %3809 = vmatpush3.bf16.msra.mxu1 %v4302_v50  ;;  %3837 = vmatpush3.bf16.msra.mxu0 %v5741_v54 }
 0x8b8   : > { %3810 = vmatprep.subr.bf16.mxu1 %v4305_v34  ;;  %3838 = vmatprep.subr.bf16.mxu0 %v5748_v23 }
 0x8bb   : > { %3811 = vmatpush3.bf16.msra.mxu1 %v4306_v55  ;;  %3839 = vmatpush3.bf16.msra.mxu0 %v5751_v42 }
 0x8bc   : > { %3812 = vmatprep.subr.bf16.mxu1 %v4309_v44  ;;  %3840 = vmatprep.subr.bf16.mxu0 %v5758_v52 }
 0x8bf   : > { %3813 = vmatpush3.bf16.msra.mxu1 %v4310_v56  ;;  %3841 = vmatpush3.bf16.msra.mxu0 %v5761_v57 }
 0x8c0   : > { %3814 = vmatprep.subr.bf16.mxu1 %v4313_v59  ;;  %3842 = vmatprep.subr.bf16.mxu0 %v5768_v61 }
 0x8c3   : > { %3815 = vmatpush3.bf16.msra.mxu1 %v4314_v58  ;;  %3843 = vmatpush3.bf16.msra.mxu0 %v5771_v4 }
 0x8c4   : > { %3948 = vmatprep.subr.bf16.mxu1 %v4287_v38 }
 0x965   : > { %v2654_v1 = vpop.f32.mrf.mxu1  ;;  %v2707_v53 = vpop.f32.mrf.mxu0 }
 0x966   : > { %v2655_v12 = vadd.f32 %v2654_v1, %v2443_v47  ;;  %v5786_v5 = vadd.f32 %v2707_v53, %v5781_v0 }
 0x967   : > { %v2656_v11 = vpop.f32.mrf.mxu1  ;;  %v2709_v13 = vpop.f32.mrf.mxu0 }
 0x968   : > { %v2742_v15 = vmul.f32 0.70710677, %v2655_v12  ;;  %v2744_v17 = vmul.f32 0.70710677, %v5786_v5  ;;  %v2657_v7 = vadd.f32 %v2656_v11, %v2447_v2  ;;  %v5789_v19 = vadd.f32 %v2709_v13, %v2455_v3 }
 0x969   : > { %v2658_v60 = vpop.f32.mrf.mxu1  ;;  %v2711_v20 = vpop.f32.mrf.mxu0 }
 0x96a   : > { %v2659_v21 = vadd.f32 %v2658_v60, %v2443_v47  ;;  %v2712_v22 = vadd.f32 %v2711_v20, %v5781_v0  ;;  %4357 = verf.f32 %v2742_v15  ;;  %v2743_v6 = vmul.f32 0.70710677, %v2657_v7 }
 0x96b   : > { %v2660_v8 = vpop.f32.mrf.mxu1  ;;  %v2713_v28 = vpop.f32.mrf.mxu0  ;;  %4359 = verf.f32 %v2744_v17  ;;  %v2745_v30 = vmul.f32 0.70710677, %v5789_v19 }
 0x96c   : > { %v2746_v25 = vmul.f32 0.70710677, %v2659_v21  ;;  %4361 = verf.f32 %v2743_v6  ;;  %v2748_v18 = vmul.f32 0.70710677, %v2712_v22  ;;  %v2661_v33 = vadd.f32 %v2660_v8, %v2447_v2 }
 0x96d   : > { %v2714_v35 = vadd.f32 %v2713_v28, %v2455_v3  ;;  %v2664_v27 = vpop.f32.mrf.mxu1  ;;  %v5793_v37 = vpop.f32.mrf.mxu0  ;;  %4363 = verf.f32 %v2745_v30  ;;  %v2726_v6 = vmul.f32 0.5, %v2655_v12  ;;  %v2727_v8 = vmul.f32 0.5, %v2657_v7 }
 0x96e   : > { %v5795_v38 = vadd.f32 %v2664_v27, %v2443_v47  ;;  %4365 = verf.f32 %v2746_v25  ;;  %v2747_v48 = vmul.f32 0.70710677, %v2661_v33  ;;  %v2728_v12 = vmul.f32 0.5, %v5786_v5 }
 0x96f   : > { %v2666_v24 = vpop.f32.mrf.mxu1  ;;  %v2719_v29 = vpop.f32.mrf.mxu0  ;;  %4367 = verf.f32 %v2748_v18  ;;  %v2749_v43 = vmul.f32 0.70710677, %v2714_v35  ;;  %v2730_v18 = vmul.f32 0.5, %v2659_v21 }
 0x970   : > { %4369 = verf.f32 %v2747_v48  ;;  %v2750_v26 = vmul.f32 0.70710677, %v5795_v38  ;;  %v5798_v40 = vadd.f32 %v2666_v24, %v2447_v2  ;;  %v5800_v34 = vadd.f32 %v2719_v29, %v2455_v3 }
 0x971   : > { %v2668_v49 = vpop.f32.mrf.mxu1  ;;  %v2721_v50 = vpop.f32.mrf.mxu0  ;;  %4371 = verf.f32 %v2749_v43  ;;  %v2732_v29 = vmul.f32 0.5, %v2712_v22  ;;  %v2731_v43 = vmul.f32 0.5, %v2661_v33 }
 0x972   : > { %v5802_v55 = vadd.f32 %v2668_v49, %v2443_v47  ;;  %v2751_v44 = vmul.f32 0.70710677, %v5798_v40  ;;  %v2753_v58 = vmul.f32 0.70710677, %v5800_v34  ;;  %4373 = verf.f32 %v2750_v26 }
 0x973   : > { %v2670_v56 = vpop.f32.mrf.mxu1  ;;  %v2723_v59 = vpop.f32.mrf.mxu0  ;;  %v2729_v49 = vmul.f32 0.5, %v5789_v19 }
 0x974   : > { %v2754_v62 = vmul.f32 0.70710677, %v5802_v55  ;;  %4375 = verf.f32 %v2751_v44  ;;  %v5807_v63 = vadd.f32 %v2670_v56, %v2447_v2  ;;  %v5809_v1 = vadd.f32 %v2723_v59, %v2455_v3 }
 0x975   : > { %v2733_v56 = vmul.f32 0.5, %v2714_v35  ;;  %v2722_v35 = vadd.f32 %v2721_v50, %v5781_v0 }
 0x976   : > { %4377 = verf.f32 %v2754_v62  ;;  %v2755_v47 = vmul.f32 0.70710677, %v5807_v63  ;;  %v2757_v13 = vmul.f32 0.70710677, %v5809_v1 }
 0x977   : > { %v4358_v53 = vpop.eup %4357  ;;  %4379 = verf.f32 %v2753_v58 }
 0x978   : > { %v4360_v11 = vpop.eup %4359  ;;  %4381 = verf.f32 %v2755_v47  ;;  %v2774_v30 = vadd.f32 1.0, %v4358_v53 }
 0x979   : > { %v4362_v15 = vpop.eup %4361  ;;  %4383 = verf.f32 %v2757_v13  ;;  %v2776_v24 = vadd.f32 1.0, %v4360_v11 }
 0x97a   : > { %v4364_v17 = vpop.eup %4363  ;;  %v2775_v2 = vadd.f32 1.0, %v4362_v15  ;;  %v2790_v53 = vmul.f32 %v2774_v30, %v2726_v6  ;;  %v2734_v6 = vmul.f32 0.5, %v5795_v38  ;;  %v2738_v30 = vmul.f32 0.5, %v5802_v55 }
 0x97b   : > { %v4366_v60 = vpop.eup %4365  ;;  %v2777_v25 = vadd.f32 1.0, %v4364_v17  ;;  %v2792_v17 = vmul.f32 %v2776_v24, %v2728_v12  ;;  %v2756_v38 = vmul.f32 0.70710677, %v2722_v35 }
 0x97c   : > { %v4368_v20 = vpop.eup %4367  ;;  %v2778_v28 = vadd.f32 1.0, %v4366_v60  ;;  %v2791_v7 = vmul.f32 %v2775_v2, %v2727_v8 }
 0x97d   : > { %v4370_v3 = vpop.eup %4369  ;;  %v2780_v27 = vadd.f32 1.0, %v4368_v20  ;;  %v2793_v13 = vmul.f32 %v2777_v25, %v2729_v49  ;;  %4385 = verf.f32 %v2756_v38 }
 0x97e   : > { %v4372_v48 = vpop.eup %4371  ;;  %v2779_v26 = vadd.f32 1.0, %v4370_v3  ;;  %v2794_v44 = vmul.f32 %v2778_v28, %v2730_v18  ;;  %v2718_v3 = vadd.f32 %v5793_v37, %v5781_v0  ;;  %v2735_v18 = vmul.f32 0.5, %v5798_v40 }
 0x97f   : > { %v2781_v59 = vadd.f32 1.0, %v4372_v48  ;;  %v2796_v58 = vmul.f32 %v2780_v27, %v2732_v29  ;;  %v4374_v47 = vpop.eup %4373  ;;  %v2739_v27 = vmul.f32 0.5, %v5807_v63  ;;  %v2741_v29 = vmul.f32 0.5, %v5809_v1 }
 0x980   : > { %v2795_v62 = vmul.f32 %v2779_v26, %v2731_v43  ;;  %v2806_v33 = vpack.c.bf16 %v2794_v44, %v2790_v53  ;;  %v2782_v2 = vadd.f32 1.0, %v4374_v47  ;;  %v2737_v37 = vmul.f32 0.5, %v5800_v34 }
 0x981   : > { %v2797_v21 = vmul.f32 %v2781_v59, %v2733_v56  ;;  %v4376_v15 = vpop.eup %4375  ;;  %v2808_v19 = vpack.c.bf16 %v2796_v58, %v2792_v17  ;;  %v2752_v26 = vmul.f32 0.70710677, %v2718_v3  ;;  %v2740_v1 = vmul.f32 0.5, %v2722_v35 }
 0x982   : > { %v2807_v11 = vpack.c.bf16 %v2795_v62, %v2791_v7  ;;  %v2783_v5 = vadd.f32 1.0, %v4376_v15 }
 0x983   : > { %v4378_v22 = vpop.eup %4377  ;;  %v2809_v60 = vpack.c.bf16 %v2797_v21, %v2793_v13  ;;  %4387 = verf.f32 %v2752_v26 }
 0x984   : > { %v4380_v20 = vpop.eup %4379  ;;  %v2786_v28 = vadd.f32 1.0, %v4378_v22  ;;  %3109 = vmatprep.mubr.bf16.mxu1 %v2807_v11  ;;  %v2799_v0 = vmul.f32 %v2783_v5, %v2735_v18 }
 0x985   : > { %3158 = vmatprep.mubr.bf16.mxu0 %v2809_v60  ;;  %3110 = vmatmul.mubr.bf16.vlgmr.msra.gmra.mxu1 %v2806_v33  ;;  %v4382_v8 = vpop.eup %4381  ;;  %v2785_v50 = vadd.f32 1.0, %v4380_v20 }
 0x986   : > { %3956 = vmatpush3.bf16.msra.mxu1 %v5702_v39  ;;  %3159 = vmatmul.mubr.bf16.vlgmr.msra.gmra.mxu0 %v2808_v19  ;;  %v4384_v25 = vpop.eup %4383  ;;  %v2787_v48 = vadd.f32 1.0, %v4382_v8  ;;  %v2802_v24 = vmul.f32 %v2786_v28, %v2738_v30  ;;  %v2798_v39 = vmul.f32 %v2782_v2, %v2734_v6 }
 0x987   : > { %3949 = vmatprep.subr.bf16.mxu1 %v5708_v10  ;;  %v2789_v43 = vadd.f32 1.0, %v4384_v25  ;;  %v2801_v40 = vmul.f32 %v2785_v50, %v2737_v37 }
 0x988   : > { %v2803_v55 = vmul.f32 %v2787_v48, %v2739_v27  ;;  %v2810_v10 = vpack.c.bf16 %v2802_v24, %v2798_v39 }
 0x989   : > { %v2805_v49 = vmul.f32 %v2789_v43, %v2741_v29 }
 0x98a   : > { %3957 = vmatpush3.bf16.msra.mxu1 %v5711_v9  ;;  %v2811_v44 = vpack.c.bf16 %v2803_v55, %v2799_v0  ;;  %v4386_v9 = vpop.eup %4385 }
 0x98b   : > { %3950 = vmatprep.subr.bf16.mxu1 %v5718_v45  ;;  %v2813_v63 = vpack.c.bf16 %v2805_v49, %v2801_v40  ;;  %v2788_v34 = vadd.f32 1.0, %v4386_v9 }
 0x98c   : > { %3117 = vmatprep.mubr.bf16.mxu1 %v2811_v44 }
 0x98d   : > { %3118 = vmatmul.mubr.bf16.gmra.mxu1 %v2810_v10 }
 0x98e   : > { %3958 = vmatpush3.bf16.msra.mxu1 %v5721_v14  ;;  %3166 = vmatprep.mubr.bf16.mxu1 %v2813_v63 }
 0x98f   : > { %3951 = vmatprep.subr.bf16.mxu1 %v5728_v41  ;;  %v2736_v41 = vmul.f32 0.5, %v2718_v3 }
 0x990   : > { %v4388_v45 = vpop.eup %4387 }
 0x991   : > { %v2784_v14 = vadd.f32 1.0, %v4388_v45 }
 0x992   : > { %3959 = vmatpush3.bf16.msra.mxu1 %v5731_v46  ;;  %v2804_v46 = vmul.f32 %v2788_v34, %v2740_v1 }
 0x993   : > { %3952 = vmatprep.subr.bf16.mxu1 %v5738_v51  ;;  %v2800_v51 = vmul.f32 %v2784_v14, %v2736_v41  ;;  %v3747_v41 = vld [vmem:[%s1106_s16] ss:$0 sm:$0xff]  ;;  %s6015_s16 = sld [smem:[#allocation38_spill]] }
 0x996   : > { %3960 = vmatpush3.bf16.msra.mxu1 %v5741_v54  ;;  %v2812_v54 = vpack.c.bf16 %v2804_v46, %v2800_v51  ;;  %v3748_v51 = vld [vmem:[%s1109_s22] ss:$0 sm:$0xff] }
 0x997   : > { %3953 = vmatprep.subr.bf16.mxu1 %v5748_v23 }
 0x999   : > { %p3749_p12 = scmp.ne.s32.totalorder %s6015_s16, 1 }
 0x99a   : > { %3961 = vmatpush3.bf16.msra.mxu1 %v5751_v42  ;;  %v3714_v42 = vld [vmem:[%s1103_s11] ss:$0 sm:$0xff] }
 0x99b   : > { %3954 = vmatprep.subr.bf16.mxu1 %v5758_v52 }
 0x99e   : > { %3962 = vmatpush3.bf16.msra.mxu1 %v5761_v57 }
 0x99f   : > { %3955 = vmatprep.subr.bf16.mxu1 %v5768_v61 }
 0x9a2   : > { %3963 = vmatpush3.bf16.msra.mxu1 %v5771_v4 }
 0x9a5   : > { %3167 = vmatmul.mubr.bf16.vlgmr.msra.gmra.mxu1 %v2812_v54 }
 0xa45   : > { %v3816_v23 = vpop.f32.mrf.mxu1 }
 0xa46   : > { %v3844_v56 = vpop.f32.mrf.mxu0 }
 0xa47   : > { %v3817_v52 = vpop.f32.mrf.mxu1 }
 0xa48   : > { %v3818_v59 = vadd.f32 %v3817_v52, %v3816_v23  ;;  %v3845_v12 = vpop.f32.mrf.mxu0 }
 0xa49   : > { %v3819_v57 = vpop.f32.mrf.mxu1  ;;  %v3846_v58 = vadd.f32 %v3845_v12, %v3844_v56 }
 0xa4a   : > { %v3112_v7 = vadd.f32 %v3818_v59, %v3714_v42  ;;  %v3847_v62 = vpop.f32.mrf.mxu0 }
 0xa4b   : > { %v3820_v61 = vpop.f32.mrf.mxu1 }
 0xa4c   : > { %v3161_v47 = vadd.f32 %v3846_v58, %v3112_v7  ;;  %v3821_v53 = vadd.f32 %v3820_v61, %v3819_v57  ;;  %v3848_v4 = vpop.f32.mrf.mxu0 }
 0xa4d   : > { %v3849_v21 = vadd.f32 %v3848_v4, %v3847_v62  ;;  %v3822_v22 = vpop.f32.mrf.mxu1 }
 0xa4e   : > { %v3115_v13 = vadd.f32 %v3821_v53, %v3714_v42  ;;  %v3175_v15 = vadd.f32 %v3161_v47, %v5684_v16 }
 0xa4f   : > { %v3823_v33 = vpop.f32.mrf.mxu1 }
 0xa50   : > { %v3164_v17 = vadd.f32 %v3849_v21, %v3115_v13  ;;  %3181 = vadd.xlane.f32.xlu1 %v3175_v15  ;;  %v3824_v19 = vadd.f32 %v3823_v33, %v3822_v22 }
 0xa51   : > { %v3825_v60 = vpop.f32.mrf.mxu1 }
 0xa52   : > { %v3176_v11 = vadd.f32 %v3164_v17, %v5686_v31  ;;  %v3120_v5 = vadd.f32 %v3824_v19, %v3714_v42 }
 0xa53   : > { %v3826_v20 = vpop.f32.mrf.mxu1 }
 0xa54   : > { %3183 = vadd.xlane.f32.xlu0 %v3176_v11  ;;  %v3827_v8 = vadd.f32 %v3826_v20, %v3825_v60 }
 0xa56   : > { %v3123_v25 = vadd.f32 %v3827_v8, %v3714_v42 }
 0xa65   : > { %v3850_v28 = vpop.f32.mrf.mxu1 }
 0xa67   : > { %v3851_v35 = vpop.f32.mrf.mxu1 }
 0xa68   : > { %v3852_v6 = vadd.f32 %v3851_v35, %v3850_v28 }
 0xa69   : > { %v3853_v2 = vpop.f32.mrf.mxu1 }
 0xa6a   : > { %v3169_v3 = vadd.f32 %v3852_v6, %v3120_v5 }
 0xa6b   : > { %v3854_v30 = vpop.f32.mrf.mxu1 }
 0xa6c   : > { %v3855_v16 = vadd.f32 %v3854_v30, %v3853_v2  ;;  %v3177_v18 = vadd.f32 %v3169_v3, %v5695_v36 }
 0xa6e   : > { %v3172_v50 = vadd.f32 %v3855_v16, %v3123_v25  ;;  %3185 = vadd.xlane.f32.xlu1 %v3177_v18 }
 0xa70   : > { %v3178_v31 = vadd.f32 %v3172_v50, %v5693_v32 }
 0xa72   : > { %3187 = vadd.xlane.f32.xlu0 %v3178_v31 }
 0xad9   : > { %v3182_v27 = vpop.xlane.xlu1 %3181 }
 0xada   : > { %v3189_v48 = vmul.f32 0.0078125, %v3182_v27 }
 0xadc   : > { %v3193_v24 = vsub.f32 %v3175_v15, %v3189_v48 }
 0xadd   : > { %v3184_v38 = vpop.xlane.xlu0 %3183 }
 0xade   : > { %v3190_v29 = vmul.f32 0.0078125, %v3184_v38  ;;  %v3197_v43 = vmul.f32 %v3193_v24, %v3193_v24 }
 0xae0   : > { %v3194_v0 = vsub.f32 %v3176_v11, %v3190_v29  ;;  %3201 = vadd.xlane.f32.xlu1 %v3197_v43 }
 0xae2   : > { %v3198_v37 = vmul.f32 %v3194_v0, %v3194_v0 }
 0xae4   : > { %3203 = vadd.xlane.f32.xlu0 %v3198_v37 }
 0xaf7   : > { %v3186_v55 = vpop.xlane.xlu1 %3185 }
 0xaf8   : > { %v3191_v39 = vmul.f32 0.0078125, %v3186_v55 }
 0xafa   : > { %v3195_v26 = vsub.f32 %v3177_v18, %v3191_v39 }
 0xafb   : > { %v3188_v49 = vpop.xlane.xlu0 %3187 }
 0xafc   : > { %v3192_v36 = vmul.f32 0.0078125, %v3188_v49  ;;  %v3199_v40 = vmul.f32 %v3195_v26, %v3195_v26 }
 0xafe   : > { %v3196_v32 = vsub.f32 %v3178_v31, %v3192_v36  ;;  %3205 = vadd.xlane.f32.xlu1 %v3199_v40 }
 0xb00   : > { %v3200_v44 = vmul.f32 %v3196_v32, %v3196_v32 }
 0xb02   : > { %3207 = vadd.xlane.f32.xlu0 %v3200_v44 }
 0xb69   : > { %v3202_v10 = vpop.xlane.xlu1 %3201 }
 0xb6a   : > { %v3209_v63 = vmul.f32 0.0078125, %v3202_v10 }
 0xb6c   : > { %v3213_v9 = vadd.f32 1e-12, %v3209_v63 }
 0xb6d   : > { %v3204_v45 = vpop.xlane.xlu0 %3203 }
 0xb6e   : > { %4389 = vrsqrt.f32 %v3213_v9  ;;  %v3210_v34 = vmul.f32 0.0078125, %v3204_v45 }
 0xb70   : > { %v3214_v14 = vadd.f32 1e-12, %v3210_v34 }
 0xb72   : > { %4391 = vrsqrt.f32 %v3214_v14 }
 0xb7b   : > { %v4390_v1 = vpop.eup %4389 }
 0xb7c   : > { %v3221_v46 = vmul.f32 %v4390_v1, %v3193_v24 }
 0xb7e   : > { %v3231_v54 = vmul.f32 %v3747_v41, %v3221_v46 }
 0xb7f   : > { %v4392_v23 = vpop.eup %4391 }
 0xb80   : > { %v3241_v56 = vadd.f32 %v3748_v51, %v3231_v54  ;;  %v3222_v42 = vmul.f32 %v4392_v23, %v3194_v0 }
 0xb82   : > { %3245 = vst [vmem:[#allocation2 + $0x10] sm:$0xff] %v3241_v56  ;;  %v3232_v52 = vmul.f32 %v3747_v41, %v3222_v42 }
 0xb84   : > { %v3242_v59 = vadd.f32 %v3748_v51, %v3232_v52 }
 0xb86   : > { %3246 = vst [vmem:[#allocation2] sm:$0xff] %v3242_v59 }
 0xb87   : > { %v3206_v12 = vpop.xlane.xlu1 %3205 }
 0xb88   : > { %v3211_v57 = vmul.f32 0.0078125, %v3206_v12 }
 0xb8a   : > { %v3215_v7 = vadd.f32 1e-12, %v3211_v57 }
 0xb8b   : > { %v3208_v58 = vpop.xlane.xlu0 %3207 }
 0xb8c   : > { %4393 = vrsqrt.f32 %v3215_v7  ;;  %v3212_v62 = vmul.f32 0.0078125, %v3208_v58 }
 0xb8e   : > { %v3216_v61 = vadd.f32 1e-12, %v3212_v62 }
 0xb90   : > { %4395 = vrsqrt.f32 %v3216_v61 }
 0xb99   : > { %v4394_v47 = vpop.eup %4393 }
 0xb9a   : > { %v3223_v53 = vmul.f32 %v4394_v47, %v3195_v26 }
 0xb9c   : > { %v3233_v4 = vmul.f32 %v3747_v41, %v3223_v53 }
 0xb9d   : > { %v4396_v13 = vpop.eup %4395 }
 0xb9e   : > { %v3243_v21 = vadd.f32 %v3748_v51, %v3233_v4  ;;  %v3224_v15 = vmul.f32 %v4396_v13, %v3196_v32 }
 0xba0   : > { %3247 = vst [vmem:[#allocation2 + $0x18] sm:$0xff] %v3243_v21  ;;  %v3234_v17 = vmul.f32 %v3747_v41, %v3224_v15  ;;  %3252 = sbr.rel (%p3749_p12) target bundleno = 2982 (0xba6), region = 172 }
 0xba2   : > { %v3244_v11 = vadd.f32 %v3748_v51, %v3234_v17 }
 0xba4   : > { %3248 = vst [vmem:[#allocation2 + $0x8] sm:$0xff] %v3244_v11 }
 0xba5   : > { %3253 = vst [vmem:[#allocation26] sm:$0xff] %v3241_v56 }
 0xba6 PF: > { %s6016_s19 = sld [smem:[#allocation39_spill]]  ;;  %s4910_s22 = smov [#allocation26]  }
 0xba7   : > { %s3263_s1 = sshll.u32 %s4910_s22, 4  ;;  %s3264_s1 = int_to_ptr.vmem [resolvable:$true] %s3263_s1 }
 0xba8   : > { %s4775_s7 = scalar_lea.vmem %s3264_s1, 128  ;;  %p4782_p7 = scmp.lt.s32.totalorder %s3264_s1, %s3264_s1 }
 0xba9   : > { %p4776_p2 = scmp.ne.s32.totalorder %s3264_s1, %s4775_s7  ;;  %p4783_p3 = scmp.lt.s32.totalorder %s4775_s7, %s4775_s7 }
 0xbab   : > { %p4784_p1 = por %p4783_p3, %p4782_p7 }
 0xbac   : > { %p4083_p0 = scmp.eq.s32.totalorder %s6016_s19, 1 }
 0xbae   : > { %p4777_p4 = pnand %p4776_p2, %p4083_p0 }
 0xbb0   : > { %p4778_p6 = pneg %p4777_p4 }
 0xbb2   : > { %p4785_p10 = pnand %p4784_p1, %p4778_p6 }
 0xbb4   : > { %4788 = shalt.err (!%p4785_p10)
}
 0xbb5   : > { %s6017_s28 = sld [smem:[#allocation64_spill]] }
 0xbbb   : > { %4017 = dma.vmem_to_hbm [thread:$0]  (%p4083_p0), %s3264_s1, 128, %s6017_s28, [#allocation5]  }
 0xbbc   : > { %4856 = dma.done.wait (%p4083_p0), [#allocation5], 128  }
 0xbbd   : > { %4858 = vsyncadd (%p4083_p0), [#allocation5], 4294967168 }
 0xbbe PF: > { %s47_s0 = sadd.s32 1, %s4881_s0   ;;  %s6018_s3 = sld [smem:[#allocation36_spill]] }
 0xbbf   : > { %p44_p8 = scmp.ge.s32.totalorder %s47_s0, 4   ;;  %s6019_s28 = sld [smem:[#allocation37_spill]] }
 0xbc0   : > { %s6020_s29 = sld [smem:[#allocation42_spill]]  ;;  %s6022_s30 = smov %s4877_s4 }
 0xbc1   : > { %s6021_s25 = sld [smem:[#allocation40_spill]] }
 0xbc3   :  { %46 = sbr.rel (!%p44_p8) target bundleno = 37 (0x25), region = 265 }
 0xbc7   : > { %s6023_s4 = smov %s6021_s25 }
 0xbc8   :  { %3276 = vsyncpa [#allocation4], 1 }
 0xbc9   :  { %3278 = vsyncpa [#allocation4 + $0x1], 1 }
 0xbca   :  { %3279 = vsyncpa [#allocation7], 1 }
 0xbcb   :  { %3280 = vsyncpa [#allocation10], 1 }
 0xbcc   :  { %3281 = vsyncpa [#allocation13], 1 }
 0xbcd   :  { %3282 = vsyncpa [#allocation16], 1 }
 0xbce   :  { %3283 = vsyncpa [#allocation19], 1 }
 0xbcf   :  { %3285 = vsyncpa [#allocation19 + $0x1], 1 }
 0xbd0   :  { %3286 = vsyncpa [#allocation22], 1 }
 0xbd1   :  { %3288 = vsyncpa [#allocation22 + $0x1], 1 }
 0xbd2   :  { %3289 = vsyncpa [#allocation25], 1 }
 0xbd3   :  { %3291 = vsyncpa [#allocation25 + $0x1], 1 }
 0xbd4   :  { %3292 = vsyncpa [#allocation5], 1 }
 0xbd5   :  { %3294 = vsyncpa [#allocation5 + $0x1], 1 }

</bundles_post_ra>
